<compile_context>
chip_gen: v5e
topology: v5e:2x2
jax: 0.10.0
libtpu: 0.0.40
codegen_flags: <defaults>
</compile_context>

<pallas_src>
import math

import jax
import jax.numpy as jnp
from jax.experimental import pallas as pl
from jax.experimental.pallas import tpu as pltpu

HIDDEN = 8                      # hidden_size
NHEADS = 8                      # num_of_heads
SCALE = 1.0 / math.sqrt(HIDDEN)

OUT_F = NHEADS * HIDDEN         # 64  heads*hidden projected features
QKV_OUT = 3 * OUT_F             # 192 rows of the proj scratch (q;k;v)
MAX_TILE_N = 2048               # token tile per grid step (lane-dense)
CHUNK = 512                     # inner lane chunk: keeps per-head live set < 64 vregs


def _round_up(x, m):
    return (x + m - 1) // m * m


def _choose_tile(n, max_tile=MAX_TILE_N):
    # Lane-aligned tile; capped at ceil(n/2) so there are >=2 grid steps when
    # possible (v7x megacore sharding of the "parallel" token axis).
    half = _round_up(max(-(-n // 2), 1), 128)
    return max(128, min(max_tile, half))


def _head_attention(qs, kh, vh):
    """Per-head, per-token outer-product SDPA, token dim on lanes.

    qs (pre-scaled), kh, vh: (HIDDEN, T) f32.
    scores[i, j, n] = qs[i, n] * kh[j, n]; softmax over j;
    ctx[i, n] = sum_j p[i, j, n] * vh[j, n].
    The 8-wide reduction axis j is unrolled into element-wise VPU/EUP ops.
    """
    # pass 1: row max via the exact kmax/kmin trick (max_j q*k_j).
    kmax = kh[0:1, :]
    kmin = kh[0:1, :]
    for j in range(1, HIDDEN):
        kmax = jnp.maximum(kmax, kh[j:j + 1, :])
        kmin = jnp.minimum(kmin, kh[j:j + 1, :])
    m = qs * jnp.where(qs >= 0.0, kmax, kmin)

    # pass 2: exp + accumulate denominator and context.
    e = jnp.exp(qs * kh[0:1, :] - m)
    denom = e
    ctx = e * vh[0:1, :]
    for j in range(1, HIDDEN):
        e = jnp.exp(qs * kh[j:j + 1, :] - m)
        denom = denom + e
        ctx = ctx + e * vh[j:j + 1, :]

    # EUP approximate reciprocal + one Newton step (moves the divide off VALU).
    r = pl.reciprocal(denom, approx=True)
    r = r * (2.0 - denom * r)
    return ctx * r


def _mha_kernel(q_ref, k_ref, v_ref,
                wq_ref, bq_ref, wk_ref, bk_ref, wv_ref, bv_ref,
                wo_ref, bo_ref,
                o_ref, proj_ref, ctx_ref):
    f32 = jnp.float32
    # q/k/v projections: three lane-dense MXU matmuls into the proj scratch.
    # (q weights/bias already carry the 1/sqrt(hidden) scale.)
    proj_ref[0:OUT_F, :] = (
        jnp.dot(wq_ref[...], q_ref[...], preferred_element_type=f32) + bq_ref[...])
    proj_ref[OUT_F:2 * OUT_F, :] = (
        jnp.dot(wk_ref[...], k_ref[...], preferred_element_type=f32) + bk_ref[...])
    proj_ref[2 * OUT_F:3 * OUT_F, :] = (
        jnp.dot(wv_ref[...], v_ref[...], preferred_element_type=f32) + bv_ref[...])

    tile = o_ref.shape[1]
    # Inner lane-chunk loop keeps the per-head softmax live set (~7 x (8,chunk))
    # within the vreg file even for 2048-token tiles.
    for c0 in range(0, tile, CHUNK):
        cw = min(CHUNK, tile - c0)
        for h in range(NHEADS):
            lo = h * HIDDEN
            qs = proj_ref[lo:lo + HIDDEN, c0:c0 + cw]
            kh = proj_ref[OUT_F + lo:OUT_F + lo + HIDDEN, c0:c0 + cw]
            vh = proj_ref[2 * OUT_F + lo:2 * OUT_F + lo + HIDDEN, c0:c0 + cw]
            ctx_ref[lo:lo + HIDDEN, c0:c0 + cw] = _head_attention(qs, kh, vh)

    # Output projection for all heads at once (block-diag wo), one wide store.
    o_ref[...] = (
        jnp.dot(wo_ref[...], ctx_ref[...], preferred_element_type=f32)
        + bo_ref[...])


def init_params(key):
    ks = jax.random.split(key, 8)

    def linear(kw, kb, fan_in, fan_out):
        bound = 1.0 / math.sqrt(fan_in)
        w = jax.random.uniform(kw, (fan_out, fan_in), jnp.float32, -bound, bound)
        b = jax.random.uniform(kb, (fan_out,), jnp.float32, -bound, bound)
        return w, b

    wq, bq = linear(ks[0], ks[1], HIDDEN, HIDDEN * NHEADS)
    wk, bk = linear(ks[2], ks[3], HIDDEN, HIDDEN * NHEADS)
    wv, bv = linear(ks[4], ks[5], HIDDEN, HIDDEN * NHEADS)
    wo, bo = linear(ks[6], ks[7], HIDDEN, HIDDEN)
    mask = jnp.zeros((NHEADS, HIDDEN), jnp.float32)   # attn_mask (all zeros)
    return dict(wq=wq, bq=bq, wk=wk, bk=bk, wv=wv, bv=bv, wo=wo, bo=bo, mask=mask)


def prepare_fused_params(p):
    """One-time (per parameter set) host-side weight preparation."""
    # The kernel drops the attn_mask (it is all zeros in this model).
    assert bool(jnp.all(p["mask"] == 0.0)), "kernel assumes an all-zero attn_mask"
    return dict(
        wq_s=(p["wq"] * SCALE).astype(jnp.float32),          # fold 1/sqrt(hidden)
        bq_s=(p["bq"] * SCALE).reshape(OUT_F, 1).astype(jnp.float32),
        wk=p["wk"].astype(jnp.float32),
        bk=p["bk"].reshape(OUT_F, 1).astype(jnp.float32),
        wv=p["wv"].astype(jnp.float32),
        bv=p["bv"].reshape(OUT_F, 1).astype(jnp.float32),
        # Block-diagonal output projection: applies wo to every head at once.
        wo_bd=jnp.kron(jnp.eye(NHEADS, dtype=jnp.float32), p["wo"]),
        bo_t=jnp.tile(p["bo"], NHEADS).reshape(OUT_F, 1).astype(jnp.float32),
    )


def model_forward(query, key, value, fused):
    B, S, H = query.shape
    assert H == HIDDEN
    N = B * S

    tile = _choose_tile(N)
    n_pad = _round_up(N, tile)

    def prep(a):
        a = a.reshape(N, HIDDEN).astype(jnp.float32)
        if n_pad != N:
            a = jnp.pad(a, ((0, n_pad - N), (0, 0)))
        return a.T                                           # (HIDDEN, n_pad)

    q_t, k_t, v_t = prep(query), prep(key), prep(value)

    cost = pl.CostEstimate(
        flops=14000 * n_pad,            # qkv/out matmuls + unrolled softmax
        transcendentals=72 * n_pad,     # 64 exps + 8 reciprocals per token
        bytes_accessed=368 * n_pad,     # in 3*8*4 B/token, out 64*4 B/token
    )

    out_t = pl.pallas_call(
        _mha_kernel,
        out_shape=jax.ShapeDtypeStruct((OUT_F, n_pad), jnp.float32),
        grid_spec=pltpu.PrefetchScalarGridSpec(
            num_scalar_prefetch=0,
            grid=(n_pad // tile,),
            in_specs=[
                pl.BlockSpec((HIDDEN, tile), lambda i: (0, i)),   # q_t
                pl.BlockSpec((HIDDEN, tile), lambda i: (0, i)),   # k_t
                pl.BlockSpec((HIDDEN, tile), lambda i: (0, i)),   # v_t
                pl.BlockSpec((OUT_F, HIDDEN), lambda i: (0, 0)),  # wq (scaled)
                pl.BlockSpec((OUT_F, 1), lambda i: (0, 0)),       # bq (scaled)
                pl.BlockSpec((OUT_F, HIDDEN), lambda i: (0, 0)),  # wk
                pl.BlockSpec((OUT_F, 1), lambda i: (0, 0)),       # bk
                pl.BlockSpec((OUT_F, HIDDEN), lambda i: (0, 0)),  # wv
                pl.BlockSpec((OUT_F, 1), lambda i: (0, 0)),       # bv
                pl.BlockSpec((OUT_F, OUT_F), lambda i: (0, 0)),   # wo block-diag
                pl.BlockSpec((OUT_F, 1), lambda i: (0, 0)),       # bo tiled
            ],
            out_specs=pl.BlockSpec((OUT_F, tile), lambda i: (0, i)),
            scratch_shapes=[
                pltpu.VMEM((QKV_OUT, tile), jnp.float32),         # proj (q;k;v)
                pltpu.VMEM((OUT_F, tile), jnp.float32),           # ctx
            ],
        ),
        compiler_params=pltpu.CompilerParams(
            dimension_semantics=("parallel",)),
        cost_estimate=cost,
    )(q_t, k_t, v_t,
      fused["wq_s"], fused["bq_s"], fused["wk"], fused["bk"],
      fused["wv"], fused["bv"], fused["wo_bd"], fused["bo_t"])

    # (64, N) feature-major -> (N, nh, hidden); element-for-element identical
    # to the PyTorch contiguous-view output (see module docstring).
    return out_t[:, :N].T.reshape(N, NHEADS, HIDDEN)


def reference_forward(query, key, value, p):
    """Pure-jnp mirror of the kernel math, for validation."""
    hp = jax.lax.Precision.HIGHEST
    B, S, H = query.shape
    N = B * S
    x_q = query.reshape(N, H)
    x_k = key.reshape(N, H)
    x_v = value.reshape(N, H)
    qp = jnp.dot(x_q, p["wq"].T, precision=hp) + p["bq"]
    kp = jnp.dot(x_k, p["wk"].T, precision=hp) + p["bk"]
    vp = jnp.dot(x_v, p["wv"].T, precision=hp) + p["bv"]
    qh = qp.reshape(N, NHEADS, HIDDEN)
    kh = kp.reshape(N, NHEADS, HIDDEN)
    vh = vp.reshape(N, NHEADS, HIDDEN)
    scores = qh[:, :, :, None] * kh[:, :, None, :] * SCALE        # (N, nh, H, H)
    scores = scores + p["mask"][None, :, None, :]                 # zeros
    attn = jax.nn.softmax(scores, axis=-1)
    ctx = jnp.einsum("nhij,nhj->nhi", attn, vh, precision=hp)     # (N, nh, H)
    return (jnp.einsum("nhi,oi->nho", ctx, p["wo"], precision=hp)
            + p["bo"][None, None, :])


if __name__ == "__main__":
    root = jax.random.PRNGKey(0)
    k_params, k_q, k_k, k_v = jax.random.split(root, 4)
    params = init_params(k_params)
    fused = prepare_fused_params(params)

    B, S = 2, 8
    query = jax.random.normal(k_q, (B, S, HIDDEN), jnp.float32)
    key_in = jax.random.normal(k_k, (B, S, HIDDEN), jnp.float32)
    value = jax.random.normal(k_v, (B, S, HIDDEN), jnp.float32)

    out = model_forward(query, key_in, value, fused)
    out = jax.block_until_ready(out)

    ref = reference_forward(query, key_in, value, params)
    assert out.shape == (B * S, NHEADS, HIDDEN), out.shape
    # Tolerance deliberately 5e-5: approx-reciprocal + one Newton step and the
    # host-side SCALE fold introduce only ~1e-7-level relative deviations, but
    # we leave a small margin over the old 2e-5 bound.
    assert jnp.allclose(out, ref, atol=5e-5, rtol=5e-5), "mismatch vs jnp reference"

    print("KERNEL_OK")
</pallas_src>

<mosaic_0001>
module attributes {stable_mosaic.version = 11 : i64} {
  func.func @_mha_kernel(%arg0: i32, %arg1: memref<8x128xf32, #tpu.memory_space<vmem>>, %arg2: memref<8x128xf32, #tpu.memory_space<vmem>>, %arg3: memref<8x128xf32, #tpu.memory_space<vmem>>, %arg4: memref<64x8xf32, #tpu.memory_space<vmem>>, %arg5: memref<64x1xf32, #tpu.memory_space<vmem>>, %arg6: memref<64x8xf32, #tpu.memory_space<vmem>>, %arg7: memref<64x1xf32, #tpu.memory_space<vmem>>, %arg8: memref<64x8xf32, #tpu.memory_space<vmem>>, %arg9: memref<64x1xf32, #tpu.memory_space<vmem>>, %arg10: memref<64x64xf32, #tpu.memory_space<vmem>>, %arg11: memref<64x1xf32, #tpu.memory_space<vmem>>, %arg12: memref<64x128xf32, #tpu.memory_space<vmem>>, %arg13: memref<192x128xf32, #tpu.memory_space<vmem>>, %arg14: memref<64x128xf32, #tpu.memory_space<vmem>>) attributes {dimension_semantics = [#tpu.dimension_semantics<parallel>], iteration_bounds = array<i64: 1>, scalar_prefetch = 0 : i64, scratch_operands = 2 : i64, tpu.core_type = #tpu.core_type<tc>, window_params = [{transform_indices = @transform_0, window_bounds = array<i64: 8, 128>}, {transform_indices = @transform_1, window_bounds = array<i64: 8, 128>}, {transform_indices = @transform_2, window_bounds = array<i64: 8, 128>}, {pipeline_mode = #tpu.pipeline_mode<synchronous>, transform_indices = @transform_3, window_bounds = array<i64: 64, 8>}, {pipeline_mode = #tpu.pipeline_mode<synchronous>, transform_indices = @transform_4, window_bounds = array<i64: 64, 1>}, {pipeline_mode = #tpu.pipeline_mode<synchronous>, transform_indices = @transform_5, window_bounds = array<i64: 64, 8>}, {pipeline_mode = #tpu.pipeline_mode<synchronous>, transform_indices = @transform_6, window_bounds = array<i64: 64, 1>}, {pipeline_mode = #tpu.pipeline_mode<synchronous>, transform_indices = @transform_7, window_bounds = array<i64: 64, 8>}, {pipeline_mode = #tpu.pipeline_mode<synchronous>, transform_indices = @transform_8, window_bounds = array<i64: 64, 1>}, {pipeline_mode = #tpu.pipeline_mode<synchronous>, transform_indices = @transform_9, window_bounds = array<i64: 64, 64>}, {pipeline_mode = #tpu.pipeline_mode<synchronous>, transform_indices = @transform_10, window_bounds = array<i64: 64, 1>}, {transform_indices = @transform_11, window_bounds = array<i64: 64, 128>}]} {
    %c0 = arith.constant 0 : index
    %c0_0 = arith.constant 0 : index
    %0 = vector.load %arg4[%c0, %c0_0] : memref<64x8xf32, #tpu.memory_space<vmem>>, vector<64x8xf32>
    %c0_1 = arith.constant 0 : index
    %c0_2 = arith.constant 0 : index
    %1 = vector.load %arg1[%c0_1, %c0_2] : memref<8x128xf32, #tpu.memory_space<vmem>>, vector<8x128xf32>
    %cst = arith.constant dense<0.000000e+00> : vector<64x128xf32>
    %2 = tpu.matmul %0, %1, %cst {dimension_numbers = #tpu.dot_dimension_numbers<[1], [0], [0], [1], [0, 0, 1, 1], [], []>} : vector<64x8xf32>, vector<8x128xf32>, vector<64x128xf32> -> vector<64x128xf32>
    %c0_3 = arith.constant 0 : index
    %c0_4 = arith.constant 0 : index
    %3 = vector.load %arg5[%c0_3, %c0_4] : memref<64x1xf32, #tpu.memory_space<vmem>>, vector<64x1xf32>
    %4 = vector.broadcast %3 : vector<64x1xf32> to vector<64x128xf32>
    %5 = arith.addf %2, %4 : vector<64x128xf32>
    %c0_5 = arith.constant 0 : index
    %c0_6 = arith.constant 0 : index
    %6 = vector.load %arg13[%c0_5, %c0_6] : memref<192x128xf32, #tpu.memory_space<vmem>>, vector<64x128xf32>
    tpu.vector_store %arg13[%c0_5, %c0_6], %5 {strides = array<i32>} : memref<192x128xf32, #tpu.memory_space<vmem>>, vector<64x128xf32>,
    %c0_7 = arith.constant 0 : index
    %c0_8 = arith.constant 0 : index
    %7 = vector.load %arg6[%c0_7, %c0_8] : memref<64x8xf32, #tpu.memory_space<vmem>>, vector<64x8xf32>
    %c0_9 = arith.constant 0 : index
    %c0_10 = arith.constant 0 : index
    %8 = vector.load %arg2[%c0_9, %c0_10] : memref<8x128xf32, #tpu.memory_space<vmem>>, vector<8x128xf32>
    %cst_11 = arith.constant dense<0.000000e+00> : vector<64x128xf32>
    %9 = tpu.matmul %7, %8, %cst_11 {dimension_numbers = #tpu.dot_dimension_numbers<[1], [0], [0], [1], [0, 0, 1, 1], [], []>} : vector<64x8xf32>, vector<8x128xf32>, vector<64x128xf32> -> vector<64x128xf32>
    %c0_12 = arith.constant 0 : index
    %c0_13 = arith.constant 0 : index
    %10 = vector.load %arg7[%c0_12, %c0_13] : memref<64x1xf32, #tpu.memory_space<vmem>>, vector<64x1xf32>
    %11 = vector.broadcast %10 : vector<64x1xf32> to vector<64x128xf32>
    %12 = arith.addf %9, %11 : vector<64x128xf32>
    %c64 = arith.constant 64 : index
    %c0_14 = arith.constant 0 : index
    %13 = vector.load %arg13[%c64, %c0_14] : memref<192x128xf32, #tpu.memory_space<vmem>>, vector<64x128xf32>
    tpu.vector_store %arg13[%c64, %c0_14], %12 {strides = array<i32>} : memref<192x128xf32, #tpu.memory_space<vmem>>, vector<64x128xf32>,
    %c0_15 = arith.constant 0 : index
    %c0_16 = arith.constant 0 : index
    %14 = vector.load %arg8[%c0_15, %c0_16] : memref<64x8xf32, #tpu.memory_space<vmem>>, vector<64x8xf32>
    %c0_17 = arith.constant 0 : index
    %c0_18 = arith.constant 0 : index
    %15 = vector.load %arg3[%c0_17, %c0_18] : memref<8x128xf32, #tpu.memory_space<vmem>>, vector<8x128xf32>
    %cst_19 = arith.constant dense<0.000000e+00> : vector<64x128xf32>
    %16 = tpu.matmul %14, %15, %cst_19 {dimension_numbers = #tpu.dot_dimension_numbers<[1], [0], [0], [1], [0, 0, 1, 1], [], []>} : vector<64x8xf32>, vector<8x128xf32>, vector<64x128xf32> -> vector<64x128xf32>
    %c0_20 = arith.constant 0 : index
    %c0_21 = arith.constant 0 : index
    %17 = vector.load %arg9[%c0_20, %c0_21] : memref<64x1xf32, #tpu.memory_space<vmem>>, vector<64x1xf32>
    %18 = vector.broadcast %17 : vector<64x1xf32> to vector<64x128xf32>
    %19 = arith.addf %16, %18 : vector<64x128xf32>
    %c128 = arith.constant 128 : index
    %c0_22 = arith.constant 0 : index
    %20 = vector.load %arg13[%c128, %c0_22] : memref<192x128xf32, #tpu.memory_space<vmem>>, vector<64x128xf32>
    tpu.vector_store %arg13[%c128, %c0_22], %19 {strides = array<i32>} : memref<192x128xf32, #tpu.memory_space<vmem>>, vector<64x128xf32>,
    %c0_23 = arith.constant 0 : index
    %c0_24 = arith.constant 0 : index
    %21 = vector.load %arg13[%c0_23, %c0_24] : memref<192x128xf32, #tpu.memory_space<vmem>>, vector<8x128xf32>
    %c64_25 = arith.constant 64 : index
    %c0_26 = arith.constant 0 : index
    %22 = vector.load %arg13[%c64_25, %c0_26] : memref<192x128xf32, #tpu.memory_space<vmem>>, vector<8x128xf32>
    %c128_27 = arith.constant 128 : index
    %c0_28 = arith.constant 0 : index
    %23 = vector.load %arg13[%c128_27, %c0_28] : memref<192x128xf32, #tpu.memory_space<vmem>>, vector<8x128xf32>
    %24 = vector.extract_strided_slice %22 {offsets = [0, 0], sizes = [1, 128], strides = [1, 1]} : vector<8x128xf32> to vector<1x128xf32>
    %25 = vector.extract_strided_slice %22 {offsets = [0, 0], sizes = [1, 128], strides = [1, 1]} : vector<8x128xf32> to vector<1x128xf32>
    %26 = vector.extract_strided_slice %22 {offsets = [1, 0], sizes = [1, 128], strides = [1, 1]} : vector<8x128xf32> to vector<1x128xf32>
    %27 = arith.maximumf %24, %26 : vector<1x128xf32>
    %28 = vector.extract_strided_slice %22 {offsets = [1, 0], sizes = [1, 128], strides = [1, 1]} : vector<8x128xf32> to vector<1x128xf32>
    %29 = arith.minimumf %25, %28 : vector<1x128xf32>
    %30 = vector.extract_strided_slice %22 {offsets = [2, 0], sizes = [1, 128], strides = [1, 1]} : vector<8x128xf32> to vector<1x128xf32>
    %31 = arith.maximumf %27, %30 : vector<1x128xf32>
    %32 = vector.extract_strided_slice %22 {offsets = [2, 0], sizes = [1, 128], strides = [1, 1]} : vector<8x128xf32> to vector<1x128xf32>
    %33 = arith.minimumf %29, %32 : vector<1x128xf32>
    %34 = vector.extract_strided_slice %22 {offsets = [3, 0], sizes = [1, 128], strides = [1, 1]} : vector<8x128xf32> to vector<1x128xf32>
    %35 = arith.maximumf %31, %34 : vector<1x128xf32>
    %36 = vector.extract_strided_slice %22 {offsets = [3, 0], sizes = [1, 128], strides = [1, 1]} : vector<8x128xf32> to vector<1x128xf32>
    %37 = arith.minimumf %33, %36 : vector<1x128xf32>
    %38 = vector.extract_strided_slice %22 {offsets = [4, 0], sizes = [1, 128], strides = [1, 1]} : vector<8x128xf32> to vector<1x128xf32>
    %39 = arith.maximumf %35, %38 : vector<1x128xf32>
    %40 = vector.extract_strided_slice %22 {offsets = [4, 0], sizes = [1, 128], strides = [1, 1]} : vector<8x128xf32> to vector<1x128xf32>
    %41 = arith.minimumf %37, %40 : vector<1x128xf32>
    %42 = vector.extract_strided_slice %22 {offsets = [5, 0], sizes = [1, 128], strides = [1, 1]} : vector<8x128xf32> to vector<1x128xf32>
    %43 = arith.maximumf %39, %42 : vector<1x128xf32>
    %44 = vector.extract_strided_slice %22 {offsets = [5, 0], sizes = [1, 128], strides = [1, 1]} : vector<8x128xf32> to vector<1x128xf32>
    %45 = arith.minimumf %41, %44 : vector<1x128xf32>
    %46 = vector.extract_strided_slice %22 {offsets = [6, 0], sizes = [1, 128], strides = [1, 1]} : vector<8x128xf32> to vector<1x128xf32>
    %47 = arith.maximumf %43, %46 : vector<1x128xf32>
    %48 = vector.extract_strided_slice %22 {offsets = [6, 0], sizes = [1, 128], strides = [1, 1]} : vector<8x128xf32> to vector<1x128xf32>
    %49 = arith.minimumf %45, %48 : vector<1x128xf32>
    %50 = vector.extract_strided_slice %22 {offsets = [7, 0], sizes = [1, 128], strides = [1, 1]} : vector<8x128xf32> to vector<1x128xf32>
    %51 = arith.maximumf %47, %50 : vector<1x128xf32>
    %52 = vector.extract_strided_slice %22 {offsets = [7, 0], sizes = [1, 128], strides = [1, 1]} : vector<8x128xf32> to vector<1x128xf32>
    %53 = arith.minimumf %49, %52 : vector<1x128xf32>
    %cst_29 = arith.constant 0.000000e+00 : f32
    %54 = vector.broadcast %cst_29 : f32 to vector<8x128xf32>
    %55 = arith.cmpf oge, %21, %54 : vector<8x128xf32>
    %56 = vector.shape_cast %51 : vector<1x128xf32> to vector<1x128xf32>
    %57 = vector.broadcast %56 : vector<1x128xf32> to vector<8x128xf32>
    %58 = vector.shape_cast %53 : vector<1x128xf32> to vector<1x128xf32>
    %59 = vector.broadcast %58 : vector<1x128xf32> to vector<8x128xf32>
    %60 = arith.select %55, %57, %59 : vector<8x128xi1>, vector<8x128xf32>
    %61 = arith.mulf %21, %60 : vector<8x128xf32>
    %62 = vector.extract_strided_slice %22 {offsets = [0, 0], sizes = [1, 128], strides = [1, 1]} : vector<8x128xf32> to vector<1x128xf32>
    %63 = vector.broadcast %62 : vector<1x128xf32> to vector<8x128xf32>
    %64 = arith.mulf %21, %63 : vector<8x128xf32>
    %65 = arith.subf %64, %61 : vector<8x128xf32>
    %66 = math.exp %65 : vector<8x128xf32>
    %67 = vector.extract_strided_slice %23 {offsets = [0, 0], sizes = [1, 128], strides = [1, 1]} : vector<8x128xf32> to vector<1x128xf32>
    %68 = vector.broadcast %67 : vector<1x128xf32> to vector<8x128xf32>
    %69 = arith.mulf %66, %68 : vector<8x128xf32>
    %70 = vector.extract_strided_slice %22 {offsets = [1, 0], sizes = [1, 128], strides = [1, 1]} : vector<8x128xf32> to vector<1x128xf32>
    %71 = vector.broadcast %70 : vector<1x128xf32> to vector<8x128xf32>
    %72 = arith.mulf %21, %71 : vector<8x128xf32>
    %73 = arith.subf %72, %61 : vector<8x128xf32>
    %74 = math.exp %73 : vector<8x128xf32>
    %75 = arith.addf %66, %74 : vector<8x128xf32>
    %76 = vector.extract_strided_slice %23 {offsets = [1, 0], sizes = [1, 128], strides = [1, 1]} : vector<8x128xf32> to vector<1x128xf32>
    %77 = vector.broadcast %76 : vector<1x128xf32> to vector<8x128xf32>
    %78 = arith.mulf %74, %77 : vector<8x128xf32>
    %79 = arith.addf %69, %78 : vector<8x128xf32>
    %80 = vector.extract_strided_slice %22 {offsets = [2, 0], sizes = [1, 128], strides = [1, 1]} : vector<8x128xf32> to vector<1x128xf32>
    %81 = vector.broadcast %80 : vector<1x128xf32> to vector<8x128xf32>
    %82 = arith.mulf %21, %81 : vector<8x128xf32>
    %83 = arith.subf %82, %61 : vector<8x128xf32>
    %84 = math.exp %83 : vector<8x128xf32>
    %85 = arith.addf %75, %84 : vector<8x128xf32>
    %86 = vector.extract_strided_slice %23 {offsets = [2, 0], sizes = [1, 128], strides = [1, 1]} : vector<8x128xf32> to vector<1x128xf32>
    %87 = vector.broadcast %86 : vector<1x128xf32> to vector<8x128xf32>
    %88 = arith.mulf %84, %87 : vector<8x128xf32>
    %89 = arith.addf %79, %88 : vector<8x128xf32>
    %90 = vector.extract_strided_slice %22 {offsets = [3, 0], sizes = [1, 128], strides = [1, 1]} : vector<8x128xf32> to vector<1x128xf32>
    %91 = vector.broadcast %90 : vector<1x128xf32> to vector<8x128xf32>
    %92 = arith.mulf %21, %91 : vector<8x128xf32>
    %93 = arith.subf %92, %61 : vector<8x128xf32>
    %94 = math.exp %93 : vector<8x128xf32>
    %95 = arith.addf %85, %94 : vector<8x128xf32>
    %96 = vector.extract_strided_slice %23 {offsets = [3, 0], sizes = [1, 128], strides = [1, 1]} : vector<8x128xf32> to vector<1x128xf32>
    %97 = vector.broadcast %96 : vector<1x128xf32> to vector<8x128xf32>
    %98 = arith.mulf %94, %97 : vector<8x128xf32>
    %99 = arith.addf %89, %98 : vector<8x128xf32>
    %100 = vector.extract_strided_slice %22 {offsets = [4, 0], sizes = [1, 128], strides = [1, 1]} : vector<8x128xf32> to vector<1x128xf32>
    %101 = vector.broadcast %100 : vector<1x128xf32> to vector<8x128xf32>
    %102 = arith.mulf %21, %101 : vector<8x128xf32>
    %103 = arith.subf %102, %61 : vector<8x128xf32>
    %104 = math.exp %103 : vector<8x128xf32>
    %105 = arith.addf %95, %104 : vector<8x128xf32>
    %106 = vector.extract_strided_slice %23 {offsets = [4, 0], sizes = [1, 128], strides = [1, 1]} : vector<8x128xf32> to vector<1x128xf32>
    %107 = vector.broadcast %106 : vector<1x128xf32> to vector<8x128xf32>
    %108 = arith.mulf %104, %107 : vector<8x128xf32>
    %109 = arith.addf %99, %108 : vector<8x128xf32>
    %110 = vector.extract_strided_slice %22 {offsets = [5, 0], sizes = [1, 128], strides = [1, 1]} : vector<8x128xf32> to vector<1x128xf32>
    %111 = vector.broadcast %110 : vector<1x128xf32> to vector<8x128xf32>
    %112 = arith.mulf %21, %111 : vector<8x128xf32>
    %113 = arith.subf %112, %61 : vector<8x128xf32>
    %114 = math.exp %113 : vector<8x128xf32>
    %115 = arith.addf %105, %114 : vector<8x128xf32>
    %116 = vector.extract_strided_slice %23 {offsets = [5, 0], sizes = [1, 128], strides = [1, 1]} : vector<8x128xf32> to vector<1x128xf32>
    %117 = vector.broadcast %116 : vector<1x128xf32> to vector<8x128xf32>
    %118 = arith.mulf %114, %117 : vector<8x128xf32>
    %119 = arith.addf %109, %118 : vector<8x128xf32>
    %120 = vector.extract_strided_slice %22 {offsets = [6, 0], sizes = [1, 128], strides = [1, 1]} : vector<8x128xf32> to vector<1x128xf32>
    %121 = vector.broadcast %120 : vector<1x128xf32> to vector<8x128xf32>
    %122 = arith.mulf %21, %121 : vector<8x128xf32>
    %123 = arith.subf %122, %61 : vector<8x128xf32>
    %124 = math.exp %123 : vector<8x128xf32>
    %125 = arith.addf %115, %124 : vector<8x128xf32>
    %126 = vector.extract_strided_slice %23 {offsets = [6, 0], sizes = [1, 128], strides = [1, 1]} : vector<8x128xf32> to vector<1x128xf32>
    %127 = vector.broadcast %126 : vector<1x128xf32> to vector<8x128xf32>
    %128 = arith.mulf %124, %127 : vector<8x128xf32>
    %129 = arith.addf %119, %128 : vector<8x128xf32>
    %130 = vector.extract_strided_slice %22 {offsets = [7, 0], sizes = [1, 128], strides = [1, 1]} : vector<8x128xf32> to vector<1x128xf32>
    %131 = vector.broadcast %130 : vector<1x128xf32> to vector<8x128xf32>
    %132 = arith.mulf %21, %131 : vector<8x128xf32>
    %133 = arith.subf %132, %61 : vector<8x128xf32>
    %134 = math.exp %133 : vector<8x128xf32>
    %135 = arith.addf %125, %134 : vector<8x128xf32>
    %136 = vector.extract_strided_slice %23 {offsets = [7, 0], sizes = [1, 128], strides = [1, 1]} : vector<8x128xf32> to vector<1x128xf32>
    %137 = vector.broadcast %136 : vector<1x128xf32> to vector<8x128xf32>
    %138 = arith.mulf %134, %137 : vector<8x128xf32>
    %139 = arith.addf %129, %138 : vector<8x128xf32>
    %140 = tpu.reciprocal %135 {approx = true} : vector<8x128xf32> -> vector<8x128xf32>
    %141 = arith.mulf %135, %140 : vector<8x128xf32>
    %cst_30 = arith.constant 2.000000e+00 : f32
    %142 = vector.broadcast %cst_30 : f32 to vector<8x128xf32>
    %143 = arith.subf %142, %141 : vector<8x128xf32>
    %144 = arith.mulf %140, %143 : vector<8x128xf32>
    %145 = arith.mulf %139, %144 : vector<8x128xf32>
    %c0_31 = arith.constant 0 : index
    %c0_32 = arith.constant 0 : index
    %146 = vector.load %arg14[%c0_31, %c0_32] : memref<64x128xf32, #tpu.memory_space<vmem>>, vector<8x128xf32>
    tpu.vector_store %arg14[%c0_31, %c0_32], %145 {strides = array<i32>} : memref<64x128xf32, #tpu.memory_space<vmem>>, vector<8x128xf32>,
    %c8 = arith.constant 8 : index
    %c0_33 = arith.constant 0 : index
    %147 = vector.load %arg13[%c8, %c0_33] : memref<192x128xf32, #tpu.memory_space<vmem>>, vector<8x128xf32>
    %c72 = arith.constant 72 : index
    %c0_34 = arith.constant 0 : index
    %148 = vector.load %arg13[%c72, %c0_34] : memref<192x128xf32, #tpu.memory_space<vmem>>, vector<8x128xf32>
    %c136 = arith.constant 136 : index
    %c0_35 = arith.constant 0 : index
    %149 = vector.load %arg13[%c136, %c0_35] : memref<192x128xf32, #tpu.memory_space<vmem>>, vector<8x128xf32>
    %150 = vector.extract_strided_slice %148 {offsets = [0, 0], sizes = [1, 128], strides = [1, 1]} : vector<8x128xf32> to vector<1x128xf32>
    %151 = vector.extract_strided_slice %148 {offsets = [0, 0], sizes = [1, 128], strides = [1, 1]} : vector<8x128xf32> to vector<1x128xf32>
    %152 = vector.extract_strided_slice %148 {offsets = [1, 0], sizes = [1, 128], strides = [1, 1]} : vector<8x128xf32> to vector<1x128xf32>
    %153 = arith.maximumf %150, %152 : vector<1x128xf32>
    %154 = vector.extract_strided_slice %148 {offsets = [1, 0], sizes = [1, 128], strides = [1, 1]} : vector<8x128xf32> to vector<1x128xf32>
    %155 = arith.minimumf %151, %154 : vector<1x128xf32>
    %156 = vector.extract_strided_slice %148 {offsets = [2, 0], sizes = [1, 128], strides = [1, 1]} : vector<8x128xf32> to vector<1x128xf32>
    %157 = arith.maximumf %153, %156 : vector<1x128xf32>
    %158 = vector.extract_strided_slice %148 {offsets = [2, 0], sizes = [1, 128], strides = [1, 1]} : vector<8x128xf32> to vector<1x128xf32>
    %159 = arith.minimumf %155, %158 : vector<1x128xf32>
    %160 = vector.extract_strided_slice %148 {offsets = [3, 0], sizes = [1, 128], strides = [1, 1]} : vector<8x128xf32> to vector<1x128xf32>
    %161 = arith.maximumf %157, %160 : vector<1x128xf32>
    %162 = vector.extract_strided_slice %148 {offsets = [3, 0], sizes = [1, 128], strides = [1, 1]} : vector<8x128xf32> to vector<1x128xf32>
    %163 = arith.minimumf %159, %162 : vector<1x128xf32>
    %164 = vector.extract_strided_slice %148 {offsets = [4, 0], sizes = [1, 128], strides = [1, 1]} : vector<8x128xf32> to vector<1x128xf32>
    %165 = arith.maximumf %161, %164 : vector<1x128xf32>
    %166 = vector.extract_strided_slice %148 {offsets = [4, 0], sizes = [1, 128], strides = [1, 1]} : vector<8x128xf32> to vector<1x128xf32>
    %167 = arith.minimumf %163, %166 : vector<1x128xf32>
    %168 = vector.extract_strided_slice %148 {offsets = [5, 0], sizes = [1, 128], strides = [1, 1]} : vector<8x128xf32> to vector<1x128xf32>
    %169 = arith.maximumf %165, %168 : vector<1x128xf32>
    %170 = vector.extract_strided_slice %148 {offsets = [5, 0], sizes = [1, 128], strides = [1, 1]} : vector<8x128xf32> to vector<1x128xf32>
    %171 = arith.minimumf %167, %170 : vector<1x128xf32>
    %172 = vector.extract_strided_slice %148 {offsets = [6, 0], sizes = [1, 128], strides = [1, 1]} : vector<8x128xf32> to vector<1x128xf32>
    %173 = arith.maximumf %169, %172 : vector<1x128xf32>
    %174 = vector.extract_strided_slice %148 {offsets = [6, 0], sizes = [1, 128], strides = [1, 1]} : vector<8x128xf32> to vector<1x128xf32>
    %175 = arith.minimumf %171, %174 : vector<1x128xf32>
    %176 = vector.extract_strided_slice %148 {offsets = [7, 0], sizes = [1, 128], strides = [1, 1]} : vector<8x128xf32> to vector<1x128xf32>
    %177 = arith.maximumf %173, %176 : vector<1x128xf32>
    %178 = vector.extract_strided_slice %148 {offsets = [7, 0], sizes = [1, 128], strides = [1, 1]} : vector<8x128xf32> to vector<1x128xf32>
    %179 = arith.minimumf %175, %178 : vector<1x128xf32>
    %cst_36 = arith.constant 0.000000e+00 : f32
    %180 = vector.broadcast %cst_36 : f32 to vector<8x128xf32>
    %181 = arith.cmpf oge, %147, %180 : vector<8x128xf32>
    %182 = vector.shape_cast %177 : vector<1x128xf32> to vector<1x128xf32>
    %183 = vector.broadcast %182 : vector<1x128xf32> to vector<8x128xf32>
    %184 = vector.shape_cast %179 : vector<1x128xf32> to vector<1x128xf32>
    %185 = vector.broadcast %184 : vector<1x128xf32> to vector<8x128xf32>
    %186 = arith.select %181, %183, %185 : vector<8x128xi1>, vector<8x128xf32>
    %187 = arith.mulf %147, %186 : vector<8x128xf32>
    %188 = vector.extract_strided_slice %148 {offsets = [0, 0], sizes = [1, 128], strides = [1, 1]} : vector<8x128xf32> to vector<1x128xf32>
    %189 = vector.broadcast %188 : vector<1x128xf32> to vector<8x128xf32>
    %190 = arith.mulf %147, %189 : vector<8x128xf32>
    %191 = arith.subf %190, %187 : vector<8x128xf32>
    %192 = math.exp %191 : vector<8x128xf32>
    %193 = vector.extract_strided_slice %149 {offsets = [0, 0], sizes = [1, 128], strides = [1, 1]} : vector<8x128xf32> to vector<1x128xf32>
    %194 = vector.broadcast %193 : vector<1x128xf32> to vector<8x128xf32>
    %195 = arith.mulf %192, %194 : vector<8x128xf32>
    %196 = vector.extract_strided_slice %148 {offsets = [1, 0], sizes = [1, 128], strides = [1, 1]} : vector<8x128xf32> to vector<1x128xf32>
    %197 = vector.broadcast %196 : vector<1x128xf32> to vector<8x128xf32>
    %198 = arith.mulf %147, %197 : vector<8x128xf32>
    %199 = arith.subf %198, %187 : vector<8x128xf32>
    %200 = math.exp %199 : vector<8x128xf32>
    %201 = arith.addf %192, %200 : vector<8x128xf32>
    %202 = vector.extract_strided_slice %149 {offsets = [1, 0], sizes = [1, 128], strides = [1, 1]} : vector<8x128xf32> to vector<1x128xf32>
    %203 = vector.broadcast %202 : vector<1x128xf32> to vector<8x128xf32>
    %204 = arith.mulf %200, %203 : vector<8x128xf32>
    %205 = arith.addf %195, %204 : vector<8x128xf32>
    %206 = vector.extract_strided_slice %148 {offsets = [2, 0], sizes = [1, 128], strides = [1, 1]} : vector<8x128xf32> to vector<1x128xf32>
    %207 = vector.broadcast %206 : vector<1x128xf32> to vector<8x128xf32>
    %208 = arith.mulf %147, %207 : vector<8x128xf32>
    %209 = arith.subf %208, %187 : vector<8x128xf32>
    %210 = math.exp %209 : vector<8x128xf32>
    %211 = arith.addf %201, %210 : vector<8x128xf32>
    %212 = vector.extract_strided_slice %149 {offsets = [2, 0], sizes = [1, 128], strides = [1, 1]} : vector<8x128xf32> to vector<1x128xf32>
    %213 = vector.broadcast %212 : vector<1x128xf32> to vector<8x128xf32>
    %214 = arith.mulf %210, %213 : vector<8x128xf32>
    %215 = arith.addf %205, %214 : vector<8x128xf32>
    %216 = vector.extract_strided_slice %148 {offsets = [3, 0], sizes = [1, 128], strides = [1, 1]} : vector<8x128xf32> to vector<1x128xf32>
    %217 = vector.broadcast %216 : vector<1x128xf32> to vector<8x128xf32>
    %218 = arith.mulf %147, %217 : vector<8x128xf32>
    %219 = arith.subf %218, %187 : vector<8x128xf32>
    %220 = math.exp %219 : vector<8x128xf32>
    %221 = arith.addf %211, %220 : vector<8x128xf32>
    %222 = vector.extract_strided_slice %149 {offsets = [3, 0], sizes = [1, 128], strides = [1, 1]} : vector<8x128xf32> to vector<1x128xf32>
    %223 = vector.broadcast %222 : vector<1x128xf32> to vector<8x128xf32>
    %224 = arith.mulf %220, %223 : vector<8x128xf32>
    %225 = arith.addf %215, %224 : vector<8x128xf32>
    %226 = vector.extract_strided_slice %148 {offsets = [4, 0], sizes = [1, 128], strides = [1, 1]} : vector<8x128xf32> to vector<1x128xf32>
    %227 = vector.broadcast %226 : vector<1x128xf32> to vector<8x128xf32>
    %228 = arith.mulf %147, %227 : vector<8x128xf32>
    %229 = arith.subf %228, %187 : vector<8x128xf32>
    %230 = math.exp %229 : vector<8x128xf32>
    %231 = arith.addf %221, %230 : vector<8x128xf32>
    %232 = vector.extract_strided_slice %149 {offsets = [4, 0], sizes = [1, 128], strides = [1, 1]} : vector<8x128xf32> to vector<1x128xf32>
    %233 = vector.broadcast %232 : vector<1x128xf32> to vector<8x128xf32>
    %234 = arith.mulf %230, %233 : vector<8x128xf32>
    %235 = arith.addf %225, %234 : vector<8x128xf32>
    %236 = vector.extract_strided_slice %148 {offsets = [5, 0], sizes = [1, 128], strides = [1, 1]} : vector<8x128xf32> to vector<1x128xf32>
    %237 = vector.broadcast %236 : vector<1x128xf32> to vector<8x128xf32>
    %238 = arith.mulf %147, %237 : vector<8x128xf32>
    %239 = arith.subf %238, %187 : vector<8x128xf32>
    %240 = math.exp %239 : vector<8x128xf32>
    %241 = arith.addf %231, %240 : vector<8x128xf32>
    %242 = vector.extract_strided_slice %149 {offsets = [5, 0], sizes = [1, 128], strides = [1, 1]} : vector<8x128xf32> to vector<1x128xf32>
    %243 = vector.broadcast %242 : vector<1x128xf32> to vector<8x128xf32>
    %244 = arith.mulf %240, %243 : vector<8x128xf32>
    %245 = arith.addf %235, %244 : vector<8x128xf32>
    %246 = vector.extract_strided_slice %148 {offsets = [6, 0], sizes = [1, 128], strides = [1, 1]} : vector<8x128xf32> to vector<1x128xf32>
    %247 = vector.broadcast %246 : vector<1x128xf32> to vector<8x128xf32>
    %248 = arith.mulf %147, %247 : vector<8x128xf32>
    %249 = arith.subf %248, %187 : vector<8x128xf32>
    %250 = math.exp %249 : vector<8x128xf32>
    %251 = arith.addf %241, %250 : vector<8x128xf32>
    %252 = vector.extract_strided_slice %149 {offsets = [6, 0], sizes = [1, 128], strides = [1, 1]} : vector<8x128xf32> to vector<1x128xf32>
    %253 = vector.broadcast %252 : vector<1x128xf32> to vector<8x128xf32>
    %254 = arith.mulf %250, %253 : vector<8x128xf32>
    %255 = arith.addf %245, %254 : vector<8x128xf32>
    %256 = vector.extract_strided_slice %148 {offsets = [7, 0], sizes = [1, 128], strides = [1, 1]} : vector<8x128xf32> to vector<1x128xf32>
    %257 = vector.broadcast %256 : vector<1x128xf32> to vector<8x128xf32>
    %258 = arith.mulf %147, %257 : vector<8x128xf32>
    %259 = arith.subf %258, %187 : vector<8x128xf32>
    %260 = math.exp %259 : vector<8x128xf32>
    %261 = arith.addf %251, %260 : vector<8x128xf32>
    %262 = vector.extract_strided_slice %149 {offsets = [7, 0], sizes = [1, 128], strides = [1, 1]} : vector<8x128xf32> to vector<1x128xf32>
    %263 = vector.broadcast %262 : vector<1x128xf32> to vector<8x128xf32>
    %264 = arith.mulf %260, %263 : vector<8x128xf32>
    %265 = arith.addf %255, %264 : vector<8x128xf32>
    %266 = tpu.reciprocal %261 {approx = true} : vector<8x128xf32> -> vector<8x128xf32>
    %267 = arith.mulf %261, %266 : vector<8x128xf32>
    %cst_37 = arith.constant 2.000000e+00 : f32
    %268 = vector.broadcast %cst_37 : f32 to vector<8x128xf32>
    %269 = arith.subf %268, %267 : vector<8x128xf32>
    %270 = arith.mulf %266, %269 : vector<8x128xf32>
    %271 = arith.mulf %265, %270 : vector<8x128xf32>
    %c8_38 = arith.constant 8 : index
    %c0_39 = arith.constant 0 : index
    %272 = vector.load %arg14[%c8_38, %c0_39] : memref<64x128xf32, #tpu.memory_space<vmem>>, vector<8x128xf32>
    tpu.vector_store %arg14[%c8_38, %c0_39], %271 {strides = array<i32>} : memref<64x128xf32, #tpu.memory_space<vmem>>, vector<8x128xf32>,
    %c16 = arith.constant 16 : index
    %c0_40 = arith.constant 0 : index
    %273 = vector.load %arg13[%c16, %c0_40] : memref<192x128xf32, #tpu.memory_space<vmem>>, vector<8x128xf32>
    %c80 = arith.constant 80 : index
    %c0_41 = arith.constant 0 : index
    %274 = vector.load %arg13[%c80, %c0_41] : memref<192x128xf32, #tpu.memory_space<vmem>>, vector<8x128xf32>
    %c144 = arith.constant 144 : index
    %c0_42 = arith.constant 0 : index
    %275 = vector.load %arg13[%c144, %c0_42] : memref<192x128xf32, #tpu.memory_space<vmem>>, vector<8x128xf32>
    %276 = vector.extract_strided_slice %274 {offsets = [0, 0], sizes = [1, 128], strides = [1, 1]} : vector<8x128xf32> to vector<1x128xf32>
    %277 = vector.extract_strided_slice %274 {offsets = [0, 0], sizes = [1, 128], strides = [1, 1]} : vector<8x128xf32> to vector<1x128xf32>
    %278 = vector.extract_strided_slice %274 {offsets = [1, 0], sizes = [1, 128], strides = [1, 1]} : vector<8x128xf32> to vector<1x128xf32>
    %279 = arith.maximumf %276, %278 : vector<1x128xf32>
    %280 = vector.extract_strided_slice %274 {offsets = [1, 0], sizes = [1, 128], strides = [1, 1]} : vector<8x128xf32> to vector<1x128xf32>
    %281 = arith.minimumf %277, %280 : vector<1x128xf32>
    %282 = vector.extract_strided_slice %274 {offsets = [2, 0], sizes = [1, 128], strides = [1, 1]} : vector<8x128xf32> to vector<1x128xf32>
    %283 = arith.maximumf %279, %282 : vector<1x128xf32>
    %284 = vector.extract_strided_slice %274 {offsets = [2, 0], sizes = [1, 128], strides = [1, 1]} : vector<8x128xf32> to vector<1x128xf32>
    %285 = arith.minimumf %281, %284 : vector<1x128xf32>
    %286 = vector.extract_strided_slice %274 {offsets = [3, 0], sizes = [1, 128], strides = [1, 1]} : vector<8x128xf32> to vector<1x128xf32>
    %287 = arith.maximumf %283, %286 : vector<1x128xf32>
    %288 = vector.extract_strided_slice %274 {offsets = [3, 0], sizes = [1, 128], strides = [1, 1]} : vector<8x128xf32> to vector<1x128xf32>
    %289 = arith.minimumf %285, %288 : vector<1x128xf32>
    %290 = vector.extract_strided_slice %274 {offsets = [4, 0], sizes = [1, 128], strides = [1, 1]} : vector<8x128xf32> to vector<1x128xf32>
    %291 = arith.maximumf %287, %290 : vector<1x128xf32>
    %292 = vector.extract_strided_slice %274 {offsets = [4, 0], sizes = [1, 128], strides = [1, 1]} : vector<8x128xf32> to vector<1x128xf32>
    %293 = arith.minimumf %289, %292 : vector<1x128xf32>
    %294 = vector.extract_strided_slice %274 {offsets = [5, 0], sizes = [1, 128], strides = [1, 1]} : vector<8x128xf32> to vector<1x128xf32>
    %295 = arith.maximumf %291, %294 : vector<1x128xf32>
    %296 = vector.extract_strided_slice %274 {offsets = [5, 0], sizes = [1, 128], strides = [1, 1]} : vector<8x128xf32> to vector<1x128xf32>
    %297 = arith.minimumf %293, %296 : vector<1x128xf32>
    %298 = vector.extract_strided_slice %274 {offsets = [6, 0], sizes = [1, 128], strides = [1, 1]} : vector<8x128xf32> to vector<1x128xf32>
    %299 = arith.maximumf %295, %298 : vector<1x128xf32>
    %300 = vector.extract_strided_slice %274 {offsets = [6, 0], sizes = [1, 128], strides = [1, 1]} : vector<8x128xf32> to vector<1x128xf32>
    %301 = arith.minimumf %297, %300 : vector<1x128xf32>
    %302 = vector.extract_strided_slice %274 {offsets = [7, 0], sizes = [1, 128], strides = [1, 1]} : vector<8x128xf32> to vector<1x128xf32>
    %303 = arith.maximumf %299, %302 : vector<1x128xf32>
    %304 = vector.extract_strided_slice %274 {offsets = [7, 0], sizes = [1, 128], strides = [1, 1]} : vector<8x128xf32> to vector<1x128xf32>
    %305 = arith.minimumf %301, %304 : vector<1x128xf32>
    %cst_43 = arith.constant 0.000000e+00 : f32
    %306 = vector.broadcast %cst_43 : f32 to vector<8x128xf32>
    %307 = arith.cmpf oge, %273, %306 : vector<8x128xf32>
    %308 = vector.shape_cast %303 : vector<1x128xf32> to vector<1x128xf32>
    %309 = vector.broadcast %308 : vector<1x128xf32> to vector<8x128xf32>
    %310 = vector.shape_cast %305 : vector<1x128xf32> to vector<1x128xf32>
    %311 = vector.broadcast %310 : vector<1x128xf32> to vector<8x128xf32>
    %312 = arith.select %307, %309, %311 : vector<8x128xi1>, vector<8x128xf32>
    %313 = arith.mulf %273, %312 : vector<8x128xf32>
    %314 = vector.extract_strided_slice %274 {offsets = [0, 0], sizes = [1, 128], strides = [1, 1]} : vector<8x128xf32> to vector<1x128xf32>
    %315 = vector.broadcast %314 : vector<1x128xf32> to vector<8x128xf32>
    %316 = arith.mulf %273, %315 : vector<8x128xf32>
    %317 = arith.subf %316, %313 : vector<8x128xf32>
    %318 = math.exp %317 : vector<8x128xf32>
    %319 = vector.extract_strided_slice %275 {offsets = [0, 0], sizes = [1, 128], strides = [1, 1]} : vector<8x128xf32> to vector<1x128xf32>
    %320 = vector.broadcast %319 : vector<1x128xf32> to vector<8x128xf32>
    %321 = arith.mulf %318, %320 : vector<8x128xf32>
    %322 = vector.extract_strided_slice %274 {offsets = [1, 0], sizes = [1, 128], strides = [1, 1]} : vector<8x128xf32> to vector<1x128xf32>
    %323 = vector.broadcast %322 : vector<1x128xf32> to vector<8x128xf32>
    %324 = arith.mulf %273, %323 : vector<8x128xf32>
    %325 = arith.subf %324, %313 : vector<8x128xf32>
    %326 = math.exp %325 : vector<8x128xf32>
    %327 = arith.addf %318, %326 : vector<8x128xf32>
    %328 = vector.extract_strided_slice %275 {offsets = [1, 0], sizes = [1, 128], strides = [1, 1]} : vector<8x128xf32> to vector<1x128xf32>
    %329 = vector.broadcast %328 : vector<1x128xf32> to vector<8x128xf32>
    %330 = arith.mulf %326, %329 : vector<8x128xf32>
    %331 = arith.addf %321, %330 : vector<8x128xf32>
    %332 = vector.extract_strided_slice %274 {offsets = [2, 0], sizes = [1, 128], strides = [1, 1]} : vector<8x128xf32> to vector<1x128xf32>
    %333 = vector.broadcast %332 : vector<1x128xf32> to vector<8x128xf32>
    %334 = arith.mulf %273, %333 : vector<8x128xf32>
    %335 = arith.subf %334, %313 : vector<8x128xf32>
    %336 = math.exp %335 : vector<8x128xf32>
    %337 = arith.addf %327, %336 : vector<8x128xf32>
    %338 = vector.extract_strided_slice %275 {offsets = [2, 0], sizes = [1, 128], strides = [1, 1]} : vector<8x128xf32> to vector<1x128xf32>
    %339 = vector.broadcast %338 : vector<1x128xf32> to vector<8x128xf32>
    %340 = arith.mulf %336, %339 : vector<8x128xf32>
    %341 = arith.addf %331, %340 : vector<8x128xf32>
    %342 = vector.extract_strided_slice %274 {offsets = [3, 0], sizes = [1, 128], strides = [1, 1]} : vector<8x128xf32> to vector<1x128xf32>
    %343 = vector.broadcast %342 : vector<1x128xf32> to vector<8x128xf32>
    %344 = arith.mulf %273, %343 : vector<8x128xf32>
    %345 = arith.subf %344, %313 : vector<8x128xf32>
    %346 = math.exp %345 : vector<8x128xf32>
    %347 = arith.addf %337, %346 : vector<8x128xf32>
    %348 = vector.extract_strided_slice %275 {offsets = [3, 0], sizes = [1, 128], strides = [1, 1]} : vector<8x128xf32> to vector<1x128xf32>
    %349 = vector.broadcast %348 : vector<1x128xf32> to vector<8x128xf32>
    %350 = arith.mulf %346, %349 : vector<8x128xf32>
    %351 = arith.addf %341, %350 : vector<8x128xf32>
    %352 = vector.extract_strided_slice %274 {offsets = [4, 0], sizes = [1, 128], strides = [1, 1]} : vector<8x128xf32> to vector<1x128xf32>
    %353 = vector.broadcast %352 : vector<1x128xf32> to vector<8x128xf32>
    %354 = arith.mulf %273, %353 : vector<8x128xf32>
    %355 = arith.subf %354, %313 : vector<8x128xf32>
    %356 = math.exp %355 : vector<8x128xf32>
    %357 = arith.addf %347, %356 : vector<8x128xf32>
    %358 = vector.extract_strided_slice %275 {offsets = [4, 0], sizes = [1, 128], strides = [1, 1]} : vector<8x128xf32> to vector<1x128xf32>
    %359 = vector.broadcast %358 : vector<1x128xf32> to vector<8x128xf32>
    %360 = arith.mulf %356, %359 : vector<8x128xf32>
    %361 = arith.addf %351, %360 : vector<8x128xf32>
    %362 = vector.extract_strided_slice %274 {offsets = [5, 0], sizes = [1, 128], strides = [1, 1]} : vector<8x128xf32> to vector<1x128xf32>
    %363 = vector.broadcast %362 : vector<1x128xf32> to vector<8x128xf32>
    %364 = arith.mulf %273, %363 : vector<8x128xf32>
    %365 = arith.subf %364, %313 : vector<8x128xf32>
    %366 = math.exp %365 : vector<8x128xf32>
    %367 = arith.addf %357, %366 : vector<8x128xf32>
    %368 = vector.extract_strided_slice %275 {offsets = [5, 0], sizes = [1, 128], strides = [1, 1]} : vector<8x128xf32> to vector<1x128xf32>
    %369 = vector.broadcast %368 : vector<1x128xf32> to vector<8x128xf32>
    %370 = arith.mulf %366, %369 : vector<8x128xf32>
    %371 = arith.addf %361, %370 : vector<8x128xf32>
    %372 = vector.extract_strided_slice %274 {offsets = [6, 0], sizes = [1, 128], strides = [1, 1]} : vector<8x128xf32> to vector<1x128xf32>
    %373 = vector.broadcast %372 : vector<1x128xf32> to vector<8x128xf32>
    %374 = arith.mulf %273, %373 : vector<8x128xf32>
    %375 = arith.subf %374, %313 : vector<8x128xf32>
    %376 = math.exp %375 : vector<8x128xf32>
    %377 = arith.addf %367, %376 : vector<8x128xf32>
    %378 = vector.extract_strided_slice %275 {offsets = [6, 0], sizes = [1, 128], strides = [1, 1]} : vector<8x128xf32> to vector<1x128xf32>
    %379 = vector.broadcast %378 : vector<1x128xf32> to vector<8x128xf32>
    %380 = arith.mulf %376, %379 : vector<8x128xf32>
    %381 = arith.addf %371, %380 : vector<8x128xf32>
    %382 = vector.extract_strided_slice %274 {offsets = [7, 0], sizes = [1, 128], strides = [1, 1]} : vector<8x128xf32> to vector<1x128xf32>
    %383 = vector.broadcast %382 : vector<1x128xf32> to vector<8x128xf32>
    %384 = arith.mulf %273, %383 : vector<8x128xf32>
    %385 = arith.subf %384, %313 : vector<8x128xf32>
    %386 = math.exp %385 : vector<8x128xf32>
    %387 = arith.addf %377, %386 : vector<8x128xf32>
    %388 = vector.extract_strided_slice %275 {offsets = [7, 0], sizes = [1, 128], strides = [1, 1]} : vector<8x128xf32> to vector<1x128xf32>
    %389 = vector.broadcast %388 : vector<1x128xf32> to vector<8x128xf32>
    %390 = arith.mulf %386, %389 : vector<8x128xf32>
    %391 = arith.addf %381, %390 : vector<8x128xf32>
    %392 = tpu.reciprocal %387 {approx = true} : vector<8x128xf32> -> vector<8x128xf32>
    %393 = arith.mulf %387, %392 : vector<8x128xf32>
    %cst_44 = arith.constant 2.000000e+00 : f32
    %394 = vector.broadcast %cst_44 : f32 to vector<8x128xf32>
    %395 = arith.subf %394, %393 : vector<8x128xf32>
    %396 = arith.mulf %392, %395 : vector<8x128xf32>
    %397 = arith.mulf %391, %396 : vector<8x128xf32>
    %c16_45 = arith.constant 16 : index
    %c0_46 = arith.constant 0 : index
    %398 = vector.load %arg14[%c16_45, %c0_46] : memref<64x128xf32, #tpu.memory_space<vmem>>, vector<8x128xf32>
    tpu.vector_store %arg14[%c16_45, %c0_46], %397 {strides = array<i32>} : memref<64x128xf32, #tpu.memory_space<vmem>>, vector<8x128xf32>,
    %c24 = arith.constant 24 : index
    %c0_47 = arith.constant 0 : index
    %399 = vector.load %arg13[%c24, %c0_47] : memref<192x128xf32, #tpu.memory_space<vmem>>, vector<8x128xf32>
    %c88 = arith.constant 88 : index
    %c0_48 = arith.constant 0 : index
    %400 = vector.load %arg13[%c88, %c0_48] : memref<192x128xf32, #tpu.memory_space<vmem>>, vector<8x128xf32>
    %c152 = arith.constant 152 : index
    %c0_49 = arith.constant 0 : index
    %401 = vector.load %arg13[%c152, %c0_49] : memref<192x128xf32, #tpu.memory_space<vmem>>, vector<8x128xf32>
    %402 = vector.extract_strided_slice %400 {offsets = [0, 0], sizes = [1, 128], strides = [1, 1]} : vector<8x128xf32> to vector<1x128xf32>
    %403 = vector.extract_strided_slice %400 {offsets = [0, 0], sizes = [1, 128], strides = [1, 1]} : vector<8x128xf32> to vector<1x128xf32>
    %404 = vector.extract_strided_slice %400 {offsets = [1, 0], sizes = [1, 128], strides = [1, 1]} : vector<8x128xf32> to vector<1x128xf32>
    %405 = arith.maximumf %402, %404 : vector<1x128xf32>
    %406 = vector.extract_strided_slice %400 {offsets = [1, 0], sizes = [1, 128], strides = [1, 1]} : vector<8x128xf32> to vector<1x128xf32>
    %407 = arith.minimumf %403, %406 : vector<1x128xf32>
    %408 = vector.extract_strided_slice %400 {offsets = [2, 0], sizes = [1, 128], strides = [1, 1]} : vector<8x128xf32> to vector<1x128xf32>
    %409 = arith.maximumf %405, %408 : vector<1x128xf32>
    %410 = vector.extract_strided_slice %400 {offsets = [2, 0], sizes = [1, 128], strides = [1, 1]} : vector<8x128xf32> to vector<1x128xf32>
    %411 = arith.minimumf %407, %410 : vector<1x128xf32>
    %412 = vector.extract_strided_slice %400 {offsets = [3, 0], sizes = [1, 128], strides = [1, 1]} : vector<8x128xf32> to vector<1x128xf32>
    %413 = arith.maximumf %409, %412 : vector<1x128xf32>
    %414 = vector.extract_strided_slice %400 {offsets = [3, 0], sizes = [1, 128], strides = [1, 1]} : vector<8x128xf32> to vector<1x128xf32>
    %415 = arith.minimumf %411, %414 : vector<1x128xf32>
    %416 = vector.extract_strided_slice %400 {offsets = [4, 0], sizes = [1, 128], strides = [1, 1]} : vector<8x128xf32> to vector<1x128xf32>
    %417 = arith.maximumf %413, %416 : vector<1x128xf32>
    %418 = vector.extract_strided_slice %400 {offsets = [4, 0], sizes = [1, 128], strides = [1, 1]} : vector<8x128xf32> to vector<1x128xf32>
    %419 = arith.minimumf %415, %418 : vector<1x128xf32>
    %420 = vector.extract_strided_slice %400 {offsets = [5, 0], sizes = [1, 128], strides = [1, 1]} : vector<8x128xf32> to vector<1x128xf32>
    %421 = arith.maximumf %417, %420 : vector<1x128xf32>
    %422 = vector.extract_strided_slice %400 {offsets = [5, 0], sizes = [1, 128], strides = [1, 1]} : vector<8x128xf32> to vector<1x128xf32>
    %423 = arith.minimumf %419, %422 : vector<1x128xf32>
    %424 = vector.extract_strided_slice %400 {offsets = [6, 0], sizes = [1, 128], strides = [1, 1]} : vector<8x128xf32> to vector<1x128xf32>
    %425 = arith.maximumf %421, %424 : vector<1x128xf32>
    %426 = vector.extract_strided_slice %400 {offsets = [6, 0], sizes = [1, 128], strides = [1, 1]} : vector<8x128xf32> to vector<1x128xf32>
    %427 = arith.minimumf %423, %426 : vector<1x128xf32>
    %428 = vector.extract_strided_slice %400 {offsets = [7, 0], sizes = [1, 128], strides = [1, 1]} : vector<8x128xf32> to vector<1x128xf32>
    %429 = arith.maximumf %425, %428 : vector<1x128xf32>
    %430 = vector.extract_strided_slice %400 {offsets = [7, 0], sizes = [1, 128], strides = [1, 1]} : vector<8x128xf32> to vector<1x128xf32>
    %431 = arith.minimumf %427, %430 : vector<1x128xf32>
    %cst_50 = arith.constant 0.000000e+00 : f32
    %432 = vector.broadcast %cst_50 : f32 to vector<8x128xf32>
    %433 = arith.cmpf oge, %399, %432 : vector<8x128xf32>
    %434 = vector.shape_cast %429 : vector<1x128xf32> to vector<1x128xf32>
    %435 = vector.broadcast %434 : vector<1x128xf32> to vector<8x128xf32>
    %436 = vector.shape_cast %431 : vector<1x128xf32> to vector<1x128xf32>
    %437 = vector.broadcast %436 : vector<1x128xf32> to vector<8x128xf32>
    %438 = arith.select %433, %435, %437 : vector<8x128xi1>, vector<8x128xf32>
    %439 = arith.mulf %399, %438 : vector<8x128xf32>
    %440 = vector.extract_strided_slice %400 {offsets = [0, 0], sizes = [1, 128], strides = [1, 1]} : vector<8x128xf32> to vector<1x128xf32>
    %441 = vector.broadcast %440 : vector<1x128xf32> to vector<8x128xf32>
    %442 = arith.mulf %399, %441 : vector<8x128xf32>
    %443 = arith.subf %442, %439 : vector<8x128xf32>
    %444 = math.exp %443 : vector<8x128xf32>
    %445 = vector.extract_strided_slice %401 {offsets = [0, 0], sizes = [1, 128], strides = [1, 1]} : vector<8x128xf32> to vector<1x128xf32>
    %446 = vector.broadcast %445 : vector<1x128xf32> to vector<8x128xf32>
    %447 = arith.mulf %444, %446 : vector<8x128xf32>
    %448 = vector.extract_strided_slice %400 {offsets = [1, 0], sizes = [1, 128], strides = [1, 1]} : vector<8x128xf32> to vector<1x128xf32>
    %449 = vector.broadcast %448 : vector<1x128xf32> to vector<8x128xf32>
    %450 = arith.mulf %399, %449 : vector<8x128xf32>
    %451 = arith.subf %450, %439 : vector<8x128xf32>
    %452 = math.exp %451 : vector<8x128xf32>
    %453 = arith.addf %444, %452 : vector<8x128xf32>
    %454 = vector.extract_strided_slice %401 {offsets = [1, 0], sizes = [1, 128], strides = [1, 1]} : vector<8x128xf32> to vector<1x128xf32>
    %455 = vector.broadcast %454 : vector<1x128xf32> to vector<8x128xf32>
    %456 = arith.mulf %452, %455 : vector<8x128xf32>
    %457 = arith.addf %447, %456 : vector<8x128xf32>
    %458 = vector.extract_strided_slice %400 {offsets = [2, 0], sizes = [1, 128], strides = [1, 1]} : vector<8x128xf32> to vector<1x128xf32>
    %459 = vector.broadcast %458 : vector<1x128xf32> to vector<8x128xf32>
    %460 = arith.mulf %399, %459 : vector<8x128xf32>
    %461 = arith.subf %460, %439 : vector<8x128xf32>
    %462 = math.exp %461 : vector<8x128xf32>
    %463 = arith.addf %453, %462 : vector<8x128xf32>
    %464 = vector.extract_strided_slice %401 {offsets = [2, 0], sizes = [1, 128], strides = [1, 1]} : vector<8x128xf32> to vector<1x128xf32>
    %465 = vector.broadcast %464 : vector<1x128xf32> to vector<8x128xf32>
    %466 = arith.mulf %462, %465 : vector<8x128xf32>
    %467 = arith.addf %457, %466 : vector<8x128xf32>
    %468 = vector.extract_strided_slice %400 {offsets = [3, 0], sizes = [1, 128], strides = [1, 1]} : vector<8x128xf32> to vector<1x128xf32>
    %469 = vector.broadcast %468 : vector<1x128xf32> to vector<8x128xf32>
    %470 = arith.mulf %399, %469 : vector<8x128xf32>
    %471 = arith.subf %470, %439 : vector<8x128xf32>
    %472 = math.exp %471 : vector<8x128xf32>
    %473 = arith.addf %463, %472 : vector<8x128xf32>
    %474 = vector.extract_strided_slice %401 {offsets = [3, 0], sizes = [1, 128], strides = [1, 1]} : vector<8x128xf32> to vector<1x128xf32>
    %475 = vector.broadcast %474 : vector<1x128xf32> to vector<8x128xf32>
    %476 = arith.mulf %472, %475 : vector<8x128xf32>
    %477 = arith.addf %467, %476 : vector<8x128xf32>
    %478 = vector.extract_strided_slice %400 {offsets = [4, 0], sizes = [1, 128], strides = [1, 1]} : vector<8x128xf32> to vector<1x128xf32>
    %479 = vector.broadcast %478 : vector<1x128xf32> to vector<8x128xf32>
    %480 = arith.mulf %399, %479 : vector<8x128xf32>
    %481 = arith.subf %480, %439 : vector<8x128xf32>
    %482 = math.exp %481 : vector<8x128xf32>
    %483 = arith.addf %473, %482 : vector<8x128xf32>
    %484 = vector.extract_strided_slice %401 {offsets = [4, 0], sizes = [1, 128], strides = [1, 1]} : vector<8x128xf32> to vector<1x128xf32>
    %485 = vector.broadcast %484 : vector<1x128xf32> to vector<8x128xf32>
    %486 = arith.mulf %482, %485 : vector<8x128xf32>
    %487 = arith.addf %477, %486 : vector<8x128xf32>
    %488 = vector.extract_strided_slice %400 {offsets = [5, 0], sizes = [1, 128], strides = [1, 1]} : vector<8x128xf32> to vector<1x128xf32>
    %489 = vector.broadcast %488 : vector<1x128xf32> to vector<8x128xf32>
    %490 = arith.mulf %399, %489 : vector<8x128xf32>
    %491 = arith.subf %490, %439 : vector<8x128xf32>
    %492 = math.exp %491 : vector<8x128xf32>
    %493 = arith.addf %483, %492 : vector<8x128xf32>
    %494 = vector.extract_strided_slice %401 {offsets = [5, 0], sizes = [1, 128], strides = [1, 1]} : vector<8x128xf32> to vector<1x128xf32>
    %495 = vector.broadcast %494 : vector<1x128xf32> to vector<8x128xf32>
    %496 = arith.mulf %492, %495 : vector<8x128xf32>
    %497 = arith.addf %487, %496 : vector<8x128xf32>
    %498 = vector.extract_strided_slice %400 {offsets = [6, 0], sizes = [1, 128], strides = [1, 1]} : vector<8x128xf32> to vector<1x128xf32>
    %499 = vector.broadcast %498 : vector<1x128xf32> to vector<8x128xf32>
    %500 = arith.mulf %399, %499 : vector<8x128xf32>
    %501 = arith.subf %500, %439 : vector<8x128xf32>
    %502 = math.exp %501 : vector<8x128xf32>
    %503 = arith.addf %493, %502 : vector<8x128xf32>
    %504 = vector.extract_strided_slice %401 {offsets = [6, 0], sizes = [1, 128], strides = [1, 1]} : vector<8x128xf32> to vector<1x128xf32>
    %505 = vector.broadcast %504 : vector<1x128xf32> to vector<8x128xf32>
    %506 = arith.mulf %502, %505 : vector<8x128xf32>
    %507 = arith.addf %497, %506 : vector<8x128xf32>
    %508 = vector.extract_strided_slice %400 {offsets = [7, 0], sizes = [1, 128], strides = [1, 1]} : vector<8x128xf32> to vector<1x128xf32>
    %509 = vector.broadcast %508 : vector<1x128xf32> to vector<8x128xf32>
    %510 = arith.mulf %399, %509 : vector<8x128xf32>
    %511 = arith.subf %510, %439 : vector<8x128xf32>
    %512 = math.exp %511 : vector<8x128xf32>
    %513 = arith.addf %503, %512 : vector<8x128xf32>
    %514 = vector.extract_strided_slice %401 {offsets = [7, 0], sizes = [1, 128], strides = [1, 1]} : vector<8x128xf32> to vector<1x128xf32>
    %515 = vector.broadcast %514 : vector<1x128xf32> to vector<8x128xf32>
    %516 = arith.mulf %512, %515 : vector<8x128xf32>
    %517 = arith.addf %507, %516 : vector<8x128xf32>
    %518 = tpu.reciprocal %513 {approx = true} : vector<8x128xf32> -> vector<8x128xf32>
    %519 = arith.mulf %513, %518 : vector<8x128xf32>
    %cst_51 = arith.constant 2.000000e+00 : f32
    %520 = vector.broadcast %cst_51 : f32 to vector<8x128xf32>
    %521 = arith.subf %520, %519 : vector<8x128xf32>
    %522 = arith.mulf %518, %521 : vector<8x128xf32>
    %523 = arith.mulf %517, %522 : vector<8x128xf32>
    %c24_52 = arith.constant 24 : index
    %c0_53 = arith.constant 0 : index
    %524 = vector.load %arg14[%c24_52, %c0_53] : memref<64x128xf32, #tpu.memory_space<vmem>>, vector<8x128xf32>
    tpu.vector_store %arg14[%c24_52, %c0_53], %523 {strides = array<i32>} : memref<64x128xf32, #tpu.memory_space<vmem>>, vector<8x128xf32>,
    %c32 = arith.constant 32 : index
    %c0_54 = arith.constant 0 : index
    %525 = vector.load %arg13[%c32, %c0_54] : memref<192x128xf32, #tpu.memory_space<vmem>>, vector<8x128xf32>
    %c96 = arith.constant 96 : index
    %c0_55 = arith.constant 0 : index
    %526 = vector.load %arg13[%c96, %c0_55] : memref<192x128xf32, #tpu.memory_space<vmem>>, vector<8x128xf32>
    %c160 = arith.constant 160 : index
    %c0_56 = arith.constant 0 : index
    %527 = vector.load %arg13[%c160, %c0_56] : memref<192x128xf32, #tpu.memory_space<vmem>>, vector<8x128xf32>
    %528 = vector.extract_strided_slice %526 {offsets = [0, 0], sizes = [1, 128], strides = [1, 1]} : vector<8x128xf32> to vector<1x128xf32>
    %529 = vector.extract_strided_slice %526 {offsets = [0, 0], sizes = [1, 128], strides = [1, 1]} : vector<8x128xf32> to vector<1x128xf32>
    %530 = vector.extract_strided_slice %526 {offsets = [1, 0], sizes = [1, 128], strides = [1, 1]} : vector<8x128xf32> to vector<1x128xf32>
    %531 = arith.maximumf %528, %530 : vector<1x128xf32>
    %532 = vector.extract_strided_slice %526 {offsets = [1, 0], sizes = [1, 128], strides = [1, 1]} : vector<8x128xf32> to vector<1x128xf32>
    %533 = arith.minimumf %529, %532 : vector<1x128xf32>
    %534 = vector.extract_strided_slice %526 {offsets = [2, 0], sizes = [1, 128], strides = [1, 1]} : vector<8x128xf32> to vector<1x128xf32>
    %535 = arith.maximumf %531, %534 : vector<1x128xf32>
    %536 = vector.extract_strided_slice %526 {offsets = [2, 0], sizes = [1, 128], strides = [1, 1]} : vector<8x128xf32> to vector<1x128xf32>
    %537 = arith.minimumf %533, %536 : vector<1x128xf32>
    %538 = vector.extract_strided_slice %526 {offsets = [3, 0], sizes = [1, 128], strides = [1, 1]} : vector<8x128xf32> to vector<1x128xf32>
    %539 = arith.maximumf %535, %538 : vector<1x128xf32>
    %540 = vector.extract_strided_slice %526 {offsets = [3, 0], sizes = [1, 128], strides = [1, 1]} : vector<8x128xf32> to vector<1x128xf32>
    %541 = arith.minimumf %537, %540 : vector<1x128xf32>
    %542 = vector.extract_strided_slice %526 {offsets = [4, 0], sizes = [1, 128], strides = [1, 1]} : vector<8x128xf32> to vector<1x128xf32>
    %543 = arith.maximumf %539, %542 : vector<1x128xf32>
    %544 = vector.extract_strided_slice %526 {offsets = [4, 0], sizes = [1, 128], strides = [1, 1]} : vector<8x128xf32> to vector<1x128xf32>
    %545 = arith.minimumf %541, %544 : vector<1x128xf32>
    %546 = vector.extract_strided_slice %526 {offsets = [5, 0], sizes = [1, 128], strides = [1, 1]} : vector<8x128xf32> to vector<1x128xf32>
    %547 = arith.maximumf %543, %546 : vector<1x128xf32>
    %548 = vector.extract_strided_slice %526 {offsets = [5, 0], sizes = [1, 128], strides = [1, 1]} : vector<8x128xf32> to vector<1x128xf32>
    %549 = arith.minimumf %545, %548 : vector<1x128xf32>
    %550 = vector.extract_strided_slice %526 {offsets = [6, 0], sizes = [1, 128], strides = [1, 1]} : vector<8x128xf32> to vector<1x128xf32>
    %551 = arith.maximumf %547, %550 : vector<1x128xf32>
    %552 = vector.extract_strided_slice %526 {offsets = [6, 0], sizes = [1, 128], strides = [1, 1]} : vector<8x128xf32> to vector<1x128xf32>
    %553 = arith.minimumf %549, %552 : vector<1x128xf32>
    %554 = vector.extract_strided_slice %526 {offsets = [7, 0], sizes = [1, 128], strides = [1, 1]} : vector<8x128xf32> to vector<1x128xf32>
    %555 = arith.maximumf %551, %554 : vector<1x128xf32>
    %556 = vector.extract_strided_slice %526 {offsets = [7, 0], sizes = [1, 128], strides = [1, 1]} : vector<8x128xf32> to vector<1x128xf32>
    %557 = arith.minimumf %553, %556 : vector<1x128xf32>
    %cst_57 = arith.constant 0.000000e+00 : f32
    %558 = vector.broadcast %cst_57 : f32 to vector<8x128xf32>
    %559 = arith.cmpf oge, %525, %558 : vector<8x128xf32>
    %560 = vector.shape_cast %555 : vector<1x128xf32> to vector<1x128xf32>
    %561 = vector.broadcast %560 : vector<1x128xf32> to vector<8x128xf32>
    %562 = vector.shape_cast %557 : vector<1x128xf32> to vector<1x128xf32>
    %563 = vector.broadcast %562 : vector<1x128xf32> to vector<8x128xf32>
    %564 = arith.select %559, %561, %563 : vector<8x128xi1>, vector<8x128xf32>
    %565 = arith.mulf %525, %564 : vector<8x128xf32>
    %566 = vector.extract_strided_slice %526 {offsets = [0, 0], sizes = [1, 128], strides = [1, 1]} : vector<8x128xf32> to vector<1x128xf32>
    %567 = vector.broadcast %566 : vector<1x128xf32> to vector<8x128xf32>
    %568 = arith.mulf %525, %567 : vector<8x128xf32>
    %569 = arith.subf %568, %565 : vector<8x128xf32>
    %570 = math.exp %569 : vector<8x128xf32>
    %571 = vector.extract_strided_slice %527 {offsets = [0, 0], sizes = [1, 128], strides = [1, 1]} : vector<8x128xf32> to vector<1x128xf32>
    %572 = vector.broadcast %571 : vector<1x128xf32> to vector<8x128xf32>
    %573 = arith.mulf %570, %572 : vector<8x128xf32>
    %574 = vector.extract_strided_slice %526 {offsets = [1, 0], sizes = [1, 128], strides = [1, 1]} : vector<8x128xf32> to vector<1x128xf32>
    %575 = vector.broadcast %574 : vector<1x128xf32> to vector<8x128xf32>
    %576 = arith.mulf %525, %575 : vector<8x128xf32>
    %577 = arith.subf %576, %565 : vector<8x128xf32>
    %578 = math.exp %577 : vector<8x128xf32>
    %579 = arith.addf %570, %578 : vector<8x128xf32>
    %580 = vector.extract_strided_slice %527 {offsets = [1, 0], sizes = [1, 128], strides = [1, 1]} : vector<8x128xf32> to vector<1x128xf32>
    %581 = vector.broadcast %580 : vector<1x128xf32> to vector<8x128xf32>
    %582 = arith.mulf %578, %581 : vector<8x128xf32>
    %583 = arith.addf %573, %582 : vector<8x128xf32>
    %584 = vector.extract_strided_slice %526 {offsets = [2, 0], sizes = [1, 128], strides = [1, 1]} : vector<8x128xf32> to vector<1x128xf32>
    %585 = vector.broadcast %584 : vector<1x128xf32> to vector<8x128xf32>
    %586 = arith.mulf %525, %585 : vector<8x128xf32>
    %587 = arith.subf %586, %565 : vector<8x128xf32>
    %588 = math.exp %587 : vector<8x128xf32>
    %589 = arith.addf %579, %588 : vector<8x128xf32>
    %590 = vector.extract_strided_slice %527 {offsets = [2, 0], sizes = [1, 128], strides = [1, 1]} : vector<8x128xf32> to vector<1x128xf32>
    %591 = vector.broadcast %590 : vector<1x128xf32> to vector<8x128xf32>
    %592 = arith.mulf %588, %591 : vector<8x128xf32>
    %593 = arith.addf %583, %592 : vector<8x128xf32>
    %594 = vector.extract_strided_slice %526 {offsets = [3, 0], sizes = [1, 128], strides = [1, 1]} : vector<8x128xf32> to vector<1x128xf32>
    %595 = vector.broadcast %594 : vector<1x128xf32> to vector<8x128xf32>
    %596 = arith.mulf %525, %595 : vector<8x128xf32>
    %597 = arith.subf %596, %565 : vector<8x128xf32>
    %598 = math.exp %597 : vector<8x128xf32>
    %599 = arith.addf %589, %598 : vector<8x128xf32>
    %600 = vector.extract_strided_slice %527 {offsets = [3, 0], sizes = [1, 128], strides = [1, 1]} : vector<8x128xf32> to vector<1x128xf32>
    %601 = vector.broadcast %600 : vector<1x128xf32> to vector<8x128xf32>
    %602 = arith.mulf %598, %601 : vector<8x128xf32>
    %603 = arith.addf %593, %602 : vector<8x128xf32>
    %604 = vector.extract_strided_slice %526 {offsets = [4, 0], sizes = [1, 128], strides = [1, 1]} : vector<8x128xf32> to vector<1x128xf32>
    %605 = vector.broadcast %604 : vector<1x128xf32> to vector<8x128xf32>
    %606 = arith.mulf %525, %605 : vector<8x128xf32>
    %607 = arith.subf %606, %565 : vector<8x128xf32>
    %608 = math.exp %607 : vector<8x128xf32>
    %609 = arith.addf %599, %608 : vector<8x128xf32>
    %610 = vector.extract_strided_slice %527 {offsets = [4, 0], sizes = [1, 128], strides = [1, 1]} : vector<8x128xf32> to vector<1x128xf32>
    %611 = vector.broadcast %610 : vector<1x128xf32> to vector<8x128xf32>
    %612 = arith.mulf %608, %611 : vector<8x128xf32>
    %613 = arith.addf %603, %612 : vector<8x128xf32>
    %614 = vector.extract_strided_slice %526 {offsets = [5, 0], sizes = [1, 128], strides = [1, 1]} : vector<8x128xf32> to vector<1x128xf32>
    %615 = vector.broadcast %614 : vector<1x128xf32> to vector<8x128xf32>
    %616 = arith.mulf %525, %615 : vector<8x128xf32>
    %617 = arith.subf %616, %565 : vector<8x128xf32>
    %618 = math.exp %617 : vector<8x128xf32>
    %619 = arith.addf %609, %618 : vector<8x128xf32>
    %620 = vector.extract_strided_slice %527 {offsets = [5, 0], sizes = [1, 128], strides = [1, 1]} : vector<8x128xf32> to vector<1x128xf32>
    %621 = vector.broadcast %620 : vector<1x128xf32> to vector<8x128xf32>
    %622 = arith.mulf %618, %621 : vector<8x128xf32>
    %623 = arith.addf %613, %622 : vector<8x128xf32>
    %624 = vector.extract_strided_slice %526 {offsets = [6, 0], sizes = [1, 128], strides = [1, 1]} : vector<8x128xf32> to vector<1x128xf32>
    %625 = vector.broadcast %624 : vector<1x128xf32> to vector<8x128xf32>
    %626 = arith.mulf %525, %625 : vector<8x128xf32>
    %627 = arith.subf %626, %565 : vector<8x128xf32>
    %628 = math.exp %627 : vector<8x128xf32>
    %629 = arith.addf %619, %628 : vector<8x128xf32>
    %630 = vector.extract_strided_slice %527 {offsets = [6, 0], sizes = [1, 128], strides = [1, 1]} : vector<8x128xf32> to vector<1x128xf32>
    %631 = vector.broadcast %630 : vector<1x128xf32> to vector<8x128xf32>
    %632 = arith.mulf %628, %631 : vector<8x128xf32>
    %633 = arith.addf %623, %632 : vector<8x128xf32>
    %634 = vector.extract_strided_slice %526 {offsets = [7, 0], sizes = [1, 128], strides = [1, 1]} : vector<8x128xf32> to vector<1x128xf32>
    %635 = vector.broadcast %634 : vector<1x128xf32> to vector<8x128xf32>
    %636 = arith.mulf %525, %635 : vector<8x128xf32>
    %637 = arith.subf %636, %565 : vector<8x128xf32>
    %638 = math.exp %637 : vector<8x128xf32>
    %639 = arith.addf %629, %638 : vector<8x128xf32>
    %640 = vector.extract_strided_slice %527 {offsets = [7, 0], sizes = [1, 128], strides = [1, 1]} : vector<8x128xf32> to vector<1x128xf32>
    %641 = vector.broadcast %640 : vector<1x128xf32> to vector<8x128xf32>
    %642 = arith.mulf %638, %641 : vector<8x128xf32>
    %643 = arith.addf %633, %642 : vector<8x128xf32>
    %644 = tpu.reciprocal %639 {approx = true} : vector<8x128xf32> -> vector<8x128xf32>
    %645 = arith.mulf %639, %644 : vector<8x128xf32>
    %cst_58 = arith.constant 2.000000e+00 : f32
    %646 = vector.broadcast %cst_58 : f32 to vector<8x128xf32>
    %647 = arith.subf %646, %645 : vector<8x128xf32>
    %648 = arith.mulf %644, %647 : vector<8x128xf32>
    %649 = arith.mulf %643, %648 : vector<8x128xf32>
    %c32_59 = arith.constant 32 : index
    %c0_60 = arith.constant 0 : index
    %650 = vector.load %arg14[%c32_59, %c0_60] : memref<64x128xf32, #tpu.memory_space<vmem>>, vector<8x128xf32>
    tpu.vector_store %arg14[%c32_59, %c0_60], %649 {strides = array<i32>} : memref<64x128xf32, #tpu.memory_space<vmem>>, vector<8x128xf32>,
    %c40 = arith.constant 40 : index
    %c0_61 = arith.constant 0 : index
    %651 = vector.load %arg13[%c40, %c0_61] : memref<192x128xf32, #tpu.memory_space<vmem>>, vector<8x128xf32>
    %c104 = arith.constant 104 : index
    %c0_62 = arith.constant 0 : index
    %652 = vector.load %arg13[%c104, %c0_62] : memref<192x128xf32, #tpu.memory_space<vmem>>, vector<8x128xf32>
    %c168 = arith.constant 168 : index
    %c0_63 = arith.constant 0 : index
    %653 = vector.load %arg13[%c168, %c0_63] : memref<192x128xf32, #tpu.memory_space<vmem>>, vector<8x128xf32>
    %654 = vector.extract_strided_slice %652 {offsets = [0, 0], sizes = [1, 128], strides = [1, 1]} : vector<8x128xf32> to vector<1x128xf32>
    %655 = vector.extract_strided_slice %652 {offsets = [0, 0], sizes = [1, 128], strides = [1, 1]} : vector<8x128xf32> to vector<1x128xf32>
    %656 = vector.extract_strided_slice %652 {offsets = [1, 0], sizes = [1, 128], strides = [1, 1]} : vector<8x128xf32> to vector<1x128xf32>
    %657 = arith.maximumf %654, %656 : vector<1x128xf32>
    %658 = vector.extract_strided_slice %652 {offsets = [1, 0], sizes = [1, 128], strides = [1, 1]} : vector<8x128xf32> to vector<1x128xf32>
    %659 = arith.minimumf %655, %658 : vector<1x128xf32>
    %660 = vector.extract_strided_slice %652 {offsets = [2, 0], sizes = [1, 128], strides = [1, 1]} : vector<8x128xf32> to vector<1x128xf32>
    %661 = arith.maximumf %657, %660 : vector<1x128xf32>
    %662 = vector.extract_strided_slice %652 {offsets = [2, 0], sizes = [1, 128], strides = [1, 1]} : vector<8x128xf32> to vector<1x128xf32>
    %663 = arith.minimumf %659, %662 : vector<1x128xf32>
    %664 = vector.extract_strided_slice %652 {offsets = [3, 0], sizes = [1, 128], strides = [1, 1]} : vector<8x128xf32> to vector<1x128xf32>
    %665 = arith.maximumf %661, %664 : vector<1x128xf32>
    %666 = vector.extract_strided_slice %652 {offsets = [3, 0], sizes = [1, 128], strides = [1, 1]} : vector<8x128xf32> to vector<1x128xf32>
    %667 = arith.minimumf %663, %666 : vector<1x128xf32>
    %668 = vector.extract_strided_slice %652 {offsets = [4, 0], sizes = [1, 128], strides = [1, 1]} : vector<8x128xf32> to vector<1x128xf32>
    %669 = arith.maximumf %665, %668 : vector<1x128xf32>
    %670 = vector.extract_strided_slice %652 {offsets = [4, 0], sizes = [1, 128], strides = [1, 1]} : vector<8x128xf32> to vector<1x128xf32>
    %671 = arith.minimumf %667, %670 : vector<1x128xf32>
    %672 = vector.extract_strided_slice %652 {offsets = [5, 0], sizes = [1, 128], strides = [1, 1]} : vector<8x128xf32> to vector<1x128xf32>
    %673 = arith.maximumf %669, %672 : vector<1x128xf32>
    %674 = vector.extract_strided_slice %652 {offsets = [5, 0], sizes = [1, 128], strides = [1, 1]} : vector<8x128xf32> to vector<1x128xf32>
    %675 = arith.minimumf %671, %674 : vector<1x128xf32>
    %676 = vector.extract_strided_slice %652 {offsets = [6, 0], sizes = [1, 128], strides = [1, 1]} : vector<8x128xf32> to vector<1x128xf32>
    %677 = arith.maximumf %673, %676 : vector<1x128xf32>
    %678 = vector.extract_strided_slice %652 {offsets = [6, 0], sizes = [1, 128], strides = [1, 1]} : vector<8x128xf32> to vector<1x128xf32>
    %679 = arith.minimumf %675, %678 : vector<1x128xf32>
    %680 = vector.extract_strided_slice %652 {offsets = [7, 0], sizes = [1, 128], strides = [1, 1]} : vector<8x128xf32> to vector<1x128xf32>
    %681 = arith.maximumf %677, %680 : vector<1x128xf32>
    %682 = vector.extract_strided_slice %652 {offsets = [7, 0], sizes = [1, 128], strides = [1, 1]} : vector<8x128xf32> to vector<1x128xf32>
    %683 = arith.minimumf %679, %682 : vector<1x128xf32>
    %cst_64 = arith.constant 0.000000e+00 : f32
    %684 = vector.broadcast %cst_64 : f32 to vector<8x128xf32>
    %685 = arith.cmpf oge, %651, %684 : vector<8x128xf32>
    %686 = vector.shape_cast %681 : vector<1x128xf32> to vector<1x128xf32>
    %687 = vector.broadcast %686 : vector<1x128xf32> to vector<8x128xf32>
    %688 = vector.shape_cast %683 : vector<1x128xf32> to vector<1x128xf32>
    %689 = vector.broadcast %688 : vector<1x128xf32> to vector<8x128xf32>
    %690 = arith.select %685, %687, %689 : vector<8x128xi1>, vector<8x128xf32>
    %691 = arith.mulf %651, %690 : vector<8x128xf32>
    %692 = vector.extract_strided_slice %652 {offsets = [0, 0], sizes = [1, 128], strides = [1, 1]} : vector<8x128xf32> to vector<1x128xf32>
    %693 = vector.broadcast %692 : vector<1x128xf32> to vector<8x128xf32>
    %694 = arith.mulf %651, %693 : vector<8x128xf32>
    %695 = arith.subf %694, %691 : vector<8x128xf32>
    %696 = math.exp %695 : vector<8x128xf32>
    %697 = vector.extract_strided_slice %653 {offsets = [0, 0], sizes = [1, 128], strides = [1, 1]} : vector<8x128xf32> to vector<1x128xf32>
    %698 = vector.broadcast %697 : vector<1x128xf32> to vector<8x128xf32>
    %699 = arith.mulf %696, %698 : vector<8x128xf32>
    %700 = vector.extract_strided_slice %652 {offsets = [1, 0], sizes = [1, 128], strides = [1, 1]} : vector<8x128xf32> to vector<1x128xf32>
    %701 = vector.broadcast %700 : vector<1x128xf32> to vector<8x128xf32>
    %702 = arith.mulf %651, %701 : vector<8x128xf32>
    %703 = arith.subf %702, %691 : vector<8x128xf32>
    %704 = math.exp %703 : vector<8x128xf32>
    %705 = arith.addf %696, %704 : vector<8x128xf32>
    %706 = vector.extract_strided_slice %653 {offsets = [1, 0], sizes = [1, 128], strides = [1, 1]} : vector<8x128xf32> to vector<1x128xf32>
    %707 = vector.broadcast %706 : vector<1x128xf32> to vector<8x128xf32>
    %708 = arith.mulf %704, %707 : vector<8x128xf32>
    %709 = arith.addf %699, %708 : vector<8x128xf32>
    %710 = vector.extract_strided_slice %652 {offsets = [2, 0], sizes = [1, 128], strides = [1, 1]} : vector<8x128xf32> to vector<1x128xf32>
    %711 = vector.broadcast %710 : vector<1x128xf32> to vector<8x128xf32>
    %712 = arith.mulf %651, %711 : vector<8x128xf32>
    %713 = arith.subf %712, %691 : vector<8x128xf32>
    %714 = math.exp %713 : vector<8x128xf32>
    %715 = arith.addf %705, %714 : vector<8x128xf32>
    %716 = vector.extract_strided_slice %653 {offsets = [2, 0], sizes = [1, 128], strides = [1, 1]} : vector<8x128xf32> to vector<1x128xf32>
    %717 = vector.broadcast %716 : vector<1x128xf32> to vector<8x128xf32>
    %718 = arith.mulf %714, %717 : vector<8x128xf32>
    %719 = arith.addf %709, %718 : vector<8x128xf32>
    %720 = vector.extract_strided_slice %652 {offsets = [3, 0], sizes = [1, 128], strides = [1, 1]} : vector<8x128xf32> to vector<1x128xf32>
    %721 = vector.broadcast %720 : vector<1x128xf32> to vector<8x128xf32>
    %722 = arith.mulf %651, %721 : vector<8x128xf32>
    %723 = arith.subf %722, %691 : vector<8x128xf32>
    %724 = math.exp %723 : vector<8x128xf32>
    %725 = arith.addf %715, %724 : vector<8x128xf32>
    %726 = vector.extract_strided_slice %653 {offsets = [3, 0], sizes = [1, 128], strides = [1, 1]} : vector<8x128xf32> to vector<1x128xf32>
    %727 = vector.broadcast %726 : vector<1x128xf32> to vector<8x128xf32>
    %728 = arith.mulf %724, %727 : vector<8x128xf32>
    %729 = arith.addf %719, %728 : vector<8x128xf32>
    %730 = vector.extract_strided_slice %652 {offsets = [4, 0], sizes = [1, 128], strides = [1, 1]} : vector<8x128xf32> to vector<1x128xf32>
    %731 = vector.broadcast %730 : vector<1x128xf32> to vector<8x128xf32>
    %732 = arith.mulf %651, %731 : vector<8x128xf32>
    %733 = arith.subf %732, %691 : vector<8x128xf32>
    %734 = math.exp %733 : vector<8x128xf32>
    %735 = arith.addf %725, %734 : vector<8x128xf32>
    %736 = vector.extract_strided_slice %653 {offsets = [4, 0], sizes = [1, 128], strides = [1, 1]} : vector<8x128xf32> to vector<1x128xf32>
    %737 = vector.broadcast %736 : vector<1x128xf32> to vector<8x128xf32>
    %738 = arith.mulf %734, %737 : vector<8x128xf32>
    %739 = arith.addf %729, %738 : vector<8x128xf32>
    %740 = vector.extract_strided_slice %652 {offsets = [5, 0], sizes = [1, 128], strides = [1, 1]} : vector<8x128xf32> to vector<1x128xf32>
    %741 = vector.broadcast %740 : vector<1x128xf32> to vector<8x128xf32>
    %742 = arith.mulf %651, %741 : vector<8x128xf32>
    %743 = arith.subf %742, %691 : vector<8x128xf32>
    %744 = math.exp %743 : vector<8x128xf32>
    %745 = arith.addf %735, %744 : vector<8x128xf32>
    %746 = vector.extract_strided_slice %653 {offsets = [5, 0], sizes = [1, 128], strides = [1, 1]} : vector<8x128xf32> to vector<1x128xf32>
    %747 = vector.broadcast %746 : vector<1x128xf32> to vector<8x128xf32>
    %748 = arith.mulf %744, %747 : vector<8x128xf32>
    %749 = arith.addf %739, %748 : vector<8x128xf32>
    %750 = vector.extract_strided_slice %652 {offsets = [6, 0], sizes = [1, 128], strides = [1, 1]} : vector<8x128xf32> to vector<1x128xf32>
    %751 = vector.broadcast %750 : vector<1x128xf32> to vector<8x128xf32>
    %752 = arith.mulf %651, %751 : vector<8x128xf32>
    %753 = arith.subf %752, %691 : vector<8x128xf32>
    %754 = math.exp %753 : vector<8x128xf32>
    %755 = arith.addf %745, %754 : vector<8x128xf32>
    %756 = vector.extract_strided_slice %653 {offsets = [6, 0], sizes = [1, 128], strides = [1, 1]} : vector<8x128xf32> to vector<1x128xf32>
    %757 = vector.broadcast %756 : vector<1x128xf32> to vector<8x128xf32>
    %758 = arith.mulf %754, %757 : vector<8x128xf32>
    %759 = arith.addf %749, %758 : vector<8x128xf32>
    %760 = vector.extract_strided_slice %652 {offsets = [7, 0], sizes = [1, 128], strides = [1, 1]} : vector<8x128xf32> to vector<1x128xf32>
    %761 = vector.broadcast %760 : vector<1x128xf32> to vector<8x128xf32>
    %762 = arith.mulf %651, %761 : vector<8x128xf32>
    %763 = arith.subf %762, %691 : vector<8x128xf32>
    %764 = math.exp %763 : vector<8x128xf32>
    %765 = arith.addf %755, %764 : vector<8x128xf32>
    %766 = vector.extract_strided_slice %653 {offsets = [7, 0], sizes = [1, 128], strides = [1, 1]} : vector<8x128xf32> to vector<1x128xf32>
    %767 = vector.broadcast %766 : vector<1x128xf32> to vector<8x128xf32>
    %768 = arith.mulf %764, %767 : vector<8x128xf32>
    %769 = arith.addf %759, %768 : vector<8x128xf32>
    %770 = tpu.reciprocal %765 {approx = true} : vector<8x128xf32> -> vector<8x128xf32>
    %771 = arith.mulf %765, %770 : vector<8x128xf32>
    %cst_65 = arith.constant 2.000000e+00 : f32
    %772 = vector.broadcast %cst_65 : f32 to vector<8x128xf32>
    %773 = arith.subf %772, %771 : vector<8x128xf32>
    %774 = arith.mulf %770, %773 : vector<8x128xf32>
    %775 = arith.mulf %769, %774 : vector<8x128xf32>
    %c40_66 = arith.constant 40 : index
    %c0_67 = arith.constant 0 : index
    %776 = vector.load %arg14[%c40_66, %c0_67] : memref<64x128xf32, #tpu.memory_space<vmem>>, vector<8x128xf32>
    tpu.vector_store %arg14[%c40_66, %c0_67], %775 {strides = array<i32>} : memref<64x128xf32, #tpu.memory_space<vmem>>, vector<8x128xf32>,
    %c48 = arith.constant 48 : index
    %c0_68 = arith.constant 0 : index
    %777 = vector.load %arg13[%c48, %c0_68] : memref<192x128xf32, #tpu.memory_space<vmem>>, vector<8x128xf32>
    %c112 = arith.constant 112 : index
    %c0_69 = arith.constant 0 : index
    %778 = vector.load %arg13[%c112, %c0_69] : memref<192x128xf32, #tpu.memory_space<vmem>>, vector<8x128xf32>
    %c176 = arith.constant 176 : index
    %c0_70 = arith.constant 0 : index
    %779 = vector.load %arg13[%c176, %c0_70] : memref<192x128xf32, #tpu.memory_space<vmem>>, vector<8x128xf32>
    %780 = vector.extract_strided_slice %778 {offsets = [0, 0], sizes = [1, 128], strides = [1, 1]} : vector<8x128xf32> to vector<1x128xf32>
    %781 = vector.extract_strided_slice %778 {offsets = [0, 0], sizes = [1, 128], strides = [1, 1]} : vector<8x128xf32> to vector<1x128xf32>
    %782 = vector.extract_strided_slice %778 {offsets = [1, 0], sizes = [1, 128], strides = [1, 1]} : vector<8x128xf32> to vector<1x128xf32>
    %783 = arith.maximumf %780, %782 : vector<1x128xf32>
    %784 = vector.extract_strided_slice %778 {offsets = [1, 0], sizes = [1, 128], strides = [1, 1]} : vector<8x128xf32> to vector<1x128xf32>
    %785 = arith.minimumf %781, %784 : vector<1x128xf32>
    %786 = vector.extract_strided_slice %778 {offsets = [2, 0], sizes = [1, 128], strides = [1, 1]} : vector<8x128xf32> to vector<1x128xf32>
    %787 = arith.maximumf %783, %786 : vector<1x128xf32>
    %788 = vector.extract_strided_slice %778 {offsets = [2, 0], sizes = [1, 128], strides = [1, 1]} : vector<8x128xf32> to vector<1x128xf32>
    %789 = arith.minimumf %785, %788 : vector<1x128xf32>
    %790 = vector.extract_strided_slice %778 {offsets = [3, 0], sizes = [1, 128], strides = [1, 1]} : vector<8x128xf32> to vector<1x128xf32>
    %791 = arith.maximumf %787, %790 : vector<1x128xf32>
    %792 = vector.extract_strided_slice %778 {offsets = [3, 0], sizes = [1, 128], strides = [1, 1]} : vector<8x128xf32> to vector<1x128xf32>
    %793 = arith.minimumf %789, %792 : vector<1x128xf32>
    %794 = vector.extract_strided_slice %778 {offsets = [4, 0], sizes = [1, 128], strides = [1, 1]} : vector<8x128xf32> to vector<1x128xf32>
    %795 = arith.maximumf %791, %794 : vector<1x128xf32>
    %796 = vector.extract_strided_slice %778 {offsets = [4, 0], sizes = [1, 128], strides = [1, 1]} : vector<8x128xf32> to vector<1x128xf32>
    %797 = arith.minimumf %793, %796 : vector<1x128xf32>
    %798 = vector.extract_strided_slice %778 {offsets = [5, 0], sizes = [1, 128], strides = [1, 1]} : vector<8x128xf32> to vector<1x128xf32>
    %799 = arith.maximumf %795, %798 : vector<1x128xf32>
    %800 = vector.extract_strided_slice %778 {offsets = [5, 0], sizes = [1, 128], strides = [1, 1]} : vector<8x128xf32> to vector<1x128xf32>
    %801 = arith.minimumf %797, %800 : vector<1x128xf32>
    %802 = vector.extract_strided_slice %778 {offsets = [6, 0], sizes = [1, 128], strides = [1, 1]} : vector<8x128xf32> to vector<1x128xf32>
    %803 = arith.maximumf %799, %802 : vector<1x128xf32>
    %804 = vector.extract_strided_slice %778 {offsets = [6, 0], sizes = [1, 128], strides = [1, 1]} : vector<8x128xf32> to vector<1x128xf32>
    %805 = arith.minimumf %801, %804 : vector<1x128xf32>
    %806 = vector.extract_strided_slice %778 {offsets = [7, 0], sizes = [1, 128], strides = [1, 1]} : vector<8x128xf32> to vector<1x128xf32>
    %807 = arith.maximumf %803, %806 : vector<1x128xf32>
    %808 = vector.extract_strided_slice %778 {offsets = [7, 0], sizes = [1, 128], strides = [1, 1]} : vector<8x128xf32> to vector<1x128xf32>
    %809 = arith.minimumf %805, %808 : vector<1x128xf32>
    %cst_71 = arith.constant 0.000000e+00 : f32
    %810 = vector.broadcast %cst_71 : f32 to vector<8x128xf32>
    %811 = arith.cmpf oge, %777, %810 : vector<8x128xf32>
    %812 = vector.shape_cast %807 : vector<1x128xf32> to vector<1x128xf32>
    %813 = vector.broadcast %812 : vector<1x128xf32> to vector<8x128xf32>
    %814 = vector.shape_cast %809 : vector<1x128xf32> to vector<1x128xf32>
    %815 = vector.broadcast %814 : vector<1x128xf32> to vector<8x128xf32>
    %816 = arith.select %811, %813, %815 : vector<8x128xi1>, vector<8x128xf32>
    %817 = arith.mulf %777, %816 : vector<8x128xf32>
    %818 = vector.extract_strided_slice %778 {offsets = [0, 0], sizes = [1, 128], strides = [1, 1]} : vector<8x128xf32> to vector<1x128xf32>
    %819 = vector.broadcast %818 : vector<1x128xf32> to vector<8x128xf32>
    %820 = arith.mulf %777, %819 : vector<8x128xf32>
    %821 = arith.subf %820, %817 : vector<8x128xf32>
    %822 = math.exp %821 : vector<8x128xf32>
    %823 = vector.extract_strided_slice %779 {offsets = [0, 0], sizes = [1, 128], strides = [1, 1]} : vector<8x128xf32> to vector<1x128xf32>
    %824 = vector.broadcast %823 : vector<1x128xf32> to vector<8x128xf32>
    %825 = arith.mulf %822, %824 : vector<8x128xf32>
    %826 = vector.extract_strided_slice %778 {offsets = [1, 0], sizes = [1, 128], strides = [1, 1]} : vector<8x128xf32> to vector<1x128xf32>
    %827 = vector.broadcast %826 : vector<1x128xf32> to vector<8x128xf32>
    %828 = arith.mulf %777, %827 : vector<8x128xf32>
    %829 = arith.subf %828, %817 : vector<8x128xf32>
    %830 = math.exp %829 : vector<8x128xf32>
    %831 = arith.addf %822, %830 : vector<8x128xf32>
    %832 = vector.extract_strided_slice %779 {offsets = [1, 0], sizes = [1, 128], strides = [1, 1]} : vector<8x128xf32> to vector<1x128xf32>
    %833 = vector.broadcast %832 : vector<1x128xf32> to vector<8x128xf32>
    %834 = arith.mulf %830, %833 : vector<8x128xf32>
    %835 = arith.addf %825, %834 : vector<8x128xf32>
    %836 = vector.extract_strided_slice %778 {offsets = [2, 0], sizes = [1, 128], strides = [1, 1]} : vector<8x128xf32> to vector<1x128xf32>
    %837 = vector.broadcast %836 : vector<1x128xf32> to vector<8x128xf32>
    %838 = arith.mulf %777, %837 : vector<8x128xf32>
    %839 = arith.subf %838, %817 : vector<8x128xf32>
    %840 = math.exp %839 : vector<8x128xf32>
    %841 = arith.addf %831, %840 : vector<8x128xf32>
    %842 = vector.extract_strided_slice %779 {offsets = [2, 0], sizes = [1, 128], strides = [1, 1]} : vector<8x128xf32> to vector<1x128xf32>
    %843 = vector.broadcast %842 : vector<1x128xf32> to vector<8x128xf32>
    %844 = arith.mulf %840, %843 : vector<8x128xf32>
    %845 = arith.addf %835, %844 : vector<8x128xf32>
    %846 = vector.extract_strided_slice %778 {offsets = [3, 0], sizes = [1, 128], strides = [1, 1]} : vector<8x128xf32> to vector<1x128xf32>
    %847 = vector.broadcast %846 : vector<1x128xf32> to vector<8x128xf32>
    %848 = arith.mulf %777, %847 : vector<8x128xf32>
    %849 = arith.subf %848, %817 : vector<8x128xf32>
    %850 = math.exp %849 : vector<8x128xf32>
    %851 = arith.addf %841, %850 : vector<8x128xf32>
    %852 = vector.extract_strided_slice %779 {offsets = [3, 0], sizes = [1, 128], strides = [1, 1]} : vector<8x128xf32> to vector<1x128xf32>
    %853 = vector.broadcast %852 : vector<1x128xf32> to vector<8x128xf32>
    %854 = arith.mulf %850, %853 : vector<8x128xf32>
    %855 = arith.addf %845, %854 : vector<8x128xf32>
    %856 = vector.extract_strided_slice %778 {offsets = [4, 0], sizes = [1, 128], strides = [1, 1]} : vector<8x128xf32> to vector<1x128xf32>
    %857 = vector.broadcast %856 : vector<1x128xf32> to vector<8x128xf32>
    %858 = arith.mulf %777, %857 : vector<8x128xf32>
    %859 = arith.subf %858, %817 : vector<8x128xf32>
    %860 = math.exp %859 : vector<8x128xf32>
    %861 = arith.addf %851, %860 : vector<8x128xf32>
    %862 = vector.extract_strided_slice %779 {offsets = [4, 0], sizes = [1, 128], strides = [1, 1]} : vector<8x128xf32> to vector<1x128xf32>
    %863 = vector.broadcast %862 : vector<1x128xf32> to vector<8x128xf32>
    %864 = arith.mulf %860, %863 : vector<8x128xf32>
    %865 = arith.addf %855, %864 : vector<8x128xf32>
    %866 = vector.extract_strided_slice %778 {offsets = [5, 0], sizes = [1, 128], strides = [1, 1]} : vector<8x128xf32> to vector<1x128xf32>
    %867 = vector.broadcast %866 : vector<1x128xf32> to vector<8x128xf32>
    %868 = arith.mulf %777, %867 : vector<8x128xf32>
    %869 = arith.subf %868, %817 : vector<8x128xf32>
    %870 = math.exp %869 : vector<8x128xf32>
    %871 = arith.addf %861, %870 : vector<8x128xf32>
    %872 = vector.extract_strided_slice %779 {offsets = [5, 0], sizes = [1, 128], strides = [1, 1]} : vector<8x128xf32> to vector<1x128xf32>
    %873 = vector.broadcast %872 : vector<1x128xf32> to vector<8x128xf32>
    %874 = arith.mulf %870, %873 : vector<8x128xf32>
    %875 = arith.addf %865, %874 : vector<8x128xf32>
    %876 = vector.extract_strided_slice %778 {offsets = [6, 0], sizes = [1, 128], strides = [1, 1]} : vector<8x128xf32> to vector<1x128xf32>
    %877 = vector.broadcast %876 : vector<1x128xf32> to vector<8x128xf32>
    %878 = arith.mulf %777, %877 : vector<8x128xf32>
    %879 = arith.subf %878, %817 : vector<8x128xf32>
    %880 = math.exp %879 : vector<8x128xf32>
    %881 = arith.addf %871, %880 : vector<8x128xf32>
    %882 = vector.extract_strided_slice %779 {offsets = [6, 0], sizes = [1, 128], strides = [1, 1]} : vector<8x128xf32> to vector<1x128xf32>
    %883 = vector.broadcast %882 : vector<1x128xf32> to vector<8x128xf32>
    %884 = arith.mulf %880, %883 : vector<8x128xf32>
    %885 = arith.addf %875, %884 : vector<8x128xf32>
    %886 = vector.extract_strided_slice %778 {offsets = [7, 0], sizes = [1, 128], strides = [1, 1]} : vector<8x128xf32> to vector<1x128xf32>
    %887 = vector.broadcast %886 : vector<1x128xf32> to vector<8x128xf32>
    %888 = arith.mulf %777, %887 : vector<8x128xf32>
    %889 = arith.subf %888, %817 : vector<8x128xf32>
    %890 = math.exp %889 : vector<8x128xf32>
    %891 = arith.addf %881, %890 : vector<8x128xf32>
    %892 = vector.extract_strided_slice %779 {offsets = [7, 0], sizes = [1, 128], strides = [1, 1]} : vector<8x128xf32> to vector<1x128xf32>
    %893 = vector.broadcast %892 : vector<1x128xf32> to vector<8x128xf32>
    %894 = arith.mulf %890, %893 : vector<8x128xf32>
    %895 = arith.addf %885, %894 : vector<8x128xf32>
    %896 = tpu.reciprocal %891 {approx = true} : vector<8x128xf32> -> vector<8x128xf32>
    %897 = arith.mulf %891, %896 : vector<8x128xf32>
    %cst_72 = arith.constant 2.000000e+00 : f32
    %898 = vector.broadcast %cst_72 : f32 to vector<8x128xf32>
    %899 = arith.subf %898, %897 : vector<8x128xf32>
    %900 = arith.mulf %896, %899 : vector<8x128xf32>
    %901 = arith.mulf %895, %900 : vector<8x128xf32>
    %c48_73 = arith.constant 48 : index
    %c0_74 = arith.constant 0 : index
    %902 = vector.load %arg14[%c48_73, %c0_74] : memref<64x128xf32, #tpu.memory_space<vmem>>, vector<8x128xf32>
    tpu.vector_store %arg14[%c48_73, %c0_74], %901 {strides = array<i32>} : memref<64x128xf32, #tpu.memory_space<vmem>>, vector<8x128xf32>,
    %c56 = arith.constant 56 : index
    %c0_75 = arith.constant 0 : index
    %903 = vector.load %arg13[%c56, %c0_75] : memref<192x128xf32, #tpu.memory_space<vmem>>, vector<8x128xf32>
    %c120 = arith.constant 120 : index
    %c0_76 = arith.constant 0 : index
    %904 = vector.load %arg13[%c120, %c0_76] : memref<192x128xf32, #tpu.memory_space<vmem>>, vector<8x128xf32>
    %c184 = arith.constant 184 : index
    %c0_77 = arith.constant 0 : index
    %905 = vector.load %arg13[%c184, %c0_77] : memref<192x128xf32, #tpu.memory_space<vmem>>, vector<8x128xf32>
    %906 = vector.extract_strided_slice %904 {offsets = [0, 0], sizes = [1, 128], strides = [1, 1]} : vector<8x128xf32> to vector<1x128xf32>
    %907 = vector.extract_strided_slice %904 {offsets = [0, 0], sizes = [1, 128], strides = [1, 1]} : vector<8x128xf32> to vector<1x128xf32>
    %908 = vector.extract_strided_slice %904 {offsets = [1, 0], sizes = [1, 128], strides = [1, 1]} : vector<8x128xf32> to vector<1x128xf32>
    %909 = arith.maximumf %906, %908 : vector<1x128xf32>
    %910 = vector.extract_strided_slice %904 {offsets = [1, 0], sizes = [1, 128], strides = [1, 1]} : vector<8x128xf32> to vector<1x128xf32>
    %911 = arith.minimumf %907, %910 : vector<1x128xf32>
    %912 = vector.extract_strided_slice %904 {offsets = [2, 0], sizes = [1, 128], strides = [1, 1]} : vector<8x128xf32> to vector<1x128xf32>
    %913 = arith.maximumf %909, %912 : vector<1x128xf32>
    %914 = vector.extract_strided_slice %904 {offsets = [2, 0], sizes = [1, 128], strides = [1, 1]} : vector<8x128xf32> to vector<1x128xf32>
    %915 = arith.minimumf %911, %914 : vector<1x128xf32>
    %916 = vector.extract_strided_slice %904 {offsets = [3, 0], sizes = [1, 128], strides = [1, 1]} : vector<8x128xf32> to vector<1x128xf32>
    %917 = arith.maximumf %913, %916 : vector<1x128xf32>
    %918 = vector.extract_strided_slice %904 {offsets = [3, 0], sizes = [1, 128], strides = [1, 1]} : vector<8x128xf32> to vector<1x128xf32>
    %919 = arith.minimumf %915, %918 : vector<1x128xf32>
    %920 = vector.extract_strided_slice %904 {offsets = [4, 0], sizes = [1, 128], strides = [1, 1]} : vector<8x128xf32> to vector<1x128xf32>
    %921 = arith.maximumf %917, %920 : vector<1x128xf32>
    %922 = vector.extract_strided_slice %904 {offsets = [4, 0], sizes = [1, 128], strides = [1, 1]} : vector<8x128xf32> to vector<1x128xf32>
    %923 = arith.minimumf %919, %922 : vector<1x128xf32>
    %924 = vector.extract_strided_slice %904 {offsets = [5, 0], sizes = [1, 128], strides = [1, 1]} : vector<8x128xf32> to vector<1x128xf32>
    %925 = arith.maximumf %921, %924 : vector<1x128xf32>
    %926 = vector.extract_strided_slice %904 {offsets = [5, 0], sizes = [1, 128], strides = [1, 1]} : vector<8x128xf32> to vector<1x128xf32>
    %927 = arith.minimumf %923, %926 : vector<1x128xf32>
    %928 = vector.extract_strided_slice %904 {offsets = [6, 0], sizes = [1, 128], strides = [1, 1]} : vector<8x128xf32> to vector<1x128xf32>
    %929 = arith.maximumf %925, %928 : vector<1x128xf32>
    %930 = vector.extract_strided_slice %904 {offsets = [6, 0], sizes = [1, 128], strides = [1, 1]} : vector<8x128xf32> to vector<1x128xf32>
    %931 = arith.minimumf %927, %930 : vector<1x128xf32>
    %932 = vector.extract_strided_slice %904 {offsets = [7, 0], sizes = [1, 128], strides = [1, 1]} : vector<8x128xf32> to vector<1x128xf32>
    %933 = arith.maximumf %929, %932 : vector<1x128xf32>
    %934 = vector.extract_strided_slice %904 {offsets = [7, 0], sizes = [1, 128], strides = [1, 1]} : vector<8x128xf32> to vector<1x128xf32>
    %935 = arith.minimumf %931, %934 : vector<1x128xf32>
    %cst_78 = arith.constant 0.000000e+00 : f32
    %936 = vector.broadcast %cst_78 : f32 to vector<8x128xf32>
    %937 = arith.cmpf oge, %903, %936 : vector<8x128xf32>
    %938 = vector.shape_cast %933 : vector<1x128xf32> to vector<1x128xf32>
    %939 = vector.broadcast %938 : vector<1x128xf32> to vector<8x128xf32>
    %940 = vector.shape_cast %935 : vector<1x128xf32> to vector<1x128xf32>
    %941 = vector.broadcast %940 : vector<1x128xf32> to vector<8x128xf32>
    %942 = arith.select %937, %939, %941 : vector<8x128xi1>, vector<8x128xf32>
    %943 = arith.mulf %903, %942 : vector<8x128xf32>
    %944 = vector.extract_strided_slice %904 {offsets = [0, 0], sizes = [1, 128], strides = [1, 1]} : vector<8x128xf32> to vector<1x128xf32>
    %945 = vector.broadcast %944 : vector<1x128xf32> to vector<8x128xf32>
    %946 = arith.mulf %903, %945 : vector<8x128xf32>
    %947 = arith.subf %946, %943 : vector<8x128xf32>
    %948 = math.exp %947 : vector<8x128xf32>
    %949 = vector.extract_strided_slice %905 {offsets = [0, 0], sizes = [1, 128], strides = [1, 1]} : vector<8x128xf32> to vector<1x128xf32>
    %950 = vector.broadcast %949 : vector<1x128xf32> to vector<8x128xf32>
    %951 = arith.mulf %948, %950 : vector<8x128xf32>
    %952 = vector.extract_strided_slice %904 {offsets = [1, 0], sizes = [1, 128], strides = [1, 1]} : vector<8x128xf32> to vector<1x128xf32>
    %953 = vector.broadcast %952 : vector<1x128xf32> to vector<8x128xf32>
    %954 = arith.mulf %903, %953 : vector<8x128xf32>
    %955 = arith.subf %954, %943 : vector<8x128xf32>
    %956 = math.exp %955 : vector<8x128xf32>
    %957 = arith.addf %948, %956 : vector<8x128xf32>
    %958 = vector.extract_strided_slice %905 {offsets = [1, 0], sizes = [1, 128], strides = [1, 1]} : vector<8x128xf32> to vector<1x128xf32>
    %959 = vector.broadcast %958 : vector<1x128xf32> to vector<8x128xf32>
    %960 = arith.mulf %956, %959 : vector<8x128xf32>
    %961 = arith.addf %951, %960 : vector<8x128xf32>
    %962 = vector.extract_strided_slice %904 {offsets = [2, 0], sizes = [1, 128], strides = [1, 1]} : vector<8x128xf32> to vector<1x128xf32>
    %963 = vector.broadcast %962 : vector<1x128xf32> to vector<8x128xf32>
    %964 = arith.mulf %903, %963 : vector<8x128xf32>
    %965 = arith.subf %964, %943 : vector<8x128xf32>
    %966 = math.exp %965 : vector<8x128xf32>
    %967 = arith.addf %957, %966 : vector<8x128xf32>
    %968 = vector.extract_strided_slice %905 {offsets = [2, 0], sizes = [1, 128], strides = [1, 1]} : vector<8x128xf32> to vector<1x128xf32>
    %969 = vector.broadcast %968 : vector<1x128xf32> to vector<8x128xf32>
    %970 = arith.mulf %966, %969 : vector<8x128xf32>
    %971 = arith.addf %961, %970 : vector<8x128xf32>
    %972 = vector.extract_strided_slice %904 {offsets = [3, 0], sizes = [1, 128], strides = [1, 1]} : vector<8x128xf32> to vector<1x128xf32>
    %973 = vector.broadcast %972 : vector<1x128xf32> to vector<8x128xf32>
    %974 = arith.mulf %903, %973 : vector<8x128xf32>
    %975 = arith.subf %974, %943 : vector<8x128xf32>
    %976 = math.exp %975 : vector<8x128xf32>
    %977 = arith.addf %967, %976 : vector<8x128xf32>
    %978 = vector.extract_strided_slice %905 {offsets = [3, 0], sizes = [1, 128], strides = [1, 1]} : vector<8x128xf32> to vector<1x128xf32>
    %979 = vector.broadcast %978 : vector<1x128xf32> to vector<8x128xf32>
    %980 = arith.mulf %976, %979 : vector<8x128xf32>
    %981 = arith.addf %971, %980 : vector<8x128xf32>
    %982 = vector.extract_strided_slice %904 {offsets = [4, 0], sizes = [1, 128], strides = [1, 1]} : vector<8x128xf32> to vector<1x128xf32>
    %983 = vector.broadcast %982 : vector<1x128xf32> to vector<8x128xf32>
    %984 = arith.mulf %903, %983 : vector<8x128xf32>
    %985 = arith.subf %984, %943 : vector<8x128xf32>
    %986 = math.exp %985 : vector<8x128xf32>
    %987 = arith.addf %977, %986 : vector<8x128xf32>
    %988 = vector.extract_strided_slice %905 {offsets = [4, 0], sizes = [1, 128], strides = [1, 1]} : vector<8x128xf32> to vector<1x128xf32>
    %989 = vector.broadcast %988 : vector<1x128xf32> to vector<8x128xf32>
    %990 = arith.mulf %986, %989 : vector<8x128xf32>
    %991 = arith.addf %981, %990 : vector<8x128xf32>
    %992 = vector.extract_strided_slice %904 {offsets = [5, 0], sizes = [1, 128], strides = [1, 1]} : vector<8x128xf32> to vector<1x128xf32>
    %993 = vector.broadcast %992 : vector<1x128xf32> to vector<8x128xf32>
    %994 = arith.mulf %903, %993 : vector<8x128xf32>
    %995 = arith.subf %994, %943 : vector<8x128xf32>
    %996 = math.exp %995 : vector<8x128xf32>
    %997 = arith.addf %987, %996 : vector<8x128xf32>
    %998 = vector.extract_strided_slice %905 {offsets = [5, 0], sizes = [1, 128], strides = [1, 1]} : vector<8x128xf32> to vector<1x128xf32>
    %999 = vector.broadcast %998 : vector<1x128xf32> to vector<8x128xf32>
    %1000 = arith.mulf %996, %999 : vector<8x128xf32>
    %1001 = arith.addf %991, %1000 : vector<8x128xf32>
    %1002 = vector.extract_strided_slice %904 {offsets = [6, 0], sizes = [1, 128], strides = [1, 1]} : vector<8x128xf32> to vector<1x128xf32>
    %1003 = vector.broadcast %1002 : vector<1x128xf32> to vector<8x128xf32>
    %1004 = arith.mulf %903, %1003 : vector<8x128xf32>
    %1005 = arith.subf %1004, %943 : vector<8x128xf32>
    %1006 = math.exp %1005 : vector<8x128xf32>
    %1007 = arith.addf %997, %1006 : vector<8x128xf32>
    %1008 = vector.extract_strided_slice %905 {offsets = [6, 0], sizes = [1, 128], strides = [1, 1]} : vector<8x128xf32> to vector<1x128xf32>
    %1009 = vector.broadcast %1008 : vector<1x128xf32> to vector<8x128xf32>
    %1010 = arith.mulf %1006, %1009 : vector<8x128xf32>
    %1011 = arith.addf %1001, %1010 : vector<8x128xf32>
    %1012 = vector.extract_strided_slice %904 {offsets = [7, 0], sizes = [1, 128], strides = [1, 1]} : vector<8x128xf32> to vector<1x128xf32>
    %1013 = vector.broadcast %1012 : vector<1x128xf32> to vector<8x128xf32>
    %1014 = arith.mulf %903, %1013 : vector<8x128xf32>
    %1015 = arith.subf %1014, %943 : vector<8x128xf32>
    %1016 = math.exp %1015 : vector<8x128xf32>
    %1017 = arith.addf %1007, %1016 : vector<8x128xf32>
    %1018 = vector.extract_strided_slice %905 {offsets = [7, 0], sizes = [1, 128], strides = [1, 1]} : vector<8x128xf32> to vector<1x128xf32>
    %1019 = vector.broadcast %1018 : vector<1x128xf32> to vector<8x128xf32>
    %1020 = arith.mulf %1016, %1019 : vector<8x128xf32>
    %1021 = arith.addf %1011, %1020 : vector<8x128xf32>
    %1022 = tpu.reciprocal %1017 {approx = true} : vector<8x128xf32> -> vector<8x128xf32>
    %1023 = arith.mulf %1017, %1022 : vector<8x128xf32>
    %cst_79 = arith.constant 2.000000e+00 : f32
    %1024 = vector.broadcast %cst_79 : f32 to vector<8x128xf32>
    %1025 = arith.subf %1024, %1023 : vector<8x128xf32>
    %1026 = arith.mulf %1022, %1025 : vector<8x128xf32>
    %1027 = arith.mulf %1021, %1026 : vector<8x128xf32>
    %c56_80 = arith.constant 56 : index
    %c0_81 = arith.constant 0 : index
    %1028 = vector.load %arg14[%c56_80, %c0_81] : memref<64x128xf32, #tpu.memory_space<vmem>>, vector<8x128xf32>
    tpu.vector_store %arg14[%c56_80, %c0_81], %1027 {strides = array<i32>} : memref<64x128xf32, #tpu.memory_space<vmem>>, vector<8x128xf32>,
    %c0_82 = arith.constant 0 : index
    %c0_83 = arith.constant 0 : index
    %1029 = vector.load %arg10[%c0_82, %c0_83] : memref<64x64xf32, #tpu.memory_space<vmem>>, vector<64x64xf32>
    %c0_84 = arith.constant 0 : index
    %c0_85 = arith.constant 0 : index
    %1030 = vector.load %arg14[%c0_84, %c0_85] : memref<64x128xf32, #tpu.memory_space<vmem>>, vector<64x128xf32>
    %cst_86 = arith.constant dense<0.000000e+00> : vector<64x128xf32>
    %1031 = tpu.matmul %1029, %1030, %cst_86 {dimension_numbers = #tpu.dot_dimension_numbers<[1], [0], [0], [1], [0, 0, 1, 1], [], []>} : vector<64x64xf32>, vector<64x128xf32>, vector<64x128xf32> -> vector<64x128xf32>
    %c0_87 = arith.constant 0 : index
    %c0_88 = arith.constant 0 : index
    %1032 = vector.load %arg11[%c0_87, %c0_88] : memref<64x1xf32, #tpu.memory_space<vmem>>, vector<64x1xf32>
    %1033 = vector.broadcast %1032 : vector<64x1xf32> to vector<64x128xf32>
    %1034 = arith.addf %1031, %1033 : vector<64x128xf32>
    %c0_89 = arith.constant 0 : index
    %c0_90 = arith.constant 0 : index
    %1035 = vector.load %arg12[%c0_89, %c0_90] : memref<64x128xf32, #tpu.memory_space<vmem>>, vector<64x128xf32>
    tpu.vector_store %arg12[%c0_89, %c0_90], %1034 {strides = array<i32>} : memref<64x128xf32, #tpu.memory_space<vmem>>, vector<64x128xf32>,
    return
  }
  func.func @transform_0(%arg0: i32) -> (i32, i32) {
    %c0_i32 = arith.constant 0 : i32
    %c0_i32_0 = arith.constant 0 : i32
    return %c0_i32, %arg0 : i32, i32
  }
  func.func @transform_1(%arg0: i32) -> (i32, i32) {
    %c0_i32 = arith.constant 0 : i32
    %c0_i32_0 = arith.constant 0 : i32
    return %c0_i32, %arg0 : i32, i32
  }
  func.func @transform_2(%arg0: i32) -> (i32, i32) {
    %c0_i32 = arith.constant 0 : i32
    %c0_i32_0 = arith.constant 0 : i32
    return %c0_i32, %arg0 : i32, i32
  }
  func.func @transform_3(%arg0: i32) -> (i32, i32) {
    %c0_i32 = arith.constant 0 : i32
    %c0_i32_0 = arith.constant 0 : i32
    %c0_i32_1 = arith.constant 0 : i32
    return %c0_i32, %c0_i32_0 : i32, i32
  }
  func.func @transform_4(%arg0: i32) -> (i32, i32) {
    %c0_i32 = arith.constant 0 : i32
    %c0_i32_0 = arith.constant 0 : i32
    %c0_i32_1 = arith.constant 0 : i32
    return %c0_i32, %c0_i32_0 : i32, i32
  }
  func.func @transform_5(%arg0: i32) -> (i32, i32) {
    %c0_i32 = arith.constant 0 : i32
    %c0_i32_0 = arith.constant 0 : i32
    %c0_i32_1 = arith.constant 0 : i32
    return %c0_i32, %c0_i32_0 : i32, i32
  }
  func.func @transform_6(%arg0: i32) -> (i32, i32) {
    %c0_i32 = arith.constant 0 : i32
    %c0_i32_0 = arith.constant 0 : i32
    %c0_i32_1 = arith.constant 0 : i32
    return %c0_i32, %c0_i32_0 : i32, i32
  }
  func.func @transform_7(%arg0: i32) -> (i32, i32) {
    %c0_i32 = arith.constant 0 : i32
    %c0_i32_0 = arith.constant 0 : i32
    %c0_i32_1 = arith.constant 0 : i32
    return %c0_i32, %c0_i32_0 : i32, i32
  }
  func.func @transform_8(%arg0: i32) -> (i32, i32) {
    %c0_i32 = arith.constant 0 : i32
    %c0_i32_0 = arith.constant 0 : i32
    %c0_i32_1 = arith.constant 0 : i32
    return %c0_i32, %c0_i32_0 : i32, i32
  }
  func.func @transform_9(%arg0: i32) -> (i32, i32) {
    %c0_i32 = arith.constant 0 : i32
    %c0_i32_0 = arith.constant 0 : i32
    %c0_i32_1 = arith.constant 0 : i32
    return %c0_i32, %c0_i32_0 : i32, i32
  }
  func.func @transform_10(%arg0: i32) -> (i32, i32) {
    %c0_i32 = arith.constant 0 : i32
    %c0_i32_0 = arith.constant 0 : i32
    %c0_i32_1 = arith.constant 0 : i32
    return %c0_i32, %c0_i32_0 : i32, i32
  }
  func.func @transform_11(%arg0: i32) -> (i32, i32) {
    %c0_i32 = arith.constant 0 : i32
    %c0_i32_0 = arith.constant 0 : i32
    return %c0_i32, %arg0 : i32, i32
  }
}

</mosaic_0001>

<bundles_post_ra>
// kernel: tpu_custom_call.1
= control target key start
LH: loop header
LB: loop body
LE: loop exit
PB: predicated region body
PF: predicated region fallthrough
CT: control target
= control target key end

     0   :  { %vm96_vm0 = vcmask 64512   ;;  %v1707_v6 = vmov 0   ;;  %s2563_s0 = inlined_call_operand.vmem [shape: f32[8,128], index: 0, kind: input, shape index: {}]   ;;  %s2564_s1 = inlined_call_operand.vmem [shape: f32[8,128], index: 1, kind: input, shape index: {}]   ;;  %s2565_s2 = inlined_call_operand.vmem [shape: f32[8,128], index: 2, kind: input, shape index: {}]   ;;  %s2566_s3 = inlined_call_operand.vmem [shape: f32[64,8], index: 3, kind: input, shape index: {}]   ;;  %s2567_s4 = inlined_call_operand.vmem [shape: f32[64,1], index: 4, kind: input, shape index: {}]   ;;  %s2568_s5 = inlined_call_operand.vmem [shape: f32[64,8], index: 5, kind: input, shape index: {}]   ;;  %s2569_s6 = inlined_call_operand.vmem [shape: f32[64,1], index: 6, kind: input, shape index: {}]   ;;  %s2570_s7 = inlined_call_operand.vmem [shape: f32[64,8], index: 7, kind: input, shape index: {}]   ;;  %s2571_s8 = inlined_call_operand.vmem [shape: f32[64,1], index: 8, kind: input, shape index: {}]   ;;  %s2572_s9 = inlined_call_operand.vmem [shape: f32[64,64], index: 9, kind: input, shape index: {}]   ;;  %s2573_s10 = inlined_call_operand.vmem [shape: f32[64,1], index: 10, kind: input, shape index: {}]   ;;  %s2574_s11 = inlined_call_operand.hbm [shape: f32[64,128], index: 11, kind: output, shape index: {}]  }
   0x1   :  { %v178_v0 = vld [vmem:[%s2564_s1] sm:$0xff]  ;;  %v184_v5 = vld [vmem:[%s2569_s6 + $0x28] sm:$0xff]  ;;  %1535 = vset.pattern.permute.xlu1 %v1707_v6  ;;  %1534 = vset.pattern.permute.xlu0 %v1707_v6  ;;  %v186_v7 = vld [vmem:[%s2569_s6 + $0x38] sm:$0xff] }
   0x2   :  { %v308_v1 = vld [vmem:[%s2565_s2] sm:$0xff]  ;;  %266 = vmatpush.msra.mxu1 %v178_v0  ;;  %214 = vperm.xlu1 %1535, %v184_v5   ;;  %v182_v9 = vld [vmem:[%s2569_s6 + $0x18] sm:$0xff]  ;;  %v171_v10 = vld [vmem:[%s2568_s5 + $0x8] sm:$0xff] }
   0x3   :  { %v47_v2 = vld [vmem:[%s2563_s0] sm:$0xff]  ;;  %396 = vmatpush.msra.mxu2 %v308_v1  ;;  %224 = vperm.xlu0 %1534, %v186_v7   ;;  %v301_v11 = vld [vmem:[%s2570_s7 + $0x8] sm:$0xff]  ;;  %v185_v13 = vld [vmem:[%s2569_s6 + $0x30] sm:$0xff] }
   0x4   :  { %v170_v3 = vld [vmem:[%s2568_s5] sm:$0xff]  ;;  %136 = vmatpush.msra.mxu0 %v47_v2  ;;  %1536 = vset.pattern.permute.xlu2 %v1707_v6  ;;  %v40_v14 = vld [vmem:[%s2566_s3 + $0x8] sm:$0xff] }
   0x5   :  { %v300_v4 = vld [vmem:[%s2570_s7] sm:$0xff]  ;;  %1498 = vmatmul.msk.f32.vlgmr.msra.gmra.mxu1 %vm96_vm0, %v170_v3  ;;  %204 = vperm.xlu2 %1536, %v182_v9  }
   0x6   :  { %v39_v8 = vld [vmem:[%s2566_s3] sm:$0xff]  ;;  %1506 = vmatmul.msk.f32.vlgmr.msra.gmra.mxu2 %vm96_vm0, %v300_v4 }
   0x7   :  { %1490 = vmatmul.msk.f32.vlgmr.msra.gmra.mxu0 %vm96_vm0, %v39_v8  ;;  %v183_v12 = vld [vmem:[%s2569_s6 + $0x20] sm:$0xff] }
   0xd   :  { %1499 = vmatmul.msk.f32.gmra.mxu1 %vm96_vm0, %v171_v10 }
   0xe   :  { %16 = vsyncpa [#allocation5], 0  ;;  %1507 = vmatmul.msk.f32.gmra.mxu2 %vm96_vm0, %v301_v11  ;;  %209 = vperm.xlu1 %1535, %v183_v12   ;;  %v181_v15 = vld [vmem:[%s2569_s6 + $0x10] sm:$0xff]  ;;  %v179_v18 = vld [vmem:[%s2569_s6] sm:$0xff]  ;;  %vm1398_vm9 = vcmask 523264   ;;  %s1709_s2 = smov 128  }
   0xf   :  { %219 = vperm.xlu0 %1534, %v185_v13   ;;  %1491 = vmatmul.msk.f32.gmra.mxu0 %vm96_vm0, %v40_v14  ;;  %v172_v16 = vld [vmem:[%s2568_s5 + $0x10] sm:$0xff]  ;;  %v180_v19 = vld [vmem:[%s2569_s6 + $0x8] sm:$0xff]  ;;  %v55_v21 = vld [vmem:[%s2567_s4 + $0x38] sm:$0xff]  ;;  %s1710_s0 = smov 8  }
  0x10   :  { %199 = vperm.xlu2 %1536, %v181_v15   ;;  %v302_v17 = vld [vmem:[%s2570_s7 + $0x10] sm:$0xff]  ;;  %v173_v22 = vld [vmem:[%s2568_s5 + $0x18] sm:$0xff]  ;;  %v53_v24 = vld [vmem:[%s2567_s4 + $0x28] sm:$0xff] }
  0x11   :  { %v41_v20 = vld [vmem:[%s2566_s3 + $0x10] sm:$0xff]  ;;  %v303_v23 = vld [vmem:[%s2570_s7 + $0x18] sm:$0xff]  ;;  %v52_v27 = vld [vmem:[%s2567_s4 + $0x20] sm:$0xff] }
  0x12   :  { %v54_v25 = vld [vmem:[%s2567_s4 + $0x30] sm:$0xff]  ;;  %v42_v26 = vld [vmem:[%s2566_s3 + $0x18] sm:$0xff]  ;;  %v174_v28 = vld [vmem:[%s2568_s5 + $0x20] sm:$0xff] }
  0x13   :  { %v304_v29 = vld [vmem:[%s2570_s7 + $0x20] sm:$0xff]  ;;  %v50_v30 = vld [vmem:[%s2567_s4 + $0x10] sm:$0xff]  ;;  %v51_v31 = vld [vmem:[%s2567_s4 + $0x18] sm:$0xff] }
  0x14   :  { %v43_v32 = vld [vmem:[%s2566_s3 + $0x20] sm:$0xff]  ;;  %v49_v33 = vld [vmem:[%s2567_s4 + $0x8] sm:$0xff]  ;;  %v316_v36 = vld [vmem:[%s2571_s8 + $0x38] sm:$0xff] }
  0x15   :  { %1500 = vmatmul.msk.f32.gmra.mxu1 %vm96_vm0, %v172_v16  ;;  %v175_v34 = vld [vmem:[%s2568_s5 + $0x28] sm:$0xff]  ;;  %v48_v37 = vld [vmem:[%s2567_s4] sm:$0xff]  ;;  %v315_v39 = vld [vmem:[%s2571_s8 + $0x30] sm:$0xff] }
  0x16   :  { %1508 = vmatmul.msk.f32.gmra.mxu2 %vm96_vm0, %v302_v17  ;;  %189 = vperm.xlu1 %1535, %v179_v18   ;;  %v305_v35 = vld [vmem:[%s2570_s7 + $0x28] sm:$0xff]  ;;  %v176_v40 = vld [vmem:[%s2568_s5 + $0x30] sm:$0xff]  ;;  %v313_v42 = vld [vmem:[%s2571_s8 + $0x20] sm:$0xff] }
  0x17   :  { %194 = vperm.xlu0 %1534, %v180_v19   ;;  %1492 = vmatmul.msk.f32.gmra.mxu0 %vm96_vm0, %v41_v20  ;;  %v44_v38 = vld [vmem:[%s2566_s3 + $0x28] sm:$0xff]  ;;  %v306_v41 = vld [vmem:[%s2570_s7 + $0x30] sm:$0xff]  ;;  %v312_v45 = vld [vmem:[%s2571_s8 + $0x18] sm:$0xff] }
  0x18   :  { %93 = vperm.xlu2 %1536, %v55_v21   ;;  %v314_v43 = vld [vmem:[%s2571_s8 + $0x28] sm:$0xff]  ;;  %v45_v44 = vld [vmem:[%s2566_s3 + $0x30] sm:$0xff]  ;;  %v177_v46 = vld [vmem:[%s2568_s5 + $0x38] sm:$0xff] }
  0x19   :  { %v307_v47 = vld [vmem:[%s2570_s7 + $0x38] sm:$0xff]  ;;  %v310_v48 = vld [vmem:[%s2571_s8 + $0x8] sm:$0xff]  ;;  %v311_v49 = vld [vmem:[%s2571_s8 + $0x10] sm:$0xff] }
  0x1a   :  { %v46_v50 = vld [vmem:[%s2566_s3 + $0x38] sm:$0xff]  ;;  %v309_v51 = vld [vmem:[%s2571_s8] sm:$0xff]  ;;  %v1351_v52 = vld [vmem:[%s2573_s10 + $0x8] sm:$0xff]  ;;  %s1478_s8 = sshll.u32 %s2574_s11, 4  ;;  %s1479_s8 = int_to_ptr.hbm [resolvable:$true] %s1478_s8 }
  0x1b   :  { %v1350_v53 = vld [vmem:[%s2573_s10] sm:$0xff]  ;;  %v1352_v54 = vld [vmem:[%s2573_s10 + $0x10] sm:$0xff]  ;;  %v1353_v56 = vld [vmem:[%s2573_s10 + $0x18] sm:$0xff] }
  0x1c   :  { %v1354_v55 = vld [vmem:[%s2573_s10 + $0x20] sm:$0xff]  ;;  %v1355_v57 = vld [vmem:[%s2573_s10 + $0x28] sm:$0xff]  ;;  %v1357_v58 = vld [vmem:[%s2573_s10 + $0x38] sm:$0xff] }
  0x1d   :  { %1501 = vmatmul.msk.f32.gmra.mxu1 %vm96_vm0, %v173_v22  ;;  %v1356_v59 = vld [vmem:[%s2573_s10 + $0x30] sm:$0xff] }
  0x1e   :  { %1509 = vmatmul.msk.f32.gmra.mxu2 %vm96_vm0, %v303_v23  ;;  %83 = vperm.xlu1 %1535, %v53_v24  }
  0x1f   :  { %88 = vperm.xlu0 %1534, %v54_v25   ;;  %1493 = vmatmul.msk.f32.gmra.mxu0 %vm96_vm0, %v42_v26 }
  0x20   :  { %78 = vperm.xlu2 %1536, %v52_v27  }
  0x25   :  { %1502 = vmatmul.msk.f32.gmra.mxu1 %vm96_vm0, %v174_v28 }
  0x26   :  { %1510 = vmatmul.msk.f32.gmra.mxu2 %vm96_vm0, %v304_v29  ;;  %68 = vperm.xlu1 %1535, %v50_v30  }
  0x27   :  { %73 = vperm.xlu0 %1534, %v51_v31   ;;  %1494 = vmatmul.msk.f32.gmra.mxu0 %vm96_vm0, %v43_v32 }
  0x28   :  { %63 = vperm.xlu2 %1536, %v49_v33  }
  0x2d   :  { %1503 = vmatmul.msk.f32.gmra.mxu1 %vm96_vm0, %v175_v34 }
  0x2e   :  { %1511 = vmatmul.msk.f32.gmra.mxu2 %vm96_vm0, %v305_v35  ;;  %354 = vperm.xlu1 %1535, %v316_v36  }
  0x2f   :  { %58 = vperm.xlu0 %1534, %v48_v37   ;;  %1495 = vmatmul.msk.f32.gmra.mxu0 %vm96_vm0, %v44_v38 }
  0x30   :  { %349 = vperm.xlu2 %1536, %v315_v39  }
  0x35   :  { %1504 = vmatmul.msk.f32.gmra.mxu1 %vm96_vm0, %v176_v40 }
  0x36   :  { %1512 = vmatmul.msk.f32.gmra.mxu2 %vm96_vm0, %v306_v41  ;;  %339 = vperm.xlu1 %1535, %v313_v42  }
  0x37   :  { %344 = vperm.xlu0 %1534, %v314_v43   ;;  %1496 = vmatmul.msk.f32.gmra.mxu0 %vm96_vm0, %v45_v44 }
  0x38   :  { %334 = vperm.xlu2 %1536, %v312_v45  }
  0x3d   :  { %1505 = vmatmul.msk.f32.gmra.mxu1 %vm96_vm0, %v177_v46 }
  0x3e   :  { %1513 = vmatmul.msk.f32.gmra.mxu2 %vm96_vm0, %v307_v47  ;;  %324 = vperm.xlu1 %1535, %v310_v48  }
  0x3f   :  { %329 = vperm.xlu0 %1534, %v311_v49   ;;  %1497 = vmatmul.msk.f32.gmra.mxu0 %vm96_vm0, %v46_v50 }
  0x40   :  { %319 = vperm.xlu2 %1536, %v309_v51  }
  0x46   :  { %1365 = vperm.xlu1 %1535, %v1351_v52  }
  0x47   :  { %1360 = vperm.xlu0 %1534, %v1350_v53  }
  0x48   :  { %1370 = vperm.xlu2 %1536, %v1352_v54  }
  0x4e   :  { %1380 = vperm.xlu1 %1535, %v1354_v55  }
  0x4f   :  { %1375 = vperm.xlu0 %1534, %v1353_v56  }
  0x50   :  { %1385 = vperm.xlu2 %1536, %v1355_v57  }
  0x56   :  { %1395 = vperm.xlu1 %1535, %v1357_v58  }
  0x57   :  { %1390 = vperm.xlu0 %1534, %v1356_v59  }
  0x5f   :  { %v205_v60 = vpop.permute.xlu2 %204 }
  0x6a   :  { %v200_v61 = vpop.permute.xlu2 %199 }
  0x72   :  { %v1972_v62 = vpop.permute.xlu2 %93 }
  0x74   :  { %v215_v63 = vpop.permute.xlu1 %214 }
  0x75   :  { %v1974_v0 = vpop.permute.xlu0 %224 }
  0x7a   :  { %v79_v2 = vpop.permute.xlu2 %78 }
  0x80   :  { %v210_v1 = vpop.permute.xlu1 %209 }
  0x81   :  { %v220_v3 = vpop.permute.xlu0 %219 }
  0x82   :  { %v268_v4 = vpop.f32.mrf.mxu1  ;;  %v64_v11 = vpop.permute.xlu2 %63 }
  0x84   :  { %v138_v5 = vpop.f32.mrf.mxu0 }
  0x88   :  { %v190_v6 = vpop.permute.xlu1 %189 }
  0x89   :  { %v1976_v7 = vadd.f32 %v268_v4, %v190_v6  ;;  %v195_v8 = vpop.permute.xlu0 %194  ;;  %v1978_v9 = vpop.f32.mrf.mxu2 }
  0x8a   :  { %v271_v10 = vpop.f32.mrf.mxu1  ;;  %v350_v33 = vpop.permute.xlu2 %349 }
  0x8b   :  { %v1980_v12 = vadd.f32 %v271_v10, %v195_v8 }
  0x8c   :  { %v141_v13 = vpop.f32.mrf.mxu0 }
  0x8d   :  { %v1982_v14 = vadd.f32 %v141_v13, %v64_v11 }
  0x8f   :  { %vm575_vm7 = vcmp.ge.f32.partialorder %v1982_v14, 0.0 }
  0x90   :  { %v84_v15 = vpop.permute.xlu1 %83 }
  0x91   :  { %v89_v16 = vpop.permute.xlu0 %88  ;;  %v1984_v17 = vpop.f32.mrf.mxu2 }
  0x92   :  { %v274_v18 = vpop.f32.mrf.mxu1  ;;  %v335_v44 = vpop.permute.xlu2 %334 }
  0x93   :  { %v1986_v19 = vadd.f32 %v274_v18, %v200_v61 }
  0x94   :  { %v144_v20 = vpop.f32.mrf.mxu0 }
  0x98   :  { %v69_v21 = vpop.permute.xlu1 %68 }
  0x99   :  { %v74_v22 = vpop.permute.xlu0 %73  ;;  %v1988_v23 = vadd.f32 %v144_v20, %v69_v21  ;;  %v404_v24 = vpop.f32.mrf.mxu2 }
  0x9a   :  { %v277_v25 = vpop.f32.mrf.mxu1 }
  0x9b   :  { %v1990_v26 = vadd.f32 %v277_v25, %v205_v60  ;;  %vm688_vm6 = vcmp.ge.f32.partialorder %v1988_v23, 0.0 }
  0x9c   :  { %v147_v27 = vpop.f32.mrf.mxu0 }
  0x9d   :  { %v2001_v43 = vadd.f32 %v147_v27, %v74_v22 }
  0x9f   :  { %vm801_vm5 = vcmp.ge.f32.partialorder %v2001_v43, 0.0 }
  0xa0   :  { %v1994_v34 = vpop.permute.xlu1 %354 }
  0xa1   :  { %v59_v28 = vpop.permute.xlu0 %58  ;;  %v407_v29 = vpop.f32.mrf.mxu2 }
  0xa2   :  { %v1992_v30 = vadd.f32 %v138_v5, %v59_v28  ;;  %v280_v31 = vpop.f32.mrf.mxu1  ;;  %v2004_v46 = vadd.f32 %v407_v29, %v335_v44 }
  0xa3   :  { %v2012_v53 = vadd.f32 %v280_v31, %v210_v1 }
  0xa4   :  { %v150_v32 = vpop.f32.mrf.mxu0  ;;  %vm462_vm8 = vcmp.ge.f32.partialorder %v1992_v30, 0.0 }
  0xa5   :  { %v2010_v52 = vadd.f32 %v150_v32, %v79_v2 }
  0xa7   :  { %vm914_vm4 = vcmp.ge.f32.partialorder %v2010_v52, 0.0 }
  0xa8   :  { %v340_v54 = vpop.permute.xlu1 %339 }
  0xa9   :  { %v345_v35 = vpop.permute.xlu0 %344  ;;  %v410_v36 = vpop.f32.mrf.mxu2 }
  0xaa   :  { %v283_v37 = vpop.f32.mrf.mxu1  ;;  %v2014_v58 = vadd.f32 %v410_v36, %v340_v54 }
  0xab   :  { %v1996_v38 = vadd.f32 %v283_v37, %v215_v63 }
  0xac   :  { %v153_v39 = vpop.f32.mrf.mxu0 }
  0xad   :  { %v999_v40 = vrot.slane %v1996_v38, 1  ;;  %v1003_v45 = vrot.slane %v1996_v38, 2  ;;  %v2006_v47 = vadd.f32 %v153_v39, %v84_v15  ;;  %v1032_v50 = vperm.slane %v1996_v38, 0 }
  0xae   :  { %v1039_v51 = vperm.slane %v1996_v38, 1  ;;  %v1007_v60 = vrot.slane %v1996_v38, 3  ;;  %v1011_v61 = vrot.slane %v1996_v38, 4 }
  0xaf   :  { %v1001_v41 = vmax.f32 %v1996_v38, %v999_v40  ;;  %v1002_v42 = vmin.f32 %v1996_v38, %v999_v40  ;;  %vm1027_vm3 = vcmp.ge.f32.partialorder %v2006_v47, 0.0 }
  0xb0   :  { %v2032_v10 = vmul.f32 %v1039_v51, %v2006_v47 }
  0xb1   :  { %v330_v48 = vpop.permute.xlu0 %329  ;;  %v413_v49 = vpop.f32.mrf.mxu2  ;;  %v1005_v56 = vmax.f32 %v1001_v41, %v1003_v45  ;;  %v1006_v57 = vmin.f32 %v1002_v42, %v1003_v45 }
  0xb2   :  { %v286_v55 = vpop.f32.mrf.mxu1  ;;  %v2020_v63 = vadd.f32 %v404_v24, %v330_v48  ;;  %v2025_v6 = vadd.f32 %v413_v49, %v345_v35 }
  0xb3   :  { %v2016_v59 = vadd.f32 %v286_v55, %v220_v3  ;;  %v2029_v3 = vmul.f32 %v1032_v50, %v2006_v47  ;;  %v2036_v13 = vmax.f32 %v1005_v56, %v1007_v60  ;;  %v2038_v15 = vmin.f32 %v1006_v57, %v1007_v60 }
  0xb4   :  { %v156_v4 = vpop.f32.mrf.mxu0 }
  0xb5   :  { %v1112_v8 = vrot.slane %v2016_v59, 1  ;;  %v2034_v11 = vadd.f32 %v156_v4, %v89_v16  ;;  %v1116_v22 = vrot.slane %v2016_v59, 2  ;;  %v1145_v24 = vperm.slane %v2016_v59, 0 }
  0xb6   :  { %v1120_v25 = vrot.slane %v2016_v59, 3  ;;  %v1152_v27 = vperm.slane %v2016_v59, 1  ;;  %v1161_v16 = vperm.slane %v2016_v59, 2  ;;  %v1170_v28 = vperm.slane %v2016_v59, 3 }
  0xb7   :  { %v1114_v20 = vmax.f32 %v2016_v59, %v1112_v8  ;;  %v1115_v21 = vmin.f32 %v2016_v59, %v1112_v8  ;;  %v1124_v35 = vrot.slane %v2016_v59, 4  ;;  %v1179_v36 = vperm.slane %v2016_v59, 4 }
  0xb8   :  { %v1128_v40 = vrot.slane %v2016_v59, 5  ;;  %v1132_v41 = vrot.slane %v2016_v59, 6  ;;  %v2060_v45 = vmul.f32 %v1145_v24, %v2034_v11  ;;  %v2063_v48 = vmul.f32 %v1152_v27, %v2034_v11 }
  0xb9   :  { %v416_v29 = vpop.f32.mrf.mxu2  ;;  %v1118_v31 = vmax.f32 %v1114_v20, %v1116_v22  ;;  %v1119_v32 = vmin.f32 %v1115_v21, %v1116_v22  ;;  %v1188_v49 = vperm.slane %v2016_v59, 5  ;;  %v2067_v54 = vmul.f32 %v1161_v16, %v2034_v11 }
  0xba   :  { %v2051_v37 = vadd.f32 %v416_v29, %v350_v33  ;;  %v289_v39 = vpop.f32.mrf.mxu1  ;;  %v2070_v55 = vmul.f32 %v1170_v28, %v2034_v11  ;;  %v2076_v60 = vmul.f32 %v1179_v36, %v2034_v11  ;;  %vm1140_vm2 = vcmp.ge.f32.partialorder %v2034_v11, 0.0 }
  0xbb   :  { %v2057_v44 = vadd.f32 %v289_v39, %v1974_v0  ;;  %v1122_v50 = vmax.f32 %v1118_v31, %v1120_v25  ;;  %v1123_v51 = vmin.f32 %v1119_v32, %v1120_v25 }
  0xbc   :  { %v159_v33 = vpop.f32.mrf.mxu0 }
  0xbd   :  { %v1225_v0 = vrot.slane %v2057_v44, 1  ;;  %v2079_v4 = vadd.f32 %v159_v33, %v1972_v62  ;;  %v1229_v8 = vrot.slane %v2057_v44, 2  ;;  %v1233_v25 = vrot.slane %v2057_v44, 3 }
  0xbe   :  { %v1258_v27 = vperm.slane %v2057_v44, 0  ;;  %v1265_v16 = vperm.slane %v2057_v44, 1  ;;  %v1274_v28 = vperm.slane %v2057_v44, 2  ;;  %v1283_v62 = vperm.slane %v2057_v44, 3 }
  0xbf   :  { %v1227_v22 = vmax.f32 %v2057_v44, %v1225_v0  ;;  %v1228_v24 = vmin.f32 %v2057_v44, %v1225_v0  ;;  %v1292_v29 = vperm.slane %v2057_v44, 4  ;;  %v1237_v39 = vrot.slane %v2057_v44, 4 }
  0xc0   :  { %v1301_v33 = vperm.slane %v2057_v44, 5  ;;  %v1241_v21 = vrot.slane %v2057_v44, 5  ;;  %v1245_v20 = vrot.slane %v2057_v44, 6  ;;  %v1249_v57 = vrot.slane %v2057_v44, 7 }
  0xc1   :  { %v419_v31 = vpop.f32.mrf.mxu2  ;;  %v1231_v32 = vmax.f32 %v1227_v22, %v1229_v8  ;;  %v1232_v36 = vmin.f32 %v1228_v24, %v1229_v8  ;;  %v2101_v18 = vmul.f32 %v1258_v27, %v2079_v4  ;;  %v2104_v8 = vmul.f32 %v1265_v16, %v2079_v4 }
  0xc2   :  { %v2095_v0 = vadd.f32 %v419_v31, %v1994_v34  ;;  %v2107_v22 = vmul.f32 %v1274_v28, %v2079_v4  ;;  %v2110_v34 = vmul.f32 %v1283_v62, %v2079_v4  ;;  %v2113_v24 = vmul.f32 %v1292_v29, %v2079_v4 }
  0xc3   :  { %v1235_v56 = vmax.f32 %v1231_v32, %v1233_v25  ;;  %v1236_v5 = vmin.f32 %v1232_v36, %v1233_v25  ;;  %v2116_v31 = vmul.f32 %v1301_v33, %v2079_v4  ;;  %vm1253_vm1 = vcmp.ge.f32.partialorder %v2079_v4, 0.0 }
  0xc4   :  { %v1310_v62 = vperm.slane %v2057_v44, 6  ;;  %v1319_v29 = vperm.slane %v2057_v44, 7  ;;  %v1126_v33 = vmax.f32 %v1122_v50, %v1124_v35  ;;  %v1127_v42 = vmin.f32 %v1123_v51, %v1124_v35 }
  0xc5   :  { %v1239_v32 = vmax.f32 %v1235_v56, %v1237_v39  ;;  %v1240_v25 = vmin.f32 %v1236_v5, %v1237_v39  ;;  %v1298_v5 = vperm.slane %v2095_v0, 4  ;;  %v1307_v56 = vperm.slane %v2095_v0, 5 }
  0xc6   :  { %v1316_v39 = vperm.slane %v2095_v0, 6  ;;  %v1325_v36 = vperm.slane %v2095_v0, 7  ;;  %v1130_v27 = vmax.f32 %v1126_v33, %v1128_v40  ;;  %v1131_v44 = vmin.f32 %v1127_v42, %v1128_v40 }
  0xc7   :  { %v1243_v1 = vmax.f32 %v1239_v32, %v1241_v21  ;;  %v1244_v2 = vmin.f32 %v1240_v25, %v1241_v21  ;;  %v1311_v35 = vmul.f32 %v1310_v62, %v2079_v4  ;;  %v1320_v50 = vmul.f32 %v1319_v29, %v2079_v4 }
  0xc8   :  { %v1197_v51 = vperm.slane %v2016_v59, 6  ;;  %v1206_v21 = vperm.slane %v2016_v59, 7  ;;  %v2146_v40 = vmul.f32 %v1188_v49, %v2034_v11  ;;  %v1203_v49 = vperm.slane %v2051_v37, 6 }
  0xc9   :  { %v1247_v16 = vmax.f32 %v1243_v1, %v1245_v20  ;;  %v1248_v28 = vmin.f32 %v1244_v2, %v1245_v20  ;;  %v1134_v1 = vmax.f32 %v1130_v27, %v1132_v41  ;;  %v1135_v2 = vmin.f32 %v1131_v44, %v1132_v41 }
  0xca   :  { %v1185_v20 = vperm.slane %v2051_v37, 4  ;;  %v2575_v27 = vrot.slane %v2016_v59, 7  ;;  %v2157_v33 = vmul.f32 %v1197_v51, %v2034_v11  ;;  %v1014_v44 = vmin.f32 %v2038_v15, %v1011_v61 }
  0xcb   :  { %v1251_v32 = vmax.f32 %v1247_v16, %v1249_v57  ;;  %v1252_v25 = vmin.f32 %v1248_v28, %v1249_v57  ;;  %v1013_v16 = vmax.f32 %v2036_v13, %v1011_v61  ;;  %v2577_v42 = vrot.slane %v1996_v38, 5 }
  0xcc   :  { %v1138_v62 = vmax.f32 %v1134_v1, %v2575_v27  ;;  %v2576_v41 = vmov %v2575_v27  ;;  %v2168_v59 = vmul.f32 %v1206_v21, %v2034_v11  ;;  %v2580_v21 = vperm.slane %v1996_v38, 2 }
  0xcd   :  { %v1254_v57 = vperm.slane %v1251_v32, 0  ;;  %v1255_v28 = vperm.slane %v1252_v25, 0  ;;  %v1139_v29 = vmin.f32 %v1135_v2, %v2576_v41  ;;  %v1017_v13 = vmax.f32 %v1013_v16, %v2577_v42 }
  0xce   :  { %v1141_v25 = vperm.slane %v1138_v62, 0  ;;  %v2578_v15 = vmov %v2577_v42  ;;  %v2579_v16 = vrot.slane %v1996_v38, 6 }
  0xcf   :  { %v1256_v32 = vsel %vm1253_vm1, %v1254_v57, %v1255_v28  ;;  %v1142_v1 = vperm.slane %v1139_v29, 0  ;;  %v1018_v42 = vmin.f32 %v1014_v44, %v2578_v15  ;;  %v2183_v28 = vmul.f32 %v2580_v21, %v2006_v47 }
  0xd0   :  { %v1257_v51 = vmul.f32 %v1256_v32, %v2079_v4  ;;  %v1021_v57 = vmax.f32 %v1017_v13, %v2579_v16  ;;  %v1054_v13 = vperm.slane %v2025_v6, 2 }
  0xd1   :  { %v1143_v61 = vsel %vm1140_vm2, %v1141_v25, %v1142_v1 }
  0xd2   :  { %v1260_v4 = vsub.f32 %v2101_v18, %v1257_v51  ;;  %v1267_v62 = vsub.f32 %v2104_v8, %v1257_v51  ;;  %v1276_v29 = vsub.f32 %v2107_v22, %v1257_v51  ;;  %v1285_v32 = vsub.f32 %v2110_v34, %v1257_v51 }
  0xd3   :  { %v1294_v25 = vsub.f32 %v2113_v24, %v1257_v51  ;;  %v1303_v44 = vsub.f32 %v2116_v31, %v1257_v51  ;;  %v1312_v1 = vsub.f32 %v1311_v35, %v1257_v51  ;;  %v1144_v21 = vmul.f32 %v1143_v61, %v2034_v11 }
  0xd4   :  { %v1261_v15 = vmul.f32 1.442695, %v1260_v4  ;;  %v1268_v16 = vmul.f32 1.442695, %v1267_v62  ;;  %v1277_v41 = vmul.f32 1.442695, %v1276_v29  ;;  %v1321_v2 = vsub.f32 %v1320_v50, %v1257_v51 }
  0xd5   :  { %v1286_v27 = vmul.f32 1.442695, %v1285_v32  ;;  %v1295_v18 = vmul.f32 1.442695, %v1294_v25  ;;  %v1057_v8 = vperm.slane %v1996_v38, 3  ;;  %v1147_v34 = vsub.f32 %v2060_v45, %v1144_v21 }
  0xd6   :  { %1537 = vpow2.f32 %v1261_v15  ;;  %v1304_v22 = vmul.f32 1.442695, %v1303_v44  ;;  %v2581_v24 = vrot.slane %v1996_v38, 6  ;;  %v1313_v35 = vmul.f32 1.442695, %v1312_v1 }
  0xd7   :  { %1539 = vpow2.f32 %v1268_v16  ;;  %v1154_v4 = vsub.f32 %v2063_v48, %v1144_v21  ;;  %v1163_v62 = vsub.f32 %v2067_v54, %v1144_v21  ;;  %v1172_v11 = vsub.f32 %v2070_v55, %v1144_v21 }
  0xd8   :  { %v1022_v31 = vmin.f32 %v1018_v42, %v2581_v24  ;;  %1541 = vpow2.f32 %v1277_v41  ;;  %v1181_v50 = vsub.f32 %v2076_v60, %v1144_v21  ;;  %v1190_v51 = vsub.f32 %v2146_v40, %v1144_v21 }
  0xd9   :  { %1543 = vpow2.f32 %v1286_v27  ;;  %v1322_v45 = vmul.f32 1.442695, %v1321_v2  ;;  %v1148_v61 = vmul.f32 1.442695, %v1147_v34  ;;  %v1063_v42 = vperm.slane %v2025_v6, 3 }
  0xda   :  { %1545 = vpow2.f32 %v1295_v18  ;;  %v1155_v29 = vmul.f32 1.442695, %v1154_v4  ;;  %v1164_v32 = vmul.f32 1.442695, %v1163_v62  ;;  %v1199_v48 = vsub.f32 %v2157_v33, %v1144_v21 }
  0xdb   :  { %1547 = vpow2.f32 %v1304_v22  ;;  %v1208_v54 = vsub.f32 %v2168_v59, %v1144_v21  ;;  %v2582_v55 = vrot.slane %v1996_v38, 7  ;;  %v1173_v2 = vmul.f32 1.442695, %v1172_v11 }
  0xdc   :  { %v1538_v25 = vpop.eup %1537  ;;  %1549 = vpow2.f32 %v1313_v35  ;;  %v1182_v27 = vmul.f32 1.442695, %v1181_v50  ;;  %v1191_v44 = vmul.f32 1.442695, %v1190_v51  ;;  %v2584_v15 = vperm.slane %v2095_v0, 0 }
  0xdd   :  { %v1025_v60 = vmax.f32 %v1021_v57, %v2582_v55  ;;  %v2583_v40 = vmov %v2582_v55  ;;  %v1540_v1 = vpop.eup %1539  ;;  %1551 = vpow2.f32 %v1322_v45  ;;  %v1066_v18 = vperm.slane %v1996_v38, 4 }
  0xde   :  { %v1026_v41 = vmin.f32 %v1022_v31, %v2583_v40  ;;  %v1264_v16 = vmul.f32 %v1538_v25, %v2584_v15  ;;  %v1542_v59 = vpop.eup %1541  ;;  %v1270_v21 = vadd.f32 %v1540_v1, %v1538_v25  ;;  %v2585_v57 = vperm.slane %v2095_v0, 1 }
  0xdf   :  { %v1028_v33 = vperm.slane %v1025_v60, 0  ;;  %1553 = vpow2.f32 %v1148_v61  ;;  %v1544_v24 = vpop.eup %1543  ;;  %v1200_v31 = vmul.f32 1.442695, %v1199_v48  ;;  %v1209_v35 = vmul.f32 1.442695, %v1208_v54 }
  0xe0   :  { %v1272_v22 = vmul.f32 %v1540_v1, %v2585_v57  ;;  %v1029_v34 = vperm.slane %v1026_v41, 0  ;;  %1555 = vpow2.f32 %v1155_v29  ;;  %v2216_v4 = vmul.f32 %v1057_v8, %v2006_v47  ;;  %v1546_v62 = vpop.eup %1545 }
  0xe1   :  { %v1279_v50 = vadd.f32 %v1542_v59, %v1270_v21  ;;  %v2586_v51 = vperm.slane %v2095_v0, 2  ;;  %1557 = vpow2.f32 %v1164_v32  ;;  %v1548_v55 = vpop.eup %1547  ;;  %v2223_v60 = vmul.f32 %v1066_v18, %v2006_v47 }
  0xe2   :  { %v1273_v11 = vadd.f32 %v1272_v22, %v1264_v16  ;;  %1559 = vpow2.f32 %v1173_v2  ;;  %v1030_v61 = vsel %vm1027_vm3, %v1028_v33, %v1029_v34  ;;  %v1072_v29 = vperm.slane %v2025_v6, 4  ;;  %v1550_v48 = vpop.eup %1549 }
  0xe3   :  { %v1281_v45 = vmul.f32 %v1542_v59, %v2586_v51  ;;  %v1288_v54 = vadd.f32 %v1544_v24, %v1279_v50  ;;  %v2587_v40 = vperm.slane %v2095_v0, 3  ;;  %1561 = vpow2.f32 %v1182_v27  ;;  %v1552_v25 = vpop.eup %1551 }
  0xe4   :  { %v1299_v32 = vmul.f32 %v1546_v62, %v1298_v5  ;;  %1563 = vpow2.f32 %v1191_v44  ;;  %v2231_v2 = vmul.f32 %v1030_v61, %v2006_v47  ;;  %v1075_v1 = vperm.slane %v1996_v38, 5 }
  0xe5   :  { %v1282_v8 = vadd.f32 %v1281_v45, %v1273_v11  ;;  %v1290_v41 = vmul.f32 %v1544_v24, %v2587_v40  ;;  %v1554_v15 = vpop.eup %1553  ;;  %v1297_v33 = vadd.f32 %v1546_v62, %v1288_v54  ;;  %v1308_v18 = vmul.f32 %v1548_v55, %v1307_v56 }
  0xe6   :  { %1565 = vpow2.f32 %v1200_v31  ;;  %v1556_v59 = vpop.eup %1555  ;;  %v2588_v27 = vperm.slane %v2051_v37, 0  ;;  %v1034_v5 = vsub.f32 %v2029_v3, %v2231_v2  ;;  %v1041_v44 = vsub.f32 %v2032_v10, %v2231_v2 }
  0xe7   :  { %v1291_v16 = vadd.f32 %v1290_v41, %v1282_v8  ;;  %1567 = vpow2.f32 %v1209_v35  ;;  %v1558_v57 = vpop.eup %1557  ;;  %v1306_v34 = vadd.f32 %v1548_v55, %v1297_v33  ;;  %v1157_v24 = vadd.f32 %v1556_v59, %v1554_v15 }
  0xe8   :  { %v1151_v21 = vmul.f32 %v1554_v15, %v2588_v27  ;;  %v2589_v62 = vperm.slane %v2051_v37, 1  ;;  %v1560_v56 = vpop.eup %1559  ;;  %v2590_v31 = vperm.slane %v2051_v37, 2  ;;  %v1035_v51 = vmul.f32 1.442695, %v1034_v5 }
  0xe9   :  { %v1300_v22 = vadd.f32 %v1299_v32, %v1291_v16  ;;  %v1042_v45 = vmul.f32 1.442695, %v1041_v44  ;;  %v1050_v35 = vsub.f32 %v2183_v28, %v2231_v2  ;;  %v1562_v3 = vpop.eup %1561  ;;  %v1315_v8 = vadd.f32 %v1550_v48, %v1306_v34 }
  0xea   :  { %v1159_v11 = vmul.f32 %v1556_v59, %v2589_v62  ;;  %v1168_v50 = vmul.f32 %v1558_v57, %v2590_v31  ;;  %v1166_v54 = vadd.f32 %v1558_v57, %v1157_v24  ;;  %v1564_v40 = vpop.eup %1563  ;;  %v1317_v55 = vmul.f32 %v1550_v48, %v1316_v39 }
  0xeb   :  { %v1309_v61 = vadd.f32 %v1308_v18, %v1300_v22  ;;  %1569 = vpow2.f32 %v1035_v51  ;;  %v1051_v41 = vmul.f32 1.442695, %v1050_v35  ;;  %v1076_v32 = vmul.f32 %v1075_v1, %v2006_v47 }
  0xec   :  { %v1160_v10 = vadd.f32 %v1159_v11, %v1151_v21  ;;  %v1566_v15 = vpop.eup %1565  ;;  %v1324_v16 = vadd.f32 %v1552_v25, %v1315_v8  ;;  %v1175_v59 = vadd.f32 %v1560_v56, %v1166_v54  ;;  %v2591_v27 = vperm.slane %v2051_v37, 3 }
  0xed   :  { %v1568_v5 = vpop.eup %1567  ;;  %v1318_v18 = vadd.f32 %v1317_v55, %v1309_v61  ;;  %v1326_v21 = vmul.f32 %v1552_v25, %v1325_v36  ;;  %1571 = vpow2.f32 %v1042_v45  ;;  %v1059_v39 = vsub.f32 %v2216_v4, %v2231_v2 }
  0xee   :  { %v1169_v33 = vadd.f32 %v1168_v50, %v1160_v10  ;;  %v1177_v28 = vmul.f32 %v1560_v56, %v2591_v27  ;;  %1573 = vrcp.f32 %v1324_v16  ;;  %v1184_v44 = vadd.f32 %v1562_v3, %v1175_v59 }
  0xef   :  { %v1186_v1 = vmul.f32 %v1562_v3, %v1185_v20  ;;  %v2592_v57 = vperm.slane %v2051_v37, 5  ;;  %1575 = vpow2.f32 %v1051_v41  ;;  %v1060_v34 = vmul.f32 1.442695, %v1059_v39 }
  0xf0   :  { %v1178_v48 = vadd.f32 %v1177_v28, %v1169_v33  ;;  %v1068_v24 = vsub.f32 %v2223_v60, %v2231_v2  ;;  %v1193_v36 = vadd.f32 %v1564_v40, %v1184_v44  ;;  %v1204_v25 = vmul.f32 %v1566_v15, %v1203_v49 }
  0xf1   :  { %v1195_v22 = vmul.f32 %v1564_v40, %v2592_v57  ;;  %v1077_v4 = vsub.f32 %v1076_v32, %v2231_v2  ;;  %v1570_v62 = vpop.eup %1569  ;;  %v1327_v11 = vadd.f32 %v1326_v21, %v1318_v18  ;;  %1577 = vpow2.f32 %v1060_v34 }
  0xf2   :  { %v1187_v0 = vadd.f32 %v1186_v1, %v1178_v48  ;;  %v1069_v56 = vmul.f32 1.442695, %v1068_v24  ;;  %v1084_v20 = vperm.slane %v1996_v38, 6  ;;  %v1202_v31 = vadd.f32 %v1566_v15, %v1193_v36 }
  0xf3   :  { %v2593_v50 = vperm.slane %v2051_v37, 7  ;;  %v2594_v45 = vperm.slane %v2025_v6, 0  ;;  %v1078_v35 = vmul.f32 1.442695, %v1077_v4  ;;  %v1572_v3 = vpop.eup %1571  ;;  %v1081_v49 = vperm.slane %v2025_v6, 5 }
  0xf4   :  { %1579 = vpow2.f32 %v1069_v56  ;;  %v1085_v61 = vmul.f32 %v1084_v20, %v2006_v47  ;;  %v1093_v8 = vperm.slane %v1996_v38, 7  ;;  %v1574_v10 = vpop.eup %1573  ;;  %v1196_v54 = vadd.f32 %v1195_v22, %v1187_v0 }
  0xf5   :  { %v1213_v51 = vmul.f32 %v1568_v5, %v2593_v50  ;;  %v1038_v60 = vmul.f32 %v1570_v62, %v2594_v45  ;;  %v1211_v40 = vadd.f32 %v1568_v5, %v1202_v31  ;;  %v1044_v55 = vadd.f32 %v1572_v3, %v1570_v62  ;;  %v1576_v32 = vpop.eup %1575 }
  0xf6   :  { %v2595_v41 = vperm.slane %v2025_v6, 1  ;;  %v1329_v15 = vmul.f32 %v1574_v10, %v1324_v16  ;;  %1581 = vpow2.f32 %v1078_v35  ;;  %v1086_v33 = vsub.f32 %v1085_v61, %v2231_v2 }
  0xf7   :  { %v1094_v59 = vmul.f32 %v1093_v8, %v2006_v47  ;;  %1583 = vrcp.f32 %v1211_v40  ;;  %v1053_v28 = vadd.f32 %v1576_v32, %v1044_v55  ;;  %v1090_v18 = vperm.slane %v2025_v6, 6  ;;  %v1578_v38 = vpop.eup %1577 }
  0xf8   :  { %v1046_v37 = vmul.f32 %v1572_v3, %v2595_v41  ;;  %v1330_v21 = vsub.f32 2.0, %v1329_v15  ;;  %v1055_v5 = vmul.f32 %v1576_v32, %v1054_v13  ;;  %v1087_v39 = vmul.f32 1.442695, %v1086_v33 }
  0xf9   :  { %v1095_v48 = vsub.f32 %v1094_v59, %v2231_v2  ;;  %v1205_v44 = vadd.f32 %v1204_v25, %v1196_v54  ;;  %v1062_v16 = vadd.f32 %v1578_v38, %v1053_v28  ;;  %v1064_v1 = vmul.f32 %v1578_v38, %v1063_v42 }
  0xfa   :  { %v1047_v27 = vadd.f32 %v1046_v37, %v1038_v60  ;;  %v886_v47 = vrot.slane %v2012_v53, 1  ;;  %v1580_v57 = vpop.eup %1579  ;;  %v1331_v22 = vmul.f32 %v1574_v10, %v1330_v21  ;;  %1585 = vpow2.f32 %v1087_v39 }
  0xfb   :  { %v1096_v24 = vmul.f32 1.442695, %v1095_v48  ;;  %v1071_v0 = vadd.f32 %v1580_v57, %v1062_v16  ;;  %v890_v4 = vrot.slane %v2012_v53, 2  ;;  %v1073_v42 = vmul.f32 %v1580_v57, %v1072_v29 }
  0xfc   :  { %v1056_v34 = vadd.f32 %v1055_v5, %v1047_v27  ;;  %v888_v36 = vmax.f32 %v2012_v53, %v886_v47  ;;  %v889_v13 = vmin.f32 %v2012_v53, %v886_v47  ;;  %v1582_v2 = vpop.eup %1581  ;;  %v1332_v25 = vmul.f32 %v1331_v22, %v1327_v11 }
  0xfd   :  { %1587 = vpow2.f32 %v1096_v24  ;;  %v1584_v56 = vpop.eup %1583  ;;  %v1080_v20 = vadd.f32 %v1582_v2, %v1071_v0  ;;  %v894_v45 = vrot.slane %v2012_v53, 3  ;;  %v1082_v3 = vmul.f32 %v1582_v2, %v1081_v49 }
  0xfe   :  { %v1065_v62 = vadd.f32 %v1064_v1, %v1056_v34  ;;  %v892_v31 = vmax.f32 %v888_v36, %v890_v4  ;;  %v893_v50 = vmin.f32 %v889_v13, %v890_v4  ;;  %1431 = vmatpush.msrb.mxu0 %v1332_v25  ;;  %1522 = vmatpush.msra.mxu3 %v1332_v25  ;;  %v1099_v61 = vperm.slane %v2025_v6, 7 }
  0xff   :  { %v1216_v60 = vmul.f32 %v1584_v56, %v1211_v40  ;;  %v1214_v8 = vadd.f32 %v1213_v51, %v1205_v44  ;;  %v898_v54 = vrot.slane %v2012_v53, 4  ;;  %v902_v37 = vrot.slane %v2012_v53, 5 }
 0x100   :  { %v1074_v35 = vadd.f32 %v1073_v42, %v1065_v62  ;;  %v896_v11 = vmax.f32 %v892_v31, %v894_v45  ;;  %v897_v10 = vmin.f32 %v893_v50, %v894_v45  ;;  %v1586_v29 = vpop.eup %1585  ;;  %v919_v32 = vperm.slane %v2012_v53, 0 }
 0x101   :  { %v1217_v55 = vsub.f32 2.0, %v1216_v60  ;;  %v1089_v15 = vadd.f32 %v1586_v29, %v1080_v20  ;;  %v1091_v33 = vmul.f32 %v1586_v29, %v1090_v18  ;;  %v906_v6 = vrot.slane %v2012_v53, 6 }
 0x102   :  { %v1083_v41 = vadd.f32 %v1082_v3, %v1074_v35  ;;  %v900_v59 = vmax.f32 %v896_v11, %v898_v54  ;;  %v901_v40 = vmin.f32 %v897_v10, %v898_v54  ;;  %v920_v51 = vmul.f32 %v919_v32, %v2010_v52 }
 0x103   :  { %v1588_v27 = vpop.eup %1587  ;;  %v1218_v49 = vmul.f32 %v1584_v56, %v1217_v55  ;;  %v926_v28 = vperm.slane %v2012_v53, 1  ;;  %v910_v39 = vrot.slane %v2012_v53, 7  ;;  %v935_v47 = vperm.slane %v2012_v53, 2 }
 0x104   :  { %v1092_v38 = vadd.f32 %v1091_v33, %v1083_v41  ;;  %v1098_v21 = vadd.f32 %v1588_v27, %v1089_v15  ;;  %v904_v5 = vmax.f32 %v900_v59, %v902_v37  ;;  %v905_v44 = vmin.f32 %v901_v40, %v902_v37 }
 0x105   :  { %v1219_v48 = vmul.f32 %v1218_v49, %v1214_v8  ;;  %v927_v18 = vmul.f32 %v926_v28, %v2010_v52  ;;  %v1100_v16 = vmul.f32 %v1588_v27, %v1099_v61  ;;  %v924_v22 = vperm.slane %v2014_v58, 0 }
 0x106   :  { %1589 = vrcp.f32 %v1098_v21  ;;  %v908_v1 = vmax.f32 %v904_v5, %v906_v6  ;;  %v909_v57 = vmin.f32 %v905_v44, %v906_v6  ;;  %v932_v34 = vperm.slane %v2014_v58, 1 }
 0x107   :  { %1432 = vmatpush.msrb.mxu0 %v1219_v48  ;;  %1523 = vmatpush.msra.mxu3 %v1219_v48  ;;  %v944_v24 = vperm.slane %v2012_v53, 3  ;;  %v1101_v0 = vadd.f32 %v1100_v16, %v1092_v38  ;;  %v936_v13 = vmul.f32 %v935_v47, %v2010_v52  ;;  %v953_v4 = vperm.slane %v2012_v53, 4 }
 0x108   :  { %v912_v36 = vmax.f32 %v908_v1, %v910_v39  ;;  %v913_v2 = vmin.f32 %v909_v57, %v910_v39  ;;  %v941_v25 = vperm.slane %v2014_v58, 2  ;;  %v962_v42 = vperm.slane %v2012_v53, 5 }
 0x109   :  { %v945_v62 = vmul.f32 %v944_v24, %v2010_v52  ;;  %v950_v20 = vperm.slane %v2014_v58, 3  ;;  %v954_v31 = vmul.f32 %v953_v4, %v2010_v52  ;;  %v971_v50 = vperm.slane %v2012_v53, 6 }
 0x10a   :  { %v915_v56 = vperm.slane %v912_v36, 0  ;;  %v916_v45 = vperm.slane %v913_v2, 0  ;;  %v959_v60 = vperm.slane %v2014_v58, 4  ;;  %v963_v35 = vmul.f32 %v962_v42, %v2010_v52 }
 0x10b   :  { %v980_v3 = vperm.slane %v2012_v53, 7  ;;  %v968_v8 = vperm.slane %v2014_v58, 5  ;;  %v972_v11 = vmul.f32 %v971_v50, %v2010_v52  ;;  %v977_v10 = vperm.slane %v2014_v58, 6 }
 0x10c   :  { %v1590_v61 = vpop.eup %1589  ;;  %v773_v54 = vrot.slane %v1990_v26, 1  ;;  %v917_v55 = vsel %vm914_vm4, %v915_v56, %v916_v45  ;;  %v986_v37 = vperm.slane %v2014_v58, 7  ;;  %v777_v53 = vrot.slane %v1990_v26, 2 }
 0x10d   :  { %v1103_v29 = vmul.f32 %v1590_v61, %v1098_v21  ;;  %v981_v41 = vmul.f32 %v980_v3, %v2010_v52  ;;  %v918_v32 = vmul.f32 %v917_v55, %v2010_v52  ;;  %v781_v15 = vrot.slane %v1990_v26, 3 }
 0x10e   :  { %v785_v33 = vrot.slane %v1990_v26, 4  ;;  %v775_v40 = vmax.f32 %v1990_v26, %v773_v54  ;;  %v776_v27 = vmin.f32 %v1990_v26, %v773_v54  ;;  %v789_v49 = vrot.slane %v1990_v26, 5 }
 0x10f   :  { %v1104_v59 = vsub.f32 2.0, %v1103_v29  ;;  %v921_v6 = vsub.f32 %v920_v51, %v918_v32  ;;  %v928_v28 = vsub.f32 %v927_v18, %v918_v32  ;;  %v937_v38 = vsub.f32 %v936_v13, %v918_v32 }
 0x110   :  { %v946_v21 = vsub.f32 %v945_v62, %v918_v32  ;;  %v955_v39 = vsub.f32 %v954_v31, %v918_v32  ;;  %v964_v52 = vsub.f32 %v963_v35, %v918_v32  ;;  %v973_v48 = vsub.f32 %v972_v11, %v918_v32 }
 0x111   :  { %v1105_v5 = vmul.f32 %v1590_v61, %v1104_v59  ;;  %v922_v44 = vmul.f32 1.442695, %v921_v6  ;;  %v929_v16 = vmul.f32 1.442695, %v928_v28  ;;  %v938_v1 = vmul.f32 1.442695, %v937_v38 }
 0x112   :  { %v982_v47 = vsub.f32 %v981_v41, %v918_v32  ;;  %v947_v24 = vmul.f32 1.442695, %v946_v21  ;;  %v793_v36 = vrot.slane %v1990_v26, 6  ;;  %v797_v4 = vrot.slane %v1990_v26, 7 }
 0x113   :  { %v1106_v57 = vmul.f32 %v1105_v5, %v1101_v0  ;;  %1591 = vpow2.f32 %v922_v44  ;;  %v956_v2 = vmul.f32 1.442695, %v955_v39  ;;  %v965_v51 = vmul.f32 1.442695, %v964_v52 }
 0x114   :  { %v779_v18 = vmax.f32 %v775_v40, %v777_v53  ;;  %1593 = vpow2.f32 %v929_v16  ;;  %v974_v13 = vmul.f32 1.442695, %v973_v48  ;;  %v780_v62 = vmin.f32 %v776_v27, %v777_v53 }
 0x115   :  { %1433 = vmatpush.msrb.mxu0 %v1106_v57  ;;  %1524 = vmatpush.msra.mxu3 %v1106_v57  ;;  %v806_v42 = vperm.slane %v1990_v26, 0  ;;  %1595 = vpow2.f32 %v938_v1  ;;  %v983_v56 = vmul.f32 1.442695, %v982_v47  ;;  %v813_v0 = vperm.slane %v1990_v26, 1 }
 0x116   :  { %v783_v31 = vmax.f32 %v779_v18, %v781_v15  ;;  %1597 = vpow2.f32 %v947_v24  ;;  %v784_v50 = vmin.f32 %v780_v62, %v781_v15  ;;  %v822_v35 = vperm.slane %v1990_v26, 2 }
 0x117   :  { %v2336_v45 = vmul.f32 %v806_v42, %v2001_v43  ;;  %1599 = vpow2.f32 %v956_v2  ;;  %v2341_v61 = vmul.f32 %v813_v0, %v2001_v43  ;;  %v831_v29 = vperm.slane %v1990_v26, 3 }
 0x118   :  { %v787_v3 = vmax.f32 %v783_v31, %v785_v33  ;;  %1601 = vpow2.f32 %v965_v51  ;;  %v788_v11 = vmin.f32 %v784_v50, %v785_v33  ;;  %v2344_v54 = vmul.f32 %v822_v35, %v2001_v43 }
 0x119   :  { %v1592_v55 = vpop.eup %1591  ;;  %1603 = vpow2.f32 %v974_v13  ;;  %v811_v32 = vperm.slane %v2004_v46, 0  ;;  %v840_v53 = vperm.slane %v1990_v26, 4  ;;  %v2352_v33 = vmul.f32 %v831_v29, %v2001_v43 }
 0x11a   :  { %v791_v41 = vmax.f32 %v787_v3, %v789_v49  ;;  %v1594_v15 = vpop.eup %1593  ;;  %v925_v59 = vmul.f32 %v1592_v55, %v924_v22  ;;  %1605 = vpow2.f32 %v983_v56  ;;  %v792_v40 = vmin.f32 %v788_v11, %v789_v49 }
 0x11b   :  { %v1596_v27 = vpop.eup %1595  ;;  %v931_v6 = vadd.f32 %v1594_v15, %v1592_v55  ;;  %v933_v28 = vmul.f32 %v1594_v15, %v932_v34  ;;  %v2357_v21 = vmul.f32 %v840_v53, %v2001_v43  ;;  %v819_v22 = vperm.slane %v2004_v46, 1 }
 0x11c   :  { %v795_v38 = vmax.f32 %v791_v41, %v793_v36  ;;  %v1598_v5 = vpop.eup %1597  ;;  %v942_v39 = vmul.f32 %v1596_v27, %v941_v25  ;;  %v796_v52 = vmin.f32 %v792_v40, %v793_v36  ;;  %v849_v49 = vperm.slane %v1990_v26, 5 }
 0x11d   :  { %v1600_v48 = vpop.eup %1599  ;;  %v934_v44 = vadd.f32 %v933_v28, %v925_v59  ;;  %v940_v16 = vadd.f32 %v1596_v27, %v931_v6  ;;  %v951_v1 = vmul.f32 %v1598_v5, %v950_v20  ;;  %v828_v2 = vperm.slane %v2004_v46, 2 }
 0x11e   :  { %v799_v34 = vmax.f32 %v795_v38, %v797_v4  ;;  %v1602_v47 = vpop.eup %1601  ;;  %v960_v57 = vmul.f32 %v1600_v48, %v959_v60  ;;  %v800_v24 = vmin.f32 %v796_v52, %v797_v4  ;;  %v850_v25 = vmul.f32 %v849_v49, %v2001_v43 }
 0x11f   :  { %v1604_v36 = vpop.eup %1603  ;;  %v943_v51 = vadd.f32 %v942_v39, %v934_v44  ;;  %v949_v18 = vadd.f32 %v1598_v5, %v940_v16  ;;  %v969_v13 = vmul.f32 %v1602_v47, %v968_v8  ;;  %v837_v31 = vperm.slane %v2004_v46, 3 }
 0x120   :  { %v802_v62 = vperm.slane %v799_v34, 0  ;;  %v1606_v42 = vpop.eup %1605  ;;  %v978_v20 = vmul.f32 %v1604_v36, %v977_v10  ;;  %v803_v56 = vperm.slane %v800_v24, 0  ;;  %v858_v60 = vperm.slane %v1990_v26, 6 }
 0x121   :  { %v952_v4 = vadd.f32 %v951_v1, %v943_v51  ;;  %v958_v0 = vadd.f32 %v1600_v48, %v949_v18  ;;  %v987_v50 = vmul.f32 %v1606_v42, %v986_v37  ;;  %v867_v35 = vperm.slane %v1990_v26, 7 }
 0x122   :  { %v804_v8 = vsel %vm801_vm5, %v802_v62, %v803_v56  ;;  %v846_v3 = vperm.slane %v2004_v46, 4  ;;  %v859_v11 = vmul.f32 %v858_v60, %v2001_v43  ;;  %v660_v10 = vrot.slane %v1986_v19, 1 }
 0x123   :  { %v961_v29 = vadd.f32 %v960_v57, %v952_v4  ;;  %v967_v55 = vadd.f32 %v1602_v47, %v958_v0  ;;  %v805_v41 = vmul.f32 %v804_v8, %v2001_v43  ;;  %v868_v53 = vmul.f32 %v867_v35, %v2001_v43 }
 0x124   :  { %v855_v58 = vperm.slane %v2004_v46, 5  ;;  %v864_v37 = vperm.slane %v2004_v46, 6  ;;  %v662_v26 = vmax.f32 %v1986_v19, %v660_v10  ;;  %v663_v15 = vmin.f32 %v1986_v19, %v660_v10 }
 0x125   :  { %v970_v59 = vadd.f32 %v969_v13, %v961_v29  ;;  %v976_v40 = vadd.f32 %v1604_v36, %v967_v55  ;;  %v808_v27 = vsub.f32 %v2336_v45, %v805_v41  ;;  %v815_v6 = vsub.f32 %v2341_v61, %v805_v41 }
 0x126   :  { %v824_v28 = vsub.f32 %v2344_v54, %v805_v41  ;;  %v833_v38 = vsub.f32 %v2352_v33, %v805_v41  ;;  %v842_v43 = vsub.f32 %v2357_v21, %v805_v41  ;;  %v851_v5 = vsub.f32 %v850_v25, %v805_v41 }
 0x127   :  { %v979_v39 = vadd.f32 %v978_v20, %v970_v59  ;;  %v985_v52 = vadd.f32 %v1606_v42, %v976_v40  ;;  %v809_v49 = vmul.f32 1.442695, %v808_v27  ;;  %v816_v48 = vmul.f32 1.442695, %v815_v6 }
 0x128   :  { %v825_v44 = vmul.f32 1.442695, %v824_v28  ;;  %v860_v16 = vsub.f32 %v859_v11, %v805_v41  ;;  %v664_v1 = vrot.slane %v1986_v19, 2  ;;  %v668_v34 = vrot.slane %v1986_v19, 3 }
 0x129   :  { %v988_v45 = vadd.f32 %v987_v50, %v979_v39  ;;  %1607 = vrcp.f32 %v985_v52  ;;  %v834_v61 = vmul.f32 1.442695, %v833_v38  ;;  %v869_v47 = vsub.f32 %v868_v53, %v805_v41 }
 0x12a   :  { %1609 = vpow2.f32 %v809_v49  ;;  %v843_v54 = vmul.f32 1.442695, %v842_v43  ;;  %v666_v33 = vmax.f32 %v662_v26, %v664_v1  ;;  %v667_v57 = vmin.f32 %v663_v15, %v664_v1 }
 0x12b   :  { %1611 = vpow2.f32 %v816_v48  ;;  %v852_v21 = vmul.f32 1.442695, %v851_v5  ;;  %v861_v24 = vmul.f32 1.442695, %v860_v16  ;;  %v873_v25 = vperm.slane %v2004_v46, 7 }
 0x12c   :  { %1613 = vpow2.f32 %v825_v44  ;;  %v670_v36 = vmax.f32 %v666_v33, %v668_v34  ;;  %v671_v51 = vmin.f32 %v667_v57, %v668_v34  ;;  %v672_v18 = vrot.slane %v1986_v19, 4 }
 0x12d   :  { %1615 = vpow2.f32 %v834_v61  ;;  %v870_v13 = vmul.f32 1.442695, %v869_v47  ;;  %v676_v62 = vrot.slane %v1986_v19, 5  ;;  %v693_v42 = vperm.slane %v1986_v19, 0 }
 0x12e   :  { %1617 = vpow2.f32 %v843_v54  ;;  %v674_v20 = vmax.f32 %v670_v36, %v672_v18  ;;  %v675_v56 = vmin.f32 %v671_v51, %v672_v18  ;;  %v680_v60 = vrot.slane %v1986_v19, 6 }
 0x12f   :  { %v1608_v4 = vpop.eup %1607  ;;  %1619 = vpow2.f32 %v852_v21  ;;  %v684_v0 = vrot.slane %v1986_v19, 7  ;;  %v2403_v50 = vmul.f32 %v693_v42, %v1988_v23  ;;  %v700_v35 = vperm.slane %v1986_v19, 1 }
 0x130   :  { %v1610_v8 = vpop.eup %1609  ;;  %v990_v11 = vmul.f32 %v1608_v4, %v985_v52  ;;  %1621 = vpow2.f32 %v861_v24  ;;  %v678_v10 = vmax.f32 %v674_v20, %v676_v62  ;;  %v679_v29 = vmin.f32 %v675_v56, %v676_v62 }
 0x131   :  { %v1612_v55 = vpop.eup %1611  ;;  %v812_v41 = vmul.f32 %v1610_v8, %v811_v32  ;;  %1623 = vpow2.f32 %v870_v13  ;;  %v701_v53 = vmul.f32 %v700_v35, %v1988_v23  ;;  %v709_v26 = vperm.slane %v1986_v19, 2 }
 0x132   :  { %v1614_v15 = vpop.eup %1613  ;;  %v991_v59 = vsub.f32 2.0, %v990_v11  ;;  %v818_v40 = vadd.f32 %v1612_v55, %v1610_v8  ;;  %v820_v27 = vmul.f32 %v1612_v55, %v819_v22  ;;  %v682_v6 = vmax.f32 %v678_v10, %v680_v60 }
 0x133   :  { %v1616_v28 = vpop.eup %1615  ;;  %v829_v38 = vmul.f32 %v1614_v15, %v828_v2  ;;  %v683_v43 = vmin.f32 %v679_v29, %v680_v60  ;;  %v710_v32 = vmul.f32 %v709_v26, %v1988_v23  ;;  %v718_v2 = vperm.slane %v1986_v19, 3 }
 0x134   :  { %v1618_v5 = vpop.eup %1617  ;;  %v992_v39 = vmul.f32 %v1608_v4, %v991_v59  ;;  %v821_v52 = vadd.f32 %v820_v27, %v812_v41  ;;  %v827_v49 = vadd.f32 %v1614_v15, %v818_v40  ;;  %v838_v48 = vmul.f32 %v1616_v28, %v837_v31 }
 0x135   :  { %v1620_v44 = vpop.eup %1619  ;;  %v847_v22 = vmul.f32 %v1618_v5, %v846_v3  ;;  %v686_v16 = vmax.f32 %v682_v6, %v684_v0  ;;  %v687_v1 = vmin.f32 %v683_v43, %v684_v0  ;;  %v719_v36 = vmul.f32 %v718_v2, %v1988_v23 }
 0x136   :  { %v1622_v34 = vpop.eup %1621  ;;  %v993_v61 = vmul.f32 %v992_v39, %v988_v45  ;;  %v830_v47 = vadd.f32 %v829_v38, %v821_v52  ;;  %v836_v54 = vadd.f32 %v1616_v28, %v827_v49  ;;  %v856_v33 = vmul.f32 %v1620_v44, %v855_v58 }
 0x137   :  { %v1624_v57 = vpop.eup %1623  ;;  %v865_v21 = vmul.f32 %v1622_v34, %v864_v37  ;;  %v689_v31 = vperm.slane %v686_v16, 0  ;;  %v690_v24 = vperm.slane %v687_v1, 0  ;;  %v698_v45 = vperm.slane %v2020_v63, 0 }
 0x138   :  { %1434 = vmatpush.msrb.mxu0 %v993_v61  ;;  %1525 = vmatpush.msra.mxu3 %v993_v61  ;;  %v839_v3 = vadd.f32 %v838_v48, %v830_v47  ;;  %v845_v51 = vadd.f32 %v1618_v5, %v836_v54  ;;  %v874_v18 = vmul.f32 %v1624_v57, %v873_v25  ;;  %v706_v58 = vperm.slane %v2020_v63, 1 }
 0x139   :  { %v691_v13 = vsel %vm688_vm6, %v689_v31, %v690_v24  ;;  %v727_v62 = vperm.slane %v1986_v19, 4  ;;  %v736_v46 = vperm.slane %v1986_v19, 5  ;;  %v715_v56 = vperm.slane %v2020_v63, 2 }
 0x13a   :  { %v848_v37 = vadd.f32 %v847_v22, %v839_v3  ;;  %v854_v42 = vadd.f32 %v1620_v44, %v845_v51  ;;  %v692_v20 = vmul.f32 %v691_v13, %v1988_v23  ;;  %v724_v60 = vperm.slane %v2020_v63, 3 }
 0x13b   :  { %v728_v25 = vmul.f32 %v727_v62, %v1988_v23  ;;  %v737_v4 = vmul.f32 %v736_v46, %v1988_v23  ;;  %v745_v0 = vperm.slane %v1986_v19, 6  ;;  %v733_v28 = vperm.slane %v2020_v63, 4 }
 0x13c   :  { %v857_v35 = vadd.f32 %v856_v33, %v848_v37  ;;  %v863_v8 = vadd.f32 %v1622_v34, %v854_v42  ;;  %v695_v11 = vsub.f32 %v2403_v50, %v692_v20  ;;  %v702_v10 = vsub.f32 %v701_v53, %v692_v20 }
 0x13d   :  { %v711_v29 = vsub.f32 %v710_v32, %v692_v20  ;;  %v720_v55 = vsub.f32 %v719_v36, %v692_v20  ;;  %v729_v41 = vsub.f32 %v728_v25, %v692_v20  ;;  %v738_v26 = vsub.f32 %v737_v4, %v692_v20 }
 0x13e   :  { %v866_v15 = vadd.f32 %v865_v21, %v857_v35  ;;  %v872_v59 = vadd.f32 %v1624_v57, %v863_v8  ;;  %v696_v40 = vmul.f32 1.442695, %v695_v11  ;;  %v703_v27 = vmul.f32 1.442695, %v702_v10 }
 0x13f   :  { %v712_v6 = vmul.f32 1.442695, %v711_v29  ;;  %v742_v38 = vperm.slane %v2020_v63, 5  ;;  %v746_v43 = vmul.f32 %v745_v0, %v1988_v23  ;;  %v721_v39 = vmul.f32 1.442695, %v720_v55 }
 0x140   :  { %v875_v5 = vadd.f32 %v874_v18, %v866_v15  ;;  %1625 = vrcp.f32 %v872_v59  ;;  %v754_v50 = vperm.slane %v1986_v19, 7  ;;  %v730_v53 = vmul.f32 1.442695, %v729_v41 }
 0x141   :  { %1627 = vpow2.f32 %v696_v40  ;;  %v747_v32 = vsub.f32 %v746_v43, %v692_v20  ;;  %v547_v52 = vrot.slane %v1980_v12, 1  ;;  %v739_v49 = vmul.f32 1.442695, %v738_v26 }
 0x142   :  { %1629 = vpow2.f32 %v703_v27  ;;  %v755_v48 = vmul.f32 %v754_v50, %v1988_v23  ;;  %v551_v44 = vrot.slane %v1980_v12, 2  ;;  %v751_v19 = vperm.slane %v2020_v63, 6  ;;  %v325_v27 = vpop.permute.xlu1 %324 }
 0x143   :  { %1631 = vpow2.f32 %v712_v6  ;;  %v748_v22 = vmul.f32 1.442695, %v747_v32  ;;  %v549_v16 = vmax.f32 %v1980_v12, %v547_v52  ;;  %v550_v1 = vmin.f32 %v1980_v12, %v547_v52 }
 0x144   :  { %1633 = vpow2.f32 %v721_v39  ;;  %v756_v2 = vsub.f32 %v755_v48, %v692_v20  ;;  %v760_v34 = vperm.slane %v2020_v63, 7  ;;  %v555_v54 = vrot.slane %v1980_v12, 3 }
 0x145   :  { %1635 = vpow2.f32 %v730_v53  ;;  %v553_v61 = vmax.f32 %v549_v16, %v551_v44  ;;  %v554_v47 = vmin.f32 %v550_v1, %v551_v44  ;;  %v559_v57 = vrot.slane %v1980_v12, 4 }
 0x146   :  { %v1626_v23 = vpop.eup %1625  ;;  %1637 = vpow2.f32 %v739_v49  ;;  %v757_v33 = vmul.f32 1.442695, %v756_v2  ;;  %v563_v21 = vrot.slane %v1980_v12, 5  ;;  %v567_v13 = vrot.slane %v1980_v12, 6 }
 0x147   :  { %v1628_v31 = vpop.eup %1627  ;;  %v877_v24 = vmul.f32 %v1626_v23, %v872_v59  ;;  %1639 = vpow2.f32 %v748_v22  ;;  %v557_v36 = vmax.f32 %v553_v61, %v555_v54  ;;  %v558_v3 = vmin.f32 %v554_v47, %v555_v54 }
 0x148   :  { %v1630_v51 = vpop.eup %1629  ;;  %v699_v18 = vmul.f32 %v1628_v31, %v698_v45  ;;  %1641 = vpow2.f32 %v757_v33  ;;  %v580_v62 = vperm.slane %v1980_v12, 0  ;;  %v587_v45 = vperm.slane %v1980_v12, 1 }
 0x149   :  { %v1632_v46 = vpop.eup %1631  ;;  %v878_v37 = vsub.f32 2.0, %v877_v24  ;;  %v705_v42 = vadd.f32 %v1630_v51, %v1628_v31  ;;  %v707_v20 = vmul.f32 %v1630_v51, %v706_v58  ;;  %v561_v25 = vmax.f32 %v557_v36, %v559_v57 }
 0x14a   :  { %v1634_v4 = vpop.eup %1633  ;;  %v716_v0 = vmul.f32 %v1632_v46, %v715_v56  ;;  %v562_v35 = vmin.f32 %v558_v3, %v559_v57  ;;  %v2462_v8 = vmul.f32 %v580_v62, %v1982_v14  ;;  %v588_v40 = vmul.f32 %v587_v45, %v1982_v14 }
 0x14b   :  { %v1636_v11 = vpop.eup %1635  ;;  %v879_v10 = vmul.f32 %v1626_v23, %v878_v37  ;;  %v708_v29 = vadd.f32 %v707_v20, %v699_v18  ;;  %v714_v55 = vadd.f32 %v1632_v46, %v705_v42  ;;  %v725_v41 = vmul.f32 %v1634_v4, %v724_v60 }
 0x14c   :  { %v1638_v26 = vpop.eup %1637  ;;  %v734_v58 = vmul.f32 %v1636_v11, %v733_v28  ;;  %v565_v15 = vmax.f32 %v561_v25, %v563_v21  ;;  %v566_v59 = vmin.f32 %v562_v35, %v563_v21  ;;  %v571_v60 = vrot.slane %v1980_v12, 7 }
 0x14d   :  { %v1640_v56 = vpop.eup %1639  ;;  %v880_v6 = vmul.f32 %v879_v10, %v875_v5  ;;  %v717_v43 = vadd.f32 %v716_v0, %v708_v29  ;;  %v723_v39 = vadd.f32 %v1634_v4, %v714_v55  ;;  %v743_v50 = vmul.f32 %v1638_v26, %v742_v38 }
 0x14e   :  { %v1642_v53 = vpop.eup %1641  ;;  %v752_v32 = vmul.f32 %v1640_v56, %v751_v19  ;;  %v569_v52 = vmax.f32 %v565_v15, %v567_v13  ;;  %v570_v49 = vmin.f32 %v566_v59, %v567_v13  ;;  %v596_v22 = vperm.slane %v1980_v12, 2 }
 0x14f   :  { %1435 = vmatpush.msrb.mxu0 %v880_v6  ;;  %1526 = vmatpush.msra.mxu3 %v880_v6  ;;  %v726_v28 = vadd.f32 %v725_v41, %v717_v43  ;;  %v732_v48 = vadd.f32 %v1636_v11, %v723_v39  ;;  %v761_v44 = vmul.f32 %v1642_v53, %v760_v34  ;;  %v605_v63 = vperm.slane %v1980_v12, 3 }
 0x150   :  { %v2473_v5 = vadd.f32 %v1984_v17, %v325_v27  ;;  %v573_v16 = vmax.f32 %v569_v52, %v571_v60  ;;  %v574_v1 = vmin.f32 %v570_v49, %v571_v60  ;;  %v597_v2 = vmul.f32 %v596_v22, %v1982_v14 }
 0x151   :  { %v735_v38 = vadd.f32 %v734_v58, %v726_v28  ;;  %v741_v19 = vadd.f32 %v1638_v26, %v732_v48  ;;  %v606_v54 = vmul.f32 %v605_v63, %v1982_v14  ;;  %v614_v34 = vperm.slane %v1980_v12, 4 }
 0x152   :  { %v576_v61 = vperm.slane %v573_v16, 0  ;;  %v577_v47 = vperm.slane %v574_v1, 0  ;;  %v623_v17 = vperm.slane %v1980_v12, 5  ;;  %v585_v21 = vperm.slane %v2473_v5, 0 }
 0x153   :  { %v744_v23 = vadd.f32 %v743_v50, %v735_v38  ;;  %v750_v33 = vadd.f32 %v1640_v56, %v741_v19  ;;  %v615_v31 = vmul.f32 %v614_v34, %v1982_v14  ;;  %v632_v24 = vperm.slane %v1980_v12, 6 }
 0x154   :  { %v578_v57 = vsel %vm575_vm7, %v576_v61, %v577_v47  ;;  %v624_v18 = vmul.f32 %v623_v17, %v1982_v14  ;;  %v593_v13 = vperm.slane %v2473_v5, 1  ;;  %v602_v62 = vperm.slane %v2473_v5, 2 }
 0x155   :  { %v753_v36 = vadd.f32 %v752_v32, %v744_v23  ;;  %v759_v3 = vadd.f32 %v1642_v53, %v750_v33  ;;  %v579_v51 = vmul.f32 %v578_v57, %v1982_v14  ;;  %v633_v46 = vmul.f32 %v632_v24, %v1982_v14 }
 0x156   :  { %v641_v37 = vperm.slane %v1980_v12, 7  ;;  %v611_v58 = vperm.slane %v2473_v5, 3  ;;  %v620_v12 = vperm.slane %v2473_v5, 4  ;;  %v638_v56 = vperm.slane %v2473_v5, 6 }
 0x157   :  { %v762_v42 = vadd.f32 %v761_v44, %v753_v36  ;;  %1643 = vrcp.f32 %v759_v3  ;;  %v582_v20 = vsub.f32 %v2462_v8, %v579_v51  ;;  %v589_v25 = vsub.f32 %v588_v40, %v579_v51 }
 0x158   :  { %v598_v4 = vsub.f32 %v597_v2, %v579_v51  ;;  %v607_v0 = vsub.f32 %v606_v54, %v579_v51  ;;  %v616_v35 = vsub.f32 %v615_v31, %v579_v51  ;;  %v625_v45 = vsub.f32 %v624_v18, %v579_v51 }
 0x159   :  { %v583_v11 = vmul.f32 1.442695, %v582_v20  ;;  %v590_v10 = vmul.f32 1.442695, %v589_v25  ;;  %v634_v29 = vsub.f32 %v633_v46, %v579_v51  ;;  %v642_v55 = vmul.f32 %v641_v37, %v1982_v14 }
 0x15a   :  { %v599_v41 = vmul.f32 1.442695, %v598_v4  ;;  %v608_v26 = vmul.f32 1.442695, %v607_v0  ;;  %v617_v15 = vmul.f32 1.442695, %v616_v35 }
 0x15b   :  { %1645 = vpow2.f32 %v583_v11  ;;  %v629_v8 = vperm.slane %v2473_v5, 5  ;;  %v643_v59 = vsub.f32 %v642_v55, %v579_v51  ;;  %v626_v40 = vmul.f32 1.442695, %v625_v45 }
 0x15c   :  { %1647 = vpow2.f32 %v590_v10  ;;  %v434_v27 = vrot.slane %v1976_v7, 1  ;;  %v635_v14 = vmul.f32 1.442695, %v634_v29  ;;  %v438_v39 = vrot.slane %v1976_v7, 2 }
 0x15d   :  { %v1644_v6 = vpop.eup %1643  ;;  %1649 = vpow2.f32 %v599_v41  ;;  %v644_v43 = vmul.f32 1.442695, %v643_v59  ;;  %v647_v52 = vperm.slane %v2473_v5, 7  ;;  %v442_v49 = vrot.slane %v1976_v7, 3 }
 0x15e   :  { %v764_v50 = vmul.f32 %v1644_v6, %v759_v3  ;;  %1651 = vpow2.f32 %v608_v26  ;;  %v436_v53 = vmax.f32 %v1976_v7, %v434_v27  ;;  %v437_v32 = vmin.f32 %v1976_v7, %v434_v27 }
 0x15f   :  { %1653 = vpow2.f32 %v617_v15  ;;  %v446_v60 = vrot.slane %v1976_v7, 4  ;;  %v450_v16 = vrot.slane %v1976_v7, 5  ;;  %v467_v1 = vperm.slane %v1976_v7, 0 }
 0x160   :  { %v765_v28 = vsub.f32 2.0, %v764_v50  ;;  %1655 = vpow2.f32 %v626_v40  ;;  %v440_v48 = vmax.f32 %v436_v53, %v438_v39  ;;  %v441_v44 = vmin.f32 %v437_v32, %v438_v39 }
 0x161   :  { %v1646_v22 = vpop.eup %1645  ;;  %1657 = vpow2.f32 %v635_v14  ;;  %v474_v63 = vperm.slane %v1976_v7, 1  ;;  %v2507_v23 = vmul.f32 %v467_v1, %v1992_v30  ;;  %v454_v20 = vrot.slane %v1976_v7, 6 }
 0x162   :  { %v1648_v38 = vpop.eup %1647  ;;  %v766_v19 = vmul.f32 %v1644_v6, %v765_v28  ;;  %v586_v2 = vmul.f32 %v1646_v22, %v585_v21  ;;  %1659 = vpow2.f32 %v644_v43  ;;  %v444_v5 = vmax.f32 %v440_v48, %v442_v49 }
 0x163   :  { %v1650_v61 = vpop.eup %1649  ;;  %v592_v47 = vadd.f32 %v1648_v38, %v1646_v22  ;;  %v594_v54 = vmul.f32 %v1648_v38, %v593_v13  ;;  %v445_v34 = vmin.f32 %v441_v44, %v442_v49  ;;  %v475_v24 = vmul.f32 %v474_v63, %v1992_v30 }
 0x164   :  { %v1652_v33 = vpop.eup %1651  ;;  %v767_v17 = vmul.f32 %v766_v19, %v762_v42  ;;  %v603_v57 = vmul.f32 %v1650_v61, %v602_v62  ;;  %v448_v31 = vmax.f32 %v444_v5, %v446_v60  ;;  %v483_v25 = vperm.slane %v1976_v7, 2 }
 0x165   :  { %v1654_v36 = vpop.eup %1653  ;;  %v595_v3 = vadd.f32 %v594_v54, %v586_v2  ;;  %v601_v51 = vadd.f32 %v1650_v61, %v592_v47  ;;  %v612_v18 = vmul.f32 %v1652_v33, %v611_v58  ;;  %v449_v21 = vmin.f32 %v445_v34, %v446_v60  ;;  %v320_v34 = vpop.permute.xlu2 %319 }
 0x166   :  { %v1656_v46 = vpop.eup %1655  ;;  %1436 = vmatpush.msrb.mxu0 %v767_v17  ;;  %1527 = vmatpush.msra.mxu3 %v767_v17  ;;  %v621_v37 = vmul.f32 %v1654_v36, %v620_v12  ;;  %v452_v13 = vmax.f32 %v448_v31, %v450_v16  ;;  %v458_v29 = vrot.slane %v1976_v7, 7  ;;  %v484_v55 = vmul.f32 %v483_v25, %v1992_v30 }
 0x167   :  { %v1658_v4 = vpop.eup %1657  ;;  %v604_v42 = vadd.f32 %v603_v57, %v595_v3  ;;  %v610_v62 = vadd.f32 %v1652_v33, %v601_v51  ;;  %v630_v0 = vmul.f32 %v1656_v46, %v629_v8  ;;  %v453_v35 = vmin.f32 %v449_v21, %v450_v16 }
 0x168   :  { %v1660_v45 = vpop.eup %1659  ;;  %v639_v11 = vmul.f32 %v1658_v4, %v638_v56  ;;  %v456_v10 = vmax.f32 %v452_v13, %v454_v20  ;;  %v492_v59 = vperm.slane %v1976_v7, 3  ;;  %v501_v40 = vperm.slane %v1976_v7, 4 }
 0x169   :  { %v613_v41 = vadd.f32 %v612_v18, %v604_v42  ;;  %v619_v26 = vadd.f32 %v1654_v36, %v610_v62  ;;  %v648_v58 = vmul.f32 %v1660_v45, %v647_v52  ;;  %v457_v12 = vmin.f32 %v453_v35, %v454_v20 }
 0x16a   :  { %v460_v15 = vmax.f32 %v456_v10, %v458_v29  ;;  %v493_v56 = vmul.f32 %v492_v59, %v1992_v30  ;;  %v502_v14 = vmul.f32 %v501_v40, %v1992_v30  ;;  %v510_v43 = vperm.slane %v1976_v7, 5 }
 0x16b   :  { %v622_v27 = vadd.f32 %v621_v37, %v613_v41  ;;  %v628_v6 = vadd.f32 %v1656_v46, %v619_v26  ;;  %v461_v8 = vmin.f32 %v457_v12, %v458_v29  ;;  %v519_v49 = vperm.slane %v1976_v7, 6 }
 0x16c   :  { %v463_v53 = vperm.slane %v460_v15, 0  ;;  %v511_v52 = vmul.f32 %v510_v43, %v1992_v30  ;;  %v528_v60 = vperm.slane %v1976_v7, 7  ;;  %v399_v31 = vadd.f32 %v1978_v9, %v320_v34  ;;  %v1340_v34 = vld [vmem:[%s2572_s9 + $0x30] sm:$0xff] }
 0x16d   :  { %v631_v39 = vadd.f32 %v630_v0, %v622_v27  ;;  %v637_v50 = vadd.f32 %v1658_v4, %v628_v6  ;;  %v464_v32 = vperm.slane %v461_v8, 0  ;;  %v520_v16 = vmul.f32 %v519_v49, %v1992_v30 }
 0x16e   :  { %v529_v1 = vmul.f32 %v528_v60, %v1992_v30  ;;  %v472_v18 = vperm.slane %v399_v31, 0  ;;  %v480_v37 = vperm.slane %v399_v31, 1  ;;  %v489_v13 = vperm.slane %v399_v31, 2 }
 0x16f   :  { %v640_v28 = vadd.f32 %v639_v11, %v631_v39  ;;  %v646_v48 = vadd.f32 %v1660_v45, %v637_v50  ;;  %v465_v44 = vsel %vm462_vm8, %v463_v53, %v464_v32  ;;  %v498_v9 = vperm.slane %v399_v31, 3 }
 0x170   :  { %v466_v22 = vmul.f32 %v465_v44, %v1992_v30  ;;  %v507_v62 = vperm.slane %v399_v31, 4  ;;  %v516_v10 = vperm.slane %v399_v31, 5  ;;  %v525_v41 = vperm.slane %v399_v31, 6 }
 0x171   :  { %v649_v63 = vadd.f32 %v648_v58, %v640_v28  ;;  %1661 = vrcp.f32 %v646_v48  ;;  %v534_v59 = vperm.slane %v399_v31, 7 }
 0x172   :  { %v469_v38 = vsub.f32 %v2507_v23, %v466_v22  ;;  %v476_v19 = vsub.f32 %v475_v24, %v466_v22  ;;  %v485_v2 = vsub.f32 %v484_v55, %v466_v22  ;;  %v494_v5 = vsub.f32 %v493_v56, %v466_v22 }
 0x173   :  { %v503_v61 = vsub.f32 %v502_v14, %v466_v22  ;;  %v512_v47 = vsub.f32 %v511_v52, %v466_v22  ;;  %v521_v54 = vsub.f32 %v520_v16, %v466_v22  ;;  %v530_v7 = vsub.f32 %v529_v1, %v466_v22 }
 0x174   :  { %v470_v33 = vmul.f32 1.442695, %v469_v38  ;;  %v477_v17 = vmul.f32 1.442695, %v476_v19  ;;  %v486_v57 = vmul.f32 1.442695, %v485_v2 }
 0x175   :  { %v495_v36 = vmul.f32 1.442695, %v494_v5  ;;  %v504_v30 = vmul.f32 1.442695, %v503_v61  ;;  %v513_v51 = vmul.f32 1.442695, %v512_v47 }
 0x176   :  { %1663 = vpow2.f32 %v470_v33  ;;  %v522_v24 = vmul.f32 1.442695, %v521_v54  ;;  %v531_v21 = vmul.f32 1.442695, %v530_v7  ;;  %v1334_v2 = vld [vmem:[%s2572_s9] sm:$0xff]  ;;  %v1335_v5 = vld [vmem:[%s2572_s9 + $0x8] sm:$0xff] }
 0x177   :  { %v1662_v3 = vpop.eup %1661  ;;  %1665 = vpow2.f32 %v477_v17  ;;  %v1336_v61 = vld [vmem:[%s2572_s9 + $0x10] sm:$0xff]  ;;  %v1337_v47 = vld [vmem:[%s2572_s9 + $0x18] sm:$0xff]  ;;  %v1338_v54 = vld [vmem:[%s2572_s9 + $0x20] sm:$0xff]  ;;  %v1361_v17 = vpop.permute.xlu0 %1360 }
 0x178   :  { %v651_v23 = vmul.f32 %v1662_v3, %v646_v48  ;;  %1667 = vpow2.f32 %v486_v57  ;;  %v1339_v7 = vld [vmem:[%s2572_s9 + $0x28] sm:$0xff]  ;;  %v1341_v33 = vld [vmem:[%s2572_s9 + $0x38] sm:$0xff]  ;;  %s1708_s9 = smov [#allocation4]  }
 0x179   :  { %1669 = vpow2.f32 %v495_v36  ;;  %v1366_v36 = vpop.permute.xlu1 %1365  ;;  %s1476_s27 = sshll.u32 %s1708_s9, 4  ;;  %s1477_s27 = int_to_ptr.vmem [resolvable:$true] %s1476_s27 }
 0x17a   :  { %v652_v46 = vsub.f32 2.0, %v651_v23  ;;  %1671 = vpow2.f32 %v504_v30 }
 0x17b   :  { %1673 = vpow2.f32 %v513_v51  ;;  %v1371_v51 = vpop.permute.xlu2 %1370 }
 0x17c   :  { %v1664_v20 = vpop.eup %1663  ;;  %v653_v25 = vmul.f32 %v1662_v3, %v652_v46  ;;  %1675 = vpow2.f32 %v522_v24 }
 0x17d   :  { %v1666_v4 = vpop.eup %1665  ;;  %v473_v42 = vmul.f32 %v1664_v20, %v472_v18  ;;  %1677 = vpow2.f32 %v531_v21 }
 0x17e   :  { %v1668_v0 = vpop.eup %1667  ;;  %v654_v35 = vmul.f32 %v653_v25, %v649_v63  ;;  %v479_v45 = vadd.f32 %v1666_v4, %v1664_v20  ;;  %v481_v11 = vmul.f32 %v1666_v4, %v480_v37 }
 0x17f   :  { %v1670_v29 = vpop.eup %1669  ;;  %v490_v55 = vmul.f32 %v1668_v0, %v489_v13  ;;  %v1376_v18 = vpop.permute.xlu0 %1375 }
 0x180   :  { %v1672_v26 = vpop.eup %1671  ;;  %1437 = vmatpush.msrb.mxu0 %v654_v35  ;;  %1528 = vmatpush.msra.mxu3 %v654_v35  ;;  %v482_v58 = vadd.f32 %v481_v11, %v473_v42  ;;  %v488_v12 = vadd.f32 %v1668_v0, %v479_v45  ;;  %v499_v15 = vmul.f32 %v1670_v29, %v498_v9 }
 0x181   :  { %v1674_v40 = vpop.eup %1673  ;;  %v508_v27 = vmul.f32 %v1672_v26, %v507_v62  ;;  %v1381_v37 = vpop.permute.xlu1 %1380 }
 0x182   :  { %v1676_v6 = vpop.eup %1675  ;;  %v491_v8 = vadd.f32 %v490_v55, %v482_v58  ;;  %v497_v56 = vadd.f32 %v1670_v29, %v488_v12  ;;  %v517_v14 = vmul.f32 %v1674_v40, %v516_v10 }
 0x183   :  { %v1678_v43 = vpop.eup %1677  ;;  %v526_v39 = vmul.f32 %v1676_v6, %v525_v41  ;;  %v1386_v25 = vpop.permute.xlu2 %1385 }
 0x184   :  { %v500_v50 = vadd.f32 %v499_v15, %v491_v8  ;;  %v506_v53 = vadd.f32 %v1672_v26, %v497_v56  ;;  %v535_v32 = vmul.f32 %v1678_v43, %v534_v59 }
 0x186   :  { %v509_v52 = vadd.f32 %v508_v27, %v500_v50  ;;  %v515_v49 = vadd.f32 %v1674_v40, %v506_v53 }
 0x187   :  { %v1391_v42 = vpop.permute.xlu0 %1390 }
 0x188   :  { %v518_v60 = vadd.f32 %v517_v14, %v509_v52  ;;  %v524_v28 = vadd.f32 %v1676_v6, %v515_v49 }
 0x189   :  { %v1396_v35 = vpop.permute.xlu1 %1395 }
 0x18a   :  { %v527_v48 = vadd.f32 %v526_v39, %v518_v60  ;;  %v533_v44 = vadd.f32 %v1678_v43, %v524_v28 }
 0x18c   :  { %v536_v22 = vadd.f32 %v535_v32, %v527_v48  ;;  %1679 = vrcp.f32 %v533_v44 }
 0x192   :  { %v1680_v16 = vpop.eup %1679 }
 0x193   :  { %v538_v1 = vmul.f32 %v1680_v16, %v533_v44 }
 0x195   :  { %v539_v63 = vsub.f32 2.0, %v538_v1 }
 0x197   :  { %v540_v38 = vmul.f32 %v1680_v16, %v539_v63 }
 0x199   :  { %v541_v19 = vmul.f32 %v540_v38, %v536_v22 }
 0x19b   :  { %1438 = vmatpush.msrb.mxu0 %v541_v19  ;;  %1529 = vmatpush.msra.mxu3 %v541_v19 }
 0x19c   :  { %1514 = vmatmul.msk.f32.vlgmr.msrb.gmra.mxu0 %vm1398_vm9, %v1334_v2  ;;  %1515 = vmatmul.msk.f32.vlgmr.msra.gmra.mxu3 %vm1398_vm9, %v1335_v5 }
 0x1a4   :  { %1516 = vmatmul.msk.f32.gmra.mxu3 %vm1398_vm9, %v1336_v61 }
 0x1ac   :  { %1517 = vmatmul.msk.f32.gmra.mxu3 %vm1398_vm9, %v1337_v47 }
 0x1b4   :  { %1518 = vmatmul.msk.f32.gmra.mxu3 %vm1398_vm9, %v1338_v54 }
 0x1bc   :  { %1519 = vmatmul.msk.f32.gmra.mxu3 %vm1398_vm9, %v1339_v7 }
 0x1c4   :  { %1520 = vmatmul.msk.f32.gmra.mxu3 %vm1398_vm9, %v1340_v34 }
 0x1cc   :  { %1521 = vmatmul.msk.f32.gmra.mxu3 %vm1398_vm9, %v1341_v33 }
 0x219   :  { %v1440_v57 = vpop.f32.mrf.mxu0 }
 0x21a   :  { %v1441_v31 = vadd.f32 %v1440_v57, %v1361_v17 }
 0x21c   :  { %1464 = vst [vmem:[#allocation4] sm:$0xff] %v1441_v31 }
 0x21f   :  { %v1443_v30 = vpop.f32.mrf.mxu3 }
 0x220   :  { %v1444_v3 = vadd.f32 %v1443_v30, %v1366_v36 }
 0x222   :  { %1465 = vst [vmem:[#allocation4 + $0x8] sm:$0xff] %v1444_v3 }
 0x227   :  { %v1446_v23 = vpop.f32.mrf.mxu3 }
 0x228   :  { %v1447_v24 = vadd.f32 %v1446_v23, %v1371_v51 }
 0x22a   :  { %1466 = vst [vmem:[#allocation4 + $0x10] sm:$0xff] %v1447_v24 }
 0x22f   :  { %v1449_v21 = vpop.f32.mrf.mxu3 }
 0x230   :  { %v1450_v46 = vadd.f32 %v1449_v21, %v1376_v18 }
 0x232   :  { %1467 = vst [vmem:[#allocation4 + $0x18] sm:$0xff] %v1450_v46 }
 0x237   :  { %v1452_v13 = vpop.f32.mrf.mxu3 }
 0x238   :  { %v1453_v20 = vadd.f32 %v1452_v13, %v1381_v37 }
 0x23a   :  { %1468 = vst [vmem:[#allocation4 + $0x20] sm:$0xff] %v1453_v20 }
 0x23f   :  { %v1455_v9 = vpop.f32.mrf.mxu3 }
 0x240   :  { %v1456_v4 = vadd.f32 %v1455_v9, %v1386_v25 }
 0x242   :  { %1469 = vst [vmem:[#allocation4 + $0x28] sm:$0xff] %v1456_v4 }
 0x247   :  { %v1458_v62 = vpop.f32.mrf.mxu3 }
 0x248   :  { %v1459_v0 = vadd.f32 %v1458_v62, %v1391_v42 }
 0x24a   :  { %1470 = vst [vmem:[#allocation4 + $0x30] sm:$0xff] %v1459_v0 }
 0x24f   :  { %v1461_v45 = vpop.f32.mrf.mxu3 }
 0x250   :  { %v1462_v11 = vadd.f32 %v1461_v45, %v1396_v35 }
 0x252   :  { %1471 = vst [vmem:[#allocation4 + $0x38] sm:$0xff] %v1462_v11 }
 0x253   :  { %1484 = dma.vmem_to_hbm [thread:$0]  %s1477_s27, 1024, %s1479_s8, [#allocation5], %s1709_s2, %s1709_s2, %s1710_s0  }
 0x254   :  { %1705 = dma.done.wait [#allocation5], 1024  }
 0x255   :  { %1706 = vsyncadd [#allocation5], 4294966272 }
 0x256   :  { %1489 = vsyncpa [#allocation5], 1 }

</bundles_post_ra>
